<compile_context>
chip_gen: v7x
topology: tpu7x:2x2x1
jax: 0.10.0
libtpu: 0.0.40
codegen_flags: <defaults>
</compile_context>

<pallas_src>
import functools

import jax
import jax.numpy as jnp
from jax.experimental import pallas as pl
from jax.experimental.pallas import tpu as pltpu


def _round_up(n, m):
    return ((n + m - 1) // m) * m


def _relu(x):
    return jnp.maximum(x, 0.0)


def _softplus(x):
    # numerically stable softplus written with plain exp/log (no log1p) for Mosaic lowering
    return jnp.maximum(x, 0.0) + jnp.log(1.0 + jnp.exp(-jnp.abs(x)))


def _sigmoid(x):
    # tanh form: no inf intermediates; tanh runs on the EUP (its own VLIW slot)
    return 0.5 * (jnp.tanh(0.5 * x) + 1.0)


def _vae_kernel(x_ref, eps_ref,
                we1, be1, we2, be2, wml, bml,
                wd1m, wd1n, bd1, wd2, bd2, wd3, bd3,
                xout_ref, stats_ref, *, latent_dim):
    f32 = jnp.float32
    bf16 = jnp.bfloat16

    # f32 input straight from HBM; the bf16 cast is a VPU op hidden under the input DMA.
    x = x_ref[...].astype(bf16)

    # ---- encoder: bf16 MXU operands, f32 accumulation, f32 element-wise math ----
    h = _relu(jnp.dot(x, we1[...], preferred_element_type=f32) + be1[...])
    h = _relu(jnp.dot(h.astype(bf16), we2[...], preferred_element_type=f32) + be2[...])

    # ---- fused, lane-packed head: lanes [0,L) = raw logvar, [L,2L) = mean, rest exact zeros ----
    ml = jnp.dot(h.astype(bf16), wml[...], preferred_element_type=f32) + bml[...]
    lane = jax.lax.broadcasted_iota(jnp.int32, ml.shape, 1)
    is_lv = lane < latent_dim
    mlv = jnp.where(is_lv, _softplus(ml), ml)           # [logvar | mean | 0]
    stats_ref[...] = mlv.astype(stats_ref.dtype)        # single lane-dense store (no concat temp)

    # ---- reparameterization: z = eps * exp(0.5*logvar) + mean, kept in f32 ----
    lv = mlv[:, :latent_dim]                            # offset-0 lane slice (cheap)
    noise = eps_ref[...] * jnp.exp(0.5 * lv)            # (TB, latent) f32
    mean_pk = jnp.where(is_lv, 0.0, mlv)                # mean at lanes [L,2L), zeros elsewhere

    # ---- decoder ----
    # z @ Wd1 without any lane shuffle: mean_pk @ Wd1m (rows [L,2L) hold Wd1) + noise @ Wd1n
    # is exactly (mean + eps*sd) @ Wd1 because the matmul sums over lanes.
    d = jnp.dot(mean_pk, wd1m[...], preferred_element_type=f32)
    d = d + jnp.dot(noise, wd1n[...], preferred_element_type=f32)
    d = _relu(d + bd1[...])
    d = _relu(jnp.dot(d.astype(bf16), wd2[...], preferred_element_type=f32) + bd2[...])
    xo = _sigmoid(jnp.dot(d.astype(bf16), wd3[...], preferred_element_type=f32) + bd3[...])
    xout_ref[...] = xo.astype(xout_ref.dtype)


def init_params(key, input_dim, hidden_dim, latent_dim):
    """PyTorch-Linear-style uniform init, deterministic. Weights are (in, out)."""
    def linear(k, fan_in, fan_out):
        kw, kb = jax.random.split(k)
        bound = 1.0 / jnp.sqrt(jnp.float32(fan_in))
        w = jax.random.uniform(kw, (fan_in, fan_out), jnp.float32, -bound, bound)
        b = jax.random.uniform(kb, (1, fan_out), jnp.float32, -bound, bound)
        return w, b

    keys = jax.random.split(key, 7)
    p = {}
    p["we1"], p["be1"] = linear(keys[0], input_dim, hidden_dim)
    p["we2"], p["be2"] = linear(keys[1], hidden_dim, hidden_dim)
    p["wm"], p["bm"] = linear(keys[2], hidden_dim, latent_dim)
    p["wlv"], p["blv"] = linear(keys[3], hidden_dim, latent_dim)
    p["wd1"], p["bd1"] = linear(keys[4], latent_dim, hidden_dim)
    p["wd2"], p["bd2"] = linear(keys[5], hidden_dim, hidden_dim)
    p["wd3"], p["bd3"] = linear(keys[6], hidden_dim, input_dim)
    return p


def prepare_params(p):
    """One-time packing/padding/casting of the weights for the kernel.

    Call this once (outside the jitted forward) so per-call wrapper work touches only x and eps.
    Feature dims of the activations (input_dim) are never padded; only hidden/latent weight dims
    are zero-padded to 128 so every matmul K/N and the stats store stay lane-dense.
    """
    input_dim, hidden_dim = p["we1"].shape
    latent_dim = p["wm"].shape[1]
    Hp = _round_up(hidden_dim, 128)
    Lp = _round_up(2 * latent_dim, 128)     # packed [logvar | mean] head width

    bf16 = jnp.bfloat16

    def pad_w(w, rows, cols, row0=0, col0=0):
        out = jnp.zeros((rows, cols), jnp.float32)
        return out.at[row0:row0 + w.shape[0], col0:col0 + w.shape[1]].set(w)

    def pad_b(b, cols, col0=0):
        out = jnp.zeros((1, cols), jnp.float32)
        return out.at[:, col0:col0 + b.shape[1]].set(b)

    packed = {
        "we1": pad_w(p["we1"], input_dim, Hp).astype(bf16),
        "be1": pad_b(p["be1"], Hp),
        "we2": pad_w(p["we2"], Hp, Hp).astype(bf16),
        "be2": pad_b(p["be2"], Hp),
        # packed head: logvar weights in cols [0,L), mean weights in cols [L,2L), rest zero
        "wml": (pad_w(p["wlv"], Hp, Lp)
                + pad_w(p["wm"], Hp, Lp, col0=latent_dim)).astype(bf16),
        "bml": pad_b(p["blv"], Lp) + pad_b(p["bm"], Lp, col0=latent_dim),
        # decoder entry kept in f32 (exact reparameterization path):
        #   wd1m routes the packed mean lanes [L,2L); wd1n routes the latent-wide noise term
        "wd1m": pad_w(p["wd1"], Lp, Hp, row0=latent_dim),
        "wd1n": pad_w(p["wd1"], latent_dim, Hp),
        "bd1": pad_b(p["bd1"], Hp),
        "wd2": pad_w(p["wd2"], Hp, Hp).astype(bf16),
        "bd2": pad_b(p["bd2"], Hp),
        "wd3": pad_w(p["wd3"], Hp, input_dim).astype(bf16),
        "bd3": pad_b(p["bd3"], input_dim),
    }
    return packed


def vae_forward(x, eps, packed, *, batch_tile=512, out_dtype=jnp.float32):
    """x: (B, input_dim) f32, eps: (B, latent_dim) f32, packed from prepare_params().
    Returns (x_out, z_mean, z_logvar)."""
    B, input_dim = x.shape
    latent_dim = packed["wd1n"].shape[0]
    hidden_p = packed["we1"].shape[1]
    Lp = packed["wml"].shape[1]
    assert packed["we1"].shape[0] == input_dim
    assert eps.shape == (B, latent_dim)

    # Batch tile: big enough to amortize the ~0.35us per-grid-step overhead, rounded to 16 rows
    # (keeps bf16/f32 sublane layouts happy for small batches), and halved when it would leave a
    # single grid step so the ("parallel",) axis can feed both v7x TensorCores.
    # Per-step footprint at TB=512 is only a few MiB -> well under the scoped-VMEM default on
    # v5e/v6e/v7x; raise batch_tile for very large B on v5e/v6e if desired.
    TB = min(batch_tile, _round_up(max(B, 16), 16))
    while TB >= 512 and _round_up(B, TB) == TB:   # keep >= 2 grid steps when the batch allows
        TB //= 2
    Bp = _round_up(B, TB)

    if Bp != B:  # batch padding only when actually required
        x = jnp.pad(x, ((0, Bp - B), (0, 0)))
        eps = jnp.pad(eps, ((0, Bp - B), (0, 0)))

    weights = [packed[k] for k in
               ("we1", "be1", "we2", "be2", "wml", "bml",
                "wd1m", "wd1n", "bd1", "wd2", "bd2", "wd3", "bd3")]

    def rowspec(cols):   # batch-tiled arrays (x, eps, outputs); feature axis = full array dim
        return pl.BlockSpec((TB, cols), lambda i: (i, 0))

    def resident(a):     # weights/biases: constant index_map -> DMA'd once, resident in VMEM
        return pl.BlockSpec(a.shape, lambda i: (0, 0))

    # Advisory cost estimate so XLA can overlap neighbouring ops with the custom call.
    flops = 2 * Bp * (input_dim * hidden_p + hidden_p * hidden_p + hidden_p * Lp
                      + Lp * hidden_p + latent_dim * hidden_p + hidden_p * hidden_p
                      + hidden_p * input_dim)
    transcendentals = Bp * (2 * Lp + latent_dim + input_dim)
    out_itemsize = jnp.dtype(out_dtype).itemsize
    bytes_accessed = (x.size * x.dtype.itemsize + eps.size * eps.dtype.itemsize
                      + sum(int(w.size) * w.dtype.itemsize for w in weights)
                      + Bp * input_dim * out_itemsize + Bp * Lp * out_itemsize)

    kernel = functools.partial(_vae_kernel, latent_dim=latent_dim)

    xout, stats = pl.pallas_call(
        kernel,
        out_shape=(
            jax.ShapeDtypeStruct((Bp, input_dim), out_dtype),
            jax.ShapeDtypeStruct((Bp, Lp), out_dtype),
        ),
        grid=(Bp // TB,),
        in_specs=[rowspec(input_dim), rowspec(latent_dim)] + [resident(w) for w in weights],
        out_specs=(rowspec(input_dim), rowspec(Lp)),
        compiler_params=pltpu.CompilerParams(
            dimension_semantics=("parallel",),
        ),
        cost_estimate=pl.CostEstimate(
            flops=int(flops),
            transcendentals=int(transcendentals),
            bytes_accessed=int(bytes_accessed),
        ),
    )(x, eps, *weights)

    x_out = xout[:B]
    z_logvar = stats[:B, :latent_dim]
    z_mean = stats[:B, latent_dim:2 * latent_dim]
    return x_out, z_mean, z_logvar


def vae_forward_ref(x, eps, p, *, bf16_matmuls=True):
    """Plain-JAX reference.

    bf16_matmuls=True mirrors the kernel numerics: bf16 MXU operands with f32 accumulation for
    every layer except the z -> fc_d1 matmul, which the kernel keeps in full f32.
    bf16_matmuls=False is the original all-f32 math."""
    f32 = jnp.float32

    def mm(a, w, bf):
        if bf:
            a = a.astype(jnp.bfloat16)
            w = w.astype(jnp.bfloat16)
        return jnp.dot(a, w, preferred_element_type=f32)

    h = _relu(mm(x, p["we1"], bf16_matmuls) + p["be1"])
    h = _relu(mm(h, p["we2"], bf16_matmuls) + p["be2"])
    mean = mm(h, p["wm"], bf16_matmuls) + p["bm"]
    logvar = _softplus(mm(h, p["wlv"], bf16_matmuls) + p["blv"])
    z = eps * jnp.exp(0.5 * logvar) + mean
    d = _relu(mm(z, p["wd1"], False) + p["bd1"])          # kernel keeps this layer in f32
    d = _relu(mm(d, p["wd2"], bf16_matmuls) + p["bd2"])
    x_out = _sigmoid(mm(d, p["wd3"], bf16_matmuls) + p["bd3"])
    return x_out, mean, logvar


if __name__ == "__main__":
    # Small shapes consistent with the module (hidden=64, latent=32 as in the spec); input_dim=256
    # keeps the example lane-aligned and B=512 exercises a 2-step batch grid.
    B, INPUT_DIM, HIDDEN_DIM, LATENT_DIM = 512, 256, 64, 32

    key = jax.random.PRNGKey(0)
    k_params, k_x, k_eps = jax.random.split(key, 3)

    params = init_params(k_params, INPUT_DIM, HIDDEN_DIM, LATENT_DIM)
    packed = prepare_params(params)   # one-time weight packing, outside the jitted forward
    x = jax.random.normal(k_x, (B, INPUT_DIM), jnp.float32)
    eps = jax.random.normal(k_eps, (B, LATENT_DIM), jnp.float32)

    fwd = jax.jit(vae_forward)
    x_out, z_mean, z_logvar = fwd(x, eps, packed)
    jax.block_until_ready((x_out, z_mean, z_logvar))

    # tight check vs. a reference that mirrors the kernel numerics
    r_out, r_mean, r_logvar = vae_forward_ref(x, eps, params, bf16_matmuls=True)
    assert jnp.allclose(x_out, r_out, rtol=2e-3, atol=2e-3)
    assert jnp.allclose(z_mean, r_mean, rtol=2e-3, atol=2e-3)
    assert jnp.allclose(z_logvar, r_logvar, rtol=2e-3, atol=2e-3)

    # loose sanity check vs. the original full-f32 math
    f_out, f_mean, f_logvar = vae_forward_ref(x, eps, params, bf16_matmuls=False)
    assert jnp.allclose(x_out, f_out, rtol=5e-2, atol=5e-2)
    assert jnp.allclose(z_mean, f_mean, rtol=5e-2, atol=5e-2)
    assert jnp.allclose(z_logvar, f_logvar, rtol=5e-2, atol=5e-2)

    print("KERNEL_OK")
</pallas_src>

<mosaic_0001>
module attributes {stable_mosaic.version = 11 : i64} {
  func.func @_vae_kernel(%arg0: i32, %arg1: memref<256x256xf32, #tpu.memory_space<vmem>>, %arg2: memref<256x32xf32, #tpu.memory_space<vmem>>, %arg3: memref<256x128xbf16, #tpu.memory_space<vmem>>, %arg4: memref<1x128xf32, #tpu.memory_space<vmem>>, %arg5: memref<128x128xbf16, #tpu.memory_space<vmem>>, %arg6: memref<1x128xf32, #tpu.memory_space<vmem>>, %arg7: memref<128x128xbf16, #tpu.memory_space<vmem>>, %arg8: memref<1x128xf32, #tpu.memory_space<vmem>>, %arg9: memref<128x128xf32, #tpu.memory_space<vmem>>, %arg10: memref<32x128xf32, #tpu.memory_space<vmem>>, %arg11: memref<1x128xf32, #tpu.memory_space<vmem>>, %arg12: memref<128x128xbf16, #tpu.memory_space<vmem>>, %arg13: memref<1x128xf32, #tpu.memory_space<vmem>>, %arg14: memref<128x256xbf16, #tpu.memory_space<vmem>>, %arg15: memref<1x256xf32, #tpu.memory_space<vmem>>, %arg16: memref<256x256xf32, #tpu.memory_space<vmem>>, %arg17: memref<256x128xf32, #tpu.memory_space<vmem>>) attributes {dimension_semantics = [#tpu.dimension_semantics<parallel>], iteration_bounds = array<i64: 2>, scalar_prefetch = 0 : i64, scratch_operands = 0 : i64, tpu.core_type = #tpu.core_type<tc>, window_params = [{transform_indices = @transform_0, window_bounds = array<i64: 256, 256>}, {transform_indices = @transform_1, window_bounds = array<i64: 256, 32>}, {pipeline_mode = #tpu.pipeline_mode<synchronous>, transform_indices = @transform_2, window_bounds = array<i64: 256, 128>}, {pipeline_mode = #tpu.pipeline_mode<synchronous>, transform_indices = @transform_3, window_bounds = array<i64: 1, 128>}, {pipeline_mode = #tpu.pipeline_mode<synchronous>, transform_indices = @transform_4, window_bounds = array<i64: 128, 128>}, {pipeline_mode = #tpu.pipeline_mode<synchronous>, transform_indices = @transform_5, window_bounds = array<i64: 1, 128>}, {pipeline_mode = #tpu.pipeline_mode<synchronous>, transform_indices = @transform_6, window_bounds = array<i64: 128, 128>}, {pipeline_mode = #tpu.pipeline_mode<synchronous>, transform_indices = @transform_7, window_bounds = array<i64: 1, 128>}, {pipeline_mode = #tpu.pipeline_mode<synchronous>, transform_indices = @transform_8, window_bounds = array<i64: 128, 128>}, {pipeline_mode = #tpu.pipeline_mode<synchronous>, transform_indices = @transform_9, window_bounds = array<i64: 32, 128>}, {pipeline_mode = #tpu.pipeline_mode<synchronous>, transform_indices = @transform_10, window_bounds = array<i64: 1, 128>}, {pipeline_mode = #tpu.pipeline_mode<synchronous>, transform_indices = @transform_11, window_bounds = array<i64: 128, 128>}, {pipeline_mode = #tpu.pipeline_mode<synchronous>, transform_indices = @transform_12, window_bounds = array<i64: 1, 128>}, {pipeline_mode = #tpu.pipeline_mode<synchronous>, transform_indices = @transform_13, window_bounds = array<i64: 128, 256>}, {pipeline_mode = #tpu.pipeline_mode<synchronous>, transform_indices = @transform_14, window_bounds = array<i64: 1, 256>}, {transform_indices = @transform_15, window_bounds = array<i64: 256, 256>}, {transform_indices = @transform_16, window_bounds = array<i64: 256, 128>}]} {
    %c0 = arith.constant 0 : index
    %c0_0 = arith.constant 0 : index
    %0 = vector.load %arg1[%c0, %c0_0] : memref<256x256xf32, #tpu.memory_space<vmem>>, vector<256x256xf32>
    %1 = arith.truncf %0 : vector<256x256xf32> to vector<256x256xbf16>
    %c0_1 = arith.constant 0 : index
    %c0_2 = arith.constant 0 : index
    %2 = vector.load %arg3[%c0_1, %c0_2] : memref<256x128xbf16, #tpu.memory_space<vmem>>, vector<256x128xbf16>
    %cst = arith.constant dense<0.000000e+00> : vector<256x128xf32>
    %3 = tpu.matmul %1, %2, %cst {dimension_numbers = #tpu.dot_dimension_numbers<[1], [0], [0], [1], [0, 0, 1, 1], [], []>} : vector<256x256xbf16>, vector<256x128xbf16>, vector<256x128xf32> -> vector<256x128xf32>
    %c0_3 = arith.constant 0 : index
    %c0_4 = arith.constant 0 : index
    %4 = vector.load %arg4[%c0_3, %c0_4] : memref<1x128xf32, #tpu.memory_space<vmem>>, vector<1x128xf32>
    %5 = vector.broadcast %4 : vector<1x128xf32> to vector<256x128xf32>
    %6 = arith.addf %3, %5 : vector<256x128xf32>
    %cst_5 = arith.constant 0.000000e+00 : f32
    %7 = vector.broadcast %cst_5 : f32 to vector<256x128xf32>
    %8 = arith.maximumf %6, %7 : vector<256x128xf32>
    %9 = arith.truncf %8 : vector<256x128xf32> to vector<256x128xbf16>
    %c0_6 = arith.constant 0 : index
    %c0_7 = arith.constant 0 : index
    %10 = vector.load %arg5[%c0_6, %c0_7] : memref<128x128xbf16, #tpu.memory_space<vmem>>, vector<128x128xbf16>
    %cst_8 = arith.constant dense<0.000000e+00> : vector<256x128xf32>
    %11 = tpu.matmul %9, %10, %cst_8 {dimension_numbers = #tpu.dot_dimension_numbers<[1], [0], [0], [1], [0, 0, 1, 1], [], []>} : vector<256x128xbf16>, vector<128x128xbf16>, vector<256x128xf32> -> vector<256x128xf32>
    %c0_9 = arith.constant 0 : index
    %c0_10 = arith.constant 0 : index
    %12 = vector.load %arg6[%c0_9, %c0_10] : memref<1x128xf32, #tpu.memory_space<vmem>>, vector<1x128xf32>
    %13 = vector.broadcast %12 : vector<1x128xf32> to vector<256x128xf32>
    %14 = arith.addf %11, %13 : vector<256x128xf32>
    %cst_11 = arith.constant 0.000000e+00 : f32
    %15 = vector.broadcast %cst_11 : f32 to vector<256x128xf32>
    %16 = arith.maximumf %14, %15 : vector<256x128xf32>
    %17 = arith.truncf %16 : vector<256x128xf32> to vector<256x128xbf16>
    %c0_12 = arith.constant 0 : index
    %c0_13 = arith.constant 0 : index
    %18 = vector.load %arg7[%c0_12, %c0_13] : memref<128x128xbf16, #tpu.memory_space<vmem>>, vector<128x128xbf16>
    %cst_14 = arith.constant dense<0.000000e+00> : vector<256x128xf32>
    %19 = tpu.matmul %17, %18, %cst_14 {dimension_numbers = #tpu.dot_dimension_numbers<[1], [0], [0], [1], [0, 0, 1, 1], [], []>} : vector<256x128xbf16>, vector<128x128xbf16>, vector<256x128xf32> -> vector<256x128xf32>
    %c0_15 = arith.constant 0 : index
    %c0_16 = arith.constant 0 : index
    %20 = vector.load %arg8[%c0_15, %c0_16] : memref<1x128xf32, #tpu.memory_space<vmem>>, vector<1x128xf32>
    %21 = vector.broadcast %20 : vector<1x128xf32> to vector<256x128xf32>
    %22 = arith.addf %19, %21 : vector<256x128xf32>
    %23 = tpu.iota {dimensions = array<i32: 1>} : vector<256x128xi32>
    %c32_i32 = arith.constant 32 : i32
    %24 = vector.broadcast %c32_i32 : i32 to vector<256x128xi32>
    %25 = arith.cmpi slt, %23, %24 : vector<256x128xi32>
    %cst_17 = arith.constant 0.000000e+00 : f32
    %26 = vector.broadcast %cst_17 : f32 to vector<256x128xf32>
    %27 = arith.maximumf %22, %26 : vector<256x128xf32>
    %28 = math.absf %22 : vector<256x128xf32>
    %cst_18 = arith.constant 0.000000e+00 : f32
    %29 = vector.broadcast %cst_18 : f32 to vector<256x128xf32>
    %30 = arith.subf %29, %28 : vector<256x128xf32>
    %31 = math.exp %30 : vector<256x128xf32>
    %cst_19 = arith.constant 1.000000e+00 : f32
    %32 = vector.broadcast %cst_19 : f32 to vector<256x128xf32>
    %33 = arith.addf %32, %31 : vector<256x128xf32>
    %34 = math.log %33 : vector<256x128xf32>
    %35 = arith.addf %27, %34 : vector<256x128xf32>
    %36 = arith.select %25, %35, %22 : vector<256x128xi1>, vector<256x128xf32>
    %c0_20 = arith.constant 0 : index
    %c0_21 = arith.constant 0 : index
    %37 = vector.load %arg17[%c0_20, %c0_21] : memref<256x128xf32, #tpu.memory_space<vmem>>, vector<256x128xf32>
    tpu.vector_store %arg17[%c0_20, %c0_21], %36 {strides = array<i32>} : memref<256x128xf32, #tpu.memory_space<vmem>>, vector<256x128xf32>,
    %38 = vector.extract_strided_slice %36 {offsets = [0, 0], sizes = [256, 32], strides = [1, 1]} : vector<256x128xf32> to vector<256x32xf32>
    %c0_22 = arith.constant 0 : index
    %c0_23 = arith.constant 0 : index
    %39 = vector.load %arg2[%c0_22, %c0_23] : memref<256x32xf32, #tpu.memory_space<vmem>>, vector<256x32xf32>
    %cst_24 = arith.constant 5.000000e-01 : f32
    %40 = vector.broadcast %cst_24 : f32 to vector<256x32xf32>
    %41 = arith.mulf %40, %38 : vector<256x32xf32>
    %42 = math.exp %41 : vector<256x32xf32>
    %43 = arith.mulf %39, %42 : vector<256x32xf32>
    %cst_25 = arith.constant 0.000000e+00 : f32
    %44 = vector.broadcast %cst_25 : f32 to vector<256x128xf32>
    %45 = arith.select %25, %44, %36 : vector<256x128xi1>, vector<256x128xf32>
    %c0_26 = arith.constant 0 : index
    %c0_27 = arith.constant 0 : index
    %46 = vector.load %arg9[%c0_26, %c0_27] : memref<128x128xf32, #tpu.memory_space<vmem>>, vector<128x128xf32>
    %cst_28 = arith.constant dense<0.000000e+00> : vector<256x128xf32>
    %47 = tpu.matmul %45, %46, %cst_28 {dimension_numbers = #tpu.dot_dimension_numbers<[1], [0], [0], [1], [0, 0, 1, 1], [], []>} : vector<256x128xf32>, vector<128x128xf32>, vector<256x128xf32> -> vector<256x128xf32>
    %c0_29 = arith.constant 0 : index
    %c0_30 = arith.constant 0 : index
    %48 = vector.load %arg10[%c0_29, %c0_30] : memref<32x128xf32, #tpu.memory_space<vmem>>, vector<32x128xf32>
    %cst_31 = arith.constant dense<0.000000e+00> : vector<256x128xf32>
    %49 = tpu.matmul %43, %48, %cst_31 {dimension_numbers = #tpu.dot_dimension_numbers<[1], [0], [0], [1], [0, 0, 1, 1], [], []>} : vector<256x32xf32>, vector<32x128xf32>, vector<256x128xf32> -> vector<256x128xf32>
    %50 = arith.addf %47, %49 : vector<256x128xf32>
    %c0_32 = arith.constant 0 : index
    %c0_33 = arith.constant 0 : index
    %51 = vector.load %arg11[%c0_32, %c0_33] : memref<1x128xf32, #tpu.memory_space<vmem>>, vector<1x128xf32>
    %52 = vector.broadcast %51 : vector<1x128xf32> to vector<256x128xf32>
    %53 = arith.addf %50, %52 : vector<256x128xf32>
    %cst_34 = arith.constant 0.000000e+00 : f32
    %54 = vector.broadcast %cst_34 : f32 to vector<256x128xf32>
    %55 = arith.maximumf %53, %54 : vector<256x128xf32>
    %56 = arith.truncf %55 : vector<256x128xf32> to vector<256x128xbf16>
    %c0_35 = arith.constant 0 : index
    %c0_36 = arith.constant 0 : index
    %57 = vector.load %arg12[%c0_35, %c0_36] : memref<128x128xbf16, #tpu.memory_space<vmem>>, vector<128x128xbf16>
    %cst_37 = arith.constant dense<0.000000e+00> : vector<256x128xf32>
    %58 = tpu.matmul %56, %57, %cst_37 {dimension_numbers = #tpu.dot_dimension_numbers<[1], [0], [0], [1], [0, 0, 1, 1], [], []>} : vector<256x128xbf16>, vector<128x128xbf16>, vector<256x128xf32> -> vector<256x128xf32>
    %c0_38 = arith.constant 0 : index
    %c0_39 = arith.constant 0 : index
    %59 = vector.load %arg13[%c0_38, %c0_39] : memref<1x128xf32, #tpu.memory_space<vmem>>, vector<1x128xf32>
    %60 = vector.broadcast %59 : vector<1x128xf32> to vector<256x128xf32>
    %61 = arith.addf %58, %60 : vector<256x128xf32>
    %cst_40 = arith.constant 0.000000e+00 : f32
    %62 = vector.broadcast %cst_40 : f32 to vector<256x128xf32>
    %63 = arith.maximumf %61, %62 : vector<256x128xf32>
    %64 = arith.truncf %63 : vector<256x128xf32> to vector<256x128xbf16>
    %c0_41 = arith.constant 0 : index
    %c0_42 = arith.constant 0 : index
    %65 = vector.load %arg14[%c0_41, %c0_42] : memref<128x256xbf16, #tpu.memory_space<vmem>>, vector<128x256xbf16>
    %cst_43 = arith.constant dense<0.000000e+00> : vector<256x256xf32>
    %66 = tpu.matmul %64, %65, %cst_43 {dimension_numbers = #tpu.dot_dimension_numbers<[1], [0], [0], [1], [0, 0, 1, 1], [], []>} : vector<256x128xbf16>, vector<128x256xbf16>, vector<256x256xf32> -> vector<256x256xf32>
    %c0_44 = arith.constant 0 : index
    %c0_45 = arith.constant 0 : index
    %67 = vector.load %arg15[%c0_44, %c0_45] : memref<1x256xf32, #tpu.memory_space<vmem>>, vector<1x256xf32>
    %68 = vector.broadcast %67 : vector<1x256xf32> to vector<256x256xf32>
    %69 = arith.addf %66, %68 : vector<256x256xf32>
    %cst_46 = arith.constant 5.000000e-01 : f32
    %70 = vector.broadcast %cst_46 : f32 to vector<256x256xf32>
    %71 = arith.mulf %70, %69 : vector<256x256xf32>
    %72 = math.tanh %71 : vector<256x256xf32>
    %cst_47 = arith.constant 1.000000e+00 : f32
    %73 = vector.broadcast %cst_47 : f32 to vector<256x256xf32>
    %74 = arith.addf %72, %73 : vector<256x256xf32>
    %cst_48 = arith.constant 5.000000e-01 : f32
    %75 = vector.broadcast %cst_48 : f32 to vector<256x256xf32>
    %76 = arith.mulf %75, %74 : vector<256x256xf32>
    %c0_49 = arith.constant 0 : index
    %c0_50 = arith.constant 0 : index
    %77 = vector.load %arg16[%c0_49, %c0_50] : memref<256x256xf32, #tpu.memory_space<vmem>>, vector<256x256xf32>
    tpu.vector_store %arg16[%c0_49, %c0_50], %76 {strides = array<i32>} : memref<256x256xf32, #tpu.memory_space<vmem>>, vector<256x256xf32>,
    return
  }
  func.func @transform_0(%arg0: i32) -> (i32, i32) {
    %c0_i32 = arith.constant 0 : i32
    %c0_i32_0 = arith.constant 0 : i32
    return %arg0, %c0_i32 : i32, i32
  }
  func.func @transform_1(%arg0: i32) -> (i32, i32) {
    %c0_i32 = arith.constant 0 : i32
    %c0_i32_0 = arith.constant 0 : i32
    return %arg0, %c0_i32 : i32, i32
  }
  func.func @transform_2(%arg0: i32) -> (i32, i32) {
    %c0_i32 = arith.constant 0 : i32
    %c0_i32_0 = arith.constant 0 : i32
    %c0_i32_1 = arith.constant 0 : i32
    return %c0_i32, %c0_i32_0 : i32, i32
  }
  func.func @transform_3(%arg0: i32) -> (i32, i32) {
    %c0_i32 = arith.constant 0 : i32
    %c0_i32_0 = arith.constant 0 : i32
    %c0_i32_1 = arith.constant 0 : i32
    return %c0_i32, %c0_i32_0 : i32, i32
  }
  func.func @transform_4(%arg0: i32) -> (i32, i32) {
    %c0_i32 = arith.constant 0 : i32
    %c0_i32_0 = arith.constant 0 : i32
    %c0_i32_1 = arith.constant 0 : i32
    return %c0_i32, %c0_i32_0 : i32, i32
  }
  func.func @transform_5(%arg0: i32) -> (i32, i32) {
    %c0_i32 = arith.constant 0 : i32
    %c0_i32_0 = arith.constant 0 : i32
    %c0_i32_1 = arith.constant 0 : i32
    return %c0_i32, %c0_i32_0 : i32, i32
  }
  func.func @transform_6(%arg0: i32) -> (i32, i32) {
    %c0_i32 = arith.constant 0 : i32
    %c0_i32_0 = arith.constant 0 : i32
    %c0_i32_1 = arith.constant 0 : i32
    return %c0_i32, %c0_i32_0 : i32, i32
  }
  func.func @transform_7(%arg0: i32) -> (i32, i32) {
    %c0_i32 = arith.constant 0 : i32
    %c0_i32_0 = arith.constant 0 : i32
    %c0_i32_1 = arith.constant 0 : i32
    return %c0_i32, %c0_i32_0 : i32, i32
  }
  func.func @transform_8(%arg0: i32) -> (i32, i32) {
    %c0_i32 = arith.constant 0 : i32
    %c0_i32_0 = arith.constant 0 : i32
    %c0_i32_1 = arith.constant 0 : i32
    return %c0_i32, %c0_i32_0 : i32, i32
  }
  func.func @transform_9(%arg0: i32) -> (i32, i32) {
    %c0_i32 = arith.constant 0 : i32
    %c0_i32_0 = arith.constant 0 : i32
    %c0_i32_1 = arith.constant 0 : i32
    return %c0_i32, %c0_i32_0 : i32, i32
  }
  func.func @transform_10(%arg0: i32) -> (i32, i32) {
    %c0_i32 = arith.constant 0 : i32
    %c0_i32_0 = arith.constant 0 : i32
    %c0_i32_1 = arith.constant 0 : i32
    return %c0_i32, %c0_i32_0 : i32, i32
  }
  func.func @transform_11(%arg0: i32) -> (i32, i32) {
    %c0_i32 = arith.constant 0 : i32
    %c0_i32_0 = arith.constant 0 : i32
    %c0_i32_1 = arith.constant 0 : i32
    return %c0_i32, %c0_i32_0 : i32, i32
  }
  func.func @transform_12(%arg0: i32) -> (i32, i32) {
    %c0_i32 = arith.constant 0 : i32
    %c0_i32_0 = arith.constant 0 : i32
    %c0_i32_1 = arith.constant 0 : i32
    return %c0_i32, %c0_i32_0 : i32, i32
  }
  func.func @transform_13(%arg0: i32) -> (i32, i32) {
    %c0_i32 = arith.constant 0 : i32
    %c0_i32_0 = arith.constant 0 : i32
    %c0_i32_1 = arith.constant 0 : i32
    return %c0_i32, %c0_i32_0 : i32, i32
  }
  func.func @transform_14(%arg0: i32) -> (i32, i32) {
    %c0_i32 = arith.constant 0 : i32
    %c0_i32_0 = arith.constant 0 : i32
    %c0_i32_1 = arith.constant 0 : i32
    return %c0_i32, %c0_i32_0 : i32, i32
  }
  func.func @transform_15(%arg0: i32) -> (i32, i32) {
    %c0_i32 = arith.constant 0 : i32
    %c0_i32_0 = arith.constant 0 : i32
    return %arg0, %c0_i32 : i32, i32
  }
  func.func @transform_16(%arg0: i32) -> (i32, i32) {
    %c0_i32 = arith.constant 0 : i32
    %c0_i32_0 = arith.constant 0 : i32
    return %arg0, %c0_i32 : i32, i32
  }
}

</mosaic_0001>

<bundles_post_ra>
// kernel: vae_forward.1
= control target key start
LH: loop header
LB: loop body
LE: loop exit
PB: predicated region body
PF: predicated region fallthrough
CT: control target
= control target key end

     0   :  { %s6473_s0 = inlined_call_operand.hbm [shape: f32[512,256], index: 0, kind: input, shape index: {}]   ;;  %s6474_s1 = inlined_call_operand.vmem [shape: f32[512,32], index: 1, kind: input, shape index: {}]   ;;  %s6475_s2 = inlined_call_operand.vmem [shape: bf16[256,128], index: 2, kind: input, shape index: {}]   ;;  %s6476_s3 = inlined_call_operand.vmem [shape: f32[1,128], index: 3, kind: input, shape index: {}]   ;;  %s6477_s4 = inlined_call_operand.vmem [shape: bf16[128,128], index: 4, kind: input, shape index: {}]   ;;  %s6478_s5 = inlined_call_operand.vmem [shape: f32[1,128], index: 5, kind: input, shape index: {}]   ;;  %s6479_s6 = inlined_call_operand.vmem [shape: bf16[128,128], index: 6, kind: input, shape index: {}]   ;;  %s6480_s7 = inlined_call_operand.vmem [shape: f32[1,128], index: 7, kind: input, shape index: {}]   ;;  %s6481_s8 = inlined_call_operand.vmem [shape: f32[128,128], index: 8, kind: input, shape index: {}]   ;;  %s6482_s9 = inlined_call_operand.vmem [shape: f32[32,128], index: 9, kind: input, shape index: {}]   ;;  %s6483_s10 = inlined_call_operand.vmem [shape: f32[1,128], index: 10, kind: input, shape index: {}]   ;;  %s6484_s11 = inlined_call_operand.vmem [shape: bf16[128,128], index: 11, kind: input, shape index: {}]   ;;  %s6485_s12 = inlined_call_operand.vmem [shape: f32[1,128], index: 12, kind: input, shape index: {}]   ;;  %s6486_s13 = inlined_call_operand.vmem [shape: bf16[128,256], index: 13, kind: input, shape index: {}]   ;;  %s6487_s14 = inlined_call_operand.vmem [shape: f32[1,256], index: 14, kind: input, shape index: {}]   ;;  %s6488_s15 = inlined_call_operand.hbm [shape: f32[512,256], index: 15, kind: output, shape index: {0}]   ;;  %s6489_s16 = inlined_call_operand.vmem [shape: f32[512,128], index: 16, kind: output, shape index: {1}]  }
   0x1   :  { %6499 = sst [smem:[#allocation13_spill]] %s6473_s0 }
   0x2   :  { %6500 = sst [smem:[#allocation14_spill]] %s6485_s12 }
   0x3   :  { %6501 = sst [smem:[#allocation15_spill]] %s6487_s14 }
   0x4   :  { %6502 = sst [smem:[#allocation16_spill]] %s6488_s15 }
   0x5   :  { %22 = vsyncpa [#allocation3], 0 }
   0x6   :  { %24 = vsyncpa [#allocation3 + $0x1], 0 }
   0x7   :  { %25 = vsyncpa [#allocation4], 0 }
   0x8   :  { %27 = vsyncpa [#allocation4 + $0x1], 0  ;;  %s5211_s21 = smov 0   ;;  %s5213_s22 = smov 0  }
   0x9   :  { %s5215_s23 = smov 0   ;;  %s5217_s24 = smov 0  }
   0xa LB: > { %6503 = sst [smem:[#allocation8_spill]] %s5105_s21  ;;  %s5232_s25 = sadd.s32 4294967295, %s5117_s24   ;;  %s5117_s24 = sphi %s5217_s24, %s6525_s24   ;;  %s5113_s23 = sphi %s5215_s23, %s6527_s23   ;;  %s5109_s22 = sphi %s5213_s22, %s6529_s22   ;;  %s5105_s21 = sphi %s5211_s21, %s6528_s21  }
   0xb   : > { %6504 = sst [smem:[#allocation9_spill]] %s5113_s23  ;;  %s3768_s26 = sadd.s32 4294967294, %s5117_s24  }
   0xc   : > { %s5236_s27 = sadd.s32 1, %s5117_s24   ;;  %s40_s28 = sadd.s32 1, %s5113_s23 }
   0xd   : > { %6505 = sst [smem:[#allocation10_spill]] %s5236_s27  ;;  %s37_s29 = ssub.s32 %s5117_s24, %s5236_s27 }
   0xe   : > { %p47_p0 = scmp.ne.s32.totalorder %s5113_s23, %s5109_s22  ;;  %p38_p1 = scmp.eq.s32.totalorder %s37_s29, 0 }
   0xf   : > { %p48_p2 = scmp.eq.s32.totalorder %s5117_s24, 0  ;;  %p53_p3 = scmp.ne.s32.totalorder %s5109_s22, %s5105_s21 }
  0x10   : > { %p54_p4 = scmp.eq.s32.totalorder %s5232_s25, 0  ;;  %p376_p7 = scmp.eq.s32.totalorder %s5232_s25, 1 }
  0x11   : > { %s5248_s30 = scalar_select %p38_p1, %s5113_s23, %s40_s28  }
  0x12   : > { %p5250_p5 = por %p48_p2, %p47_p0  ;;  %p5254_p6 = por %p54_p4, %p53_p3 }
  0x13   : > { %6506 = sst [smem:[#allocation11_spill]] %s5248_s30  ;;  %p382_p8 = scmp.eq.s32.totalorder %s3768_s26, 1 }
  0x14   : > { %p4597_p10 = scmp.lt.s32.totalorder %s5117_s24, 2  ;;  %p5261_p11 = por %p376_p7, %p47_p0 }
  0x15   : > { %p5265_p12 = por %p382_p8, %p53_p3  ;;  %s467_s20 = sand.u32 1, %s5113_s23  }
  0x16   : > { %s6509_s18 = scalar_select %p5261_p11, 1, 0 }
  0x17   : > { %s6511_s19 = scalar_select %p5265_p12, 1, 0 }
  0x18   : > { %6510 = sst [smem:[#allocation12_spill]] %s6509_s18  ;;  %s3946_s28 = sshll.u32 %s5117_s24, 13 }
  0x19   : > { %s3771_s29 = sshll.u32 %s467_s20, 9  ;;  %s6512_s21 = sld [smem:[#allocation13_spill]] }
  0x1a   : > { %s471_s26 = scalar_lea.vmem [#allocation2], %s3771_s29  ;;  %p5278_p13 = pnand %p4597_p10, %p5250_p5 }
  0x1b   : > { %s479_s12 = sshll.u32 %s471_s26, 4  ;;  %s5284_s23 = scalar_lea.sflag [#allocation3], %s467_s20  ;;  %s5282_s12 = int_to_ptr.vmem [resolvable:$true] %s479_s12 }
  0x1c   : > { %p5023_p1 = pneg %p5278_p13 }
  0x1f   : > { %s6513_s15 = smov %s6512_s21  ;;  %s5274_s14 = scalar_lea.hbm %s6512_s21, %s3946_s28 }
  0x20   : > { %s5021_s27 = scalar_lea.hbm %s5274_s14, 8192  ;;  %s5026_s0 = scalar_lea.hbm %s6513_s15, 16384 }
  0x21   : > { %p5022_p0 = scmp.ne.s32.totalorder %s5274_s14, %s5021_s27  ;;  %p5027_p4 = scmp.lt.u32.totalorder %s5274_s14, %s6513_s15 }
  0x22   : > { %p5028_p5 = scmp.lt.u32.totalorder %s5026_s0, %s5021_s27  ;;  %p5030_p8 = scmp.lt.u32.totalorder %s5021_s27, %s5274_s14 }
  0x23   : > { %p5024_p2 = pnand %p5023_p1, %p5022_p0 }
  0x24   : > { %p5029_p7 = por %p5028_p5, %p5027_p4 }
  0x25   : > { %p5025_p3 = pneg %p5024_p2 }
  0x26   : > { %p5031_p10 = por %p5030_p8, %p5029_p7 }
  0x28   : > { %p5032_p9 = pnand %p5031_p10, %p5025_p3 }
  0x2a   : > { %5035 = shalt.err (!%p5032_p9)
}
  0x2b   : > { %s5036_s20 = scalar_lea.vmem %s5282_s12, 8192  ;;  %s5119_s26 = smov [#allocation2]  }
  0x2c   : > { %p5037_p0 = scmp.ne.s32.totalorder %s5282_s12, %s5036_s20  ;;  %s5041_s21 = sshll.u32 %s5119_s26, 4  ;;  %s5042_s21 = int_to_ptr.vmem [resolvable:$false] %s5041_s21 }
  0x2d   : > { %s5043_s30 = scalar_lea.vmem %s5042_s21, 16384  ;;  %p5044_p11 = scmp.lt.s32.totalorder %s5282_s12, %s5042_s21 }
  0x2e   : > { %p5039_p2 = pnand %p5037_p0, %p5023_p1  ;;  %p5045_p4 = scmp.lt.s32.totalorder %s5043_s30, %s5036_s20 }
  0x30   : > { %p5040_p12 = pneg %p5039_p2  ;;  %p5046_p5 = por %p5045_p4, %p5044_p11 }
  0x32   : > { %p5047_p7 = pnand %p5046_p5, %p5040_p12 }
  0x34   : > { %5050 = shalt.err (!%p5047_p7)
}
  0x35   : > { %s5120_s27 = smov 256   ;;  %s5121_s0 = smov 16  }
  0x36   : > { %4592 = dma.hbm_to_vmem [thread:$0]  (!%p5278_p13), %s5274_s14, 8192, %s5282_s12, %s5284_s23, %s5120_s27, %s5120_s27, %s5121_s0  }
  0x37   : > { %p3775_p9 = scmp.ge.s32.totalorder %s5117_s24, 1  ;;  %p496_p1 = scmp.lt.s32.totalorder %s5117_s24, 3 }
  0x39   : > { %p497_p3 = pnand %p3775_p9, %p496_p1 }
  0x3a   : > { %s5315_s28 = sand.u32 (!%p497_p3), 1, %s5109_s22  }
  0x3b   : > { %500 = sbr.rel (%p497_p3) target bundleno = 1760 (0x6e0), region = 80  ;;  %s3776_s29 = sshll.u32 (!%p497_p3), %s5315_s28, 9 }
  0x3c   : > { %s503_s20 = scalar_lea.sflag (!%p497_p3), [#allocation3], %s5315_s28  ;;  %s5321_s26 = scalar_lea.vmem (!%p497_p3), [#allocation2], %s3776_s29 }
  0x42   : > { %5096 = dma.done.wait (%p5254_p6), %s503_s20, 8192  }
  0x43   : > { %5098 = vsyncadd (%p5254_p6), %s503_s20, 4294959104  ;;  %v4636_v0 = vld [vmem:[%s6475_s2 + $0x40] sm:$0xff]   ;;  %v4638_v2 = vld [vmem:[%s6475_s2 + $0x48] sm:$0xff]   ;;  %s3778_s30 = sshll.u32 %s5232_s25, 5  ;;  %vm2099_vm1 = vcmask 261120   ;;  %s6517_s17 = sld [smem:[#allocation14_spill]] }
  0x44   : > { %v4637_v1 = vld [vmem:[%s6475_s2] sm:$0xff]   ;;  %3949 = vmatprep.subr.bf16.mxu0 %v4636_v0  ;;  %v4639_v3 = vld [vmem:[%s6475_s2 + $0x8] sm:$0xff]   ;;  %v4640_v4 = vld [vmem:[%s6475_s2 + $0x50] sm:$0xff]   ;;  %p567_p6 = scmp.lt.s32.totalorder %s3778_s30, 63  ;;  %s6518_s14 = sld [smem:[#allocation15_spill]] }
  0x45   : > { %3950 = vmatpush3.bf16.msra.mxu0 %v4637_v1  ;;  %v4641_v5 = vld [vmem:[%s6475_s2 + $0x10] sm:$0xff]   ;;  %v4642_v6 = vld [vmem:[%s6475_s2 + $0x58] sm:$0xff]   ;;  %v4644_v8 = vld [vmem:[%s6475_s2 + $0x60] sm:$0xff]   ;;  %s5123_s20 = smov [#allocation5]  }
  0x46   : > { %3951 = vmatprep.subr.bf16.mxu0 %v4638_v2  ;;  %v4643_v7 = vld [vmem:[%s6475_s2 + $0x18] sm:$0xff]   ;;  %v4645_v9 = vld [vmem:[%s6475_s2 + $0x20] sm:$0xff]   ;;  %v4646_v10 = vld [vmem:[%s6475_s2 + $0x68] sm:$0xff]   ;;  %s6531_s30 = smov (!%p567_p6, %s3778_s30), 63 }
  0x47   : > { %v581_v11 = vld [vmem:[%s5321_s26 + $0x8] sm:$0xff]  ;;  %v583_v12 = vld [vmem:[%s5321_s26 + $0x18] sm:$0xff]  ;;  %v4648_v15 = vld [vmem:[%s6475_s2 + $0x70] sm:$0xff]   ;;  %s3779_s12 = sshll.u32 %s6531_s30, 3  ;;  %s6520_s30 = sld [smem:[#allocation16_spill]] }
  0x48   : > { %v645_v13 = vpack.c.bf16 %v583_v12, %v581_v11  ;;  %v4647_v14 = vld [vmem:[%s6475_s2 + $0x28] sm:$0xff]   ;;  %v4649_v16 = vld [vmem:[%s6475_s2 + $0x30] sm:$0xff]   ;;  %v4650_v17 = vld [vmem:[%s6475_s2 + $0x78] sm:$0xff]   ;;  %s5644_s23 = scalar_lea.vmem %s6489_s16, %s3779_s12  ;;  %s5679_s27 = scalar_lea.vmem %s6474_s1, %s3779_s12 }
  0x49   : > { %3952 = vmatpush3.bf16.msra.mxu0 %v4639_v3  ;;  %v4651_v18 = vld [vmem:[%s6475_s2 + $0x38] sm:$0xff]   ;;  %v580_v19 = vld [vmem:[%s5321_s26] sm:$0xff]  ;;  %v582_v20 = vld [vmem:[%s5321_s26 + $0x10] sm:$0xff]  ;;  %s5055_s12 = sshll.u32 %s5123_s20, 4  ;;  %s5056_s12 = int_to_ptr.vmem [resolvable:$false] %s5055_s12 }
  0x4a   : > { %3953 = vmatprep.subr.bf16.mxu0 %v4640_v4  ;;  %843 = vmatprep.mubr.bf16.mxu0 %v645_v13  ;;  %v585_v21 = vld [vmem:[%s5321_s26 + $0x28] sm:$0xff]  ;;  %v587_v22 = vld [vmem:[%s5321_s26 + $0x38] sm:$0xff]  ;;  %v644_v23 = vpack.c.bf16 %v582_v20, %v580_v19  ;;  %v584_v25 = vld [vmem:[%s5321_s26 + $0x20] sm:$0xff] }
  0x4b   : > { %v647_v24 = vpack.c.bf16 %v587_v22, %v585_v21  ;;  %v586_v26 = vld [vmem:[%s5321_s26 + $0x30] sm:$0xff]  ;;  %v589_v27 = vld [vmem:[%s5321_s26 + $0x48] sm:$0xff]  ;;  %v591_v28 = vld [vmem:[%s5321_s26 + $0x58] sm:$0xff] }
  0x4c   : > { %v646_v29 = vpack.c.bf16 %v586_v26, %v584_v25  ;;  %v4652_v30 = vld [vmem:[%s6477_s4] sm:$0xff]   ;;  %v649_v31 = vpack.c.bf16 %v591_v28, %v589_v27  ;;  %v4653_v32 = vld [vmem:[%s6477_s4 + $0x8] sm:$0xff]   ;;  %v590_v34 = vld [vmem:[%s5321_s26 + $0x50] sm:$0xff] }
  0x4d   : > { %3954 = vmatpush3.bf16.msra.mxu0 %v4641_v5  ;;  %4537 = vmatprep.subr.bf16.mxu1 %v4652_v30  ;;  %v588_v33 = vld [vmem:[%s5321_s26 + $0x40] sm:$0xff]  ;;  %v4654_v35 = vld [vmem:[%s6477_s4 + $0x10] sm:$0xff]   ;;  %v593_v36 = vld [vmem:[%s5321_s26 + $0x68] sm:$0xff] }
  0x4e   : > { %3955 = vmatprep.subr.bf16.mxu0 %v4642_v6  ;;  %4545 = vmatpush3.bf16.msra.mxu1 %v4652_v30  ;;  %v595_v37 = vld [vmem:[%s5321_s26 + $0x78] sm:$0xff]  ;;  %v648_v39 = vpack.c.bf16 %v590_v34, %v588_v33  ;;  %v592_v41 = vld [vmem:[%s5321_s26 + $0x60] sm:$0xff]  ;;  %v594_v42 = vld [vmem:[%s5321_s26 + $0x70] sm:$0xff] }
  0x4f   : > { %4538 = vmatprep.subr.bf16.mxu1 %v4653_v32  ;;  %v4655_v38 = vld [vmem:[%s6477_s4 + $0x18] sm:$0xff]   ;;  %v651_v40 = vpack.c.bf16 %v595_v37, %v593_v36  ;;  %v597_v43 = vld [vmem:[%s5321_s26 + $0x88] sm:$0xff]  ;;  %v650_v45 = vpack.c.bf16 %v594_v42, %v592_v41  ;;  %v596_v47 = vld [vmem:[%s5321_s26 + $0x80] sm:$0xff] }
  0x50   : > { %v599_v44 = vld [vmem:[%s5321_s26 + $0x98] sm:$0xff]  ;;  %v598_v48 = vld [vmem:[%s5321_s26 + $0x90] sm:$0xff]  ;;  %v601_v49 = vld [vmem:[%s5321_s26 + $0xa8] sm:$0xff] }
  0x51   : > { %3956 = vmatpush3.bf16.msra.mxu0 %v4643_v7  ;;  %v653_v46 = vpack.c.bf16 %v599_v44, %v597_v43  ;;  %v603_v50 = vld [vmem:[%s5321_s26 + $0xb8] sm:$0xff]  ;;  %v652_v51 = vpack.c.bf16 %v598_v48, %v596_v47  ;;  %v600_v53 = vld [vmem:[%s5321_s26 + $0xa0] sm:$0xff]  ;;  %v602_v54 = vld [vmem:[%s5321_s26 + $0xb0] sm:$0xff] }
  0x52   : > { %3957 = vmatprep.subr.bf16.mxu0 %v4644_v8  ;;  %4546 = vmatpush3.bf16.msra.mxu1 %v4653_v32  ;;  %v655_v52 = vpack.c.bf16 %v603_v50, %v601_v49  ;;  %v605_v55 = vld [vmem:[%s5321_s26 + $0xc8] sm:$0xff]  ;;  %v607_v56 = vld [vmem:[%s5321_s26 + $0xd8] sm:$0xff]  ;;  %v654_v57 = vpack.c.bf16 %v602_v54, %v600_v53  ;;  %v604_v59 = vld [vmem:[%s5321_s26 + $0xc0] sm:$0xff] }
  0x53   : > { %4539 = vmatprep.subr.bf16.mxu1 %v4654_v35  ;;  %v657_v58 = vpack.c.bf16 %v607_v56, %v605_v55  ;;  %v606_v60 = vld [vmem:[%s5321_s26 + $0xd0] sm:$0xff]  ;;  %v609_v61 = vld [vmem:[%s5321_s26 + $0xe8] sm:$0xff]  ;;  %v611_v62 = vld [vmem:[%s5321_s26 + $0xf8] sm:$0xff] }
  0x54   : > { %v656_v63 = vpack.c.bf16 %v606_v60, %v604_v59  ;;  %v659_v0 = vpack.c.bf16 %v611_v62, %v609_v61  ;;  %v608_v1 = vld [vmem:[%s5321_s26 + $0xe0] sm:$0xff]  ;;  %v610_v2 = vld [vmem:[%s5321_s26 + $0xf0] sm:$0xff]  ;;  %v613_v3 = vld [vmem:[%s5321_s26 + $0x108] sm:$0xff] }
  0x55   : > { %3958 = vmatpush3.bf16.msra.mxu0 %v4645_v9  ;;  %v615_v4 = vld [vmem:[%s5321_s26 + $0x118] sm:$0xff]  ;;  %v658_v5 = vpack.c.bf16 %v610_v2, %v608_v1  ;;  %v612_v7 = vld [vmem:[%s5321_s26 + $0x100] sm:$0xff]  ;;  %v614_v8 = vld [vmem:[%s5321_s26 + $0x110] sm:$0xff] }
  0x56   : > { %3959 = vmatprep.subr.bf16.mxu0 %v4646_v10  ;;  %4547 = vmatpush3.bf16.msra.mxu1 %v4654_v35  ;;  %v661_v6 = vpack.c.bf16 %v615_v4, %v613_v3  ;;  %v617_v9 = vld [vmem:[%s5321_s26 + $0x128] sm:$0xff]  ;;  %v619_v10 = vld [vmem:[%s5321_s26 + $0x138] sm:$0xff]  ;;  %v660_v11 = vpack.c.bf16 %v614_v8, %v612_v7  ;;  %v616_v13 = vld [vmem:[%s5321_s26 + $0x120] sm:$0xff] }
  0x57   : > { %4540 = vmatprep.subr.bf16.mxu1 %v4655_v38  ;;  %v663_v12 = vpack.c.bf16 %v619_v10, %v617_v9  ;;  %v620_v19 = vld [vmem:[%s5321_s26 + $0x140] sm:$0xff]  ;;  %v622_v20 = vld [vmem:[%s5321_s26 + $0x150] sm:$0xff]  ;;  %v625_v21 = vld [vmem:[%s5321_s26 + $0x168] sm:$0xff] }
  0x58   : > { %v627_v22 = vld [vmem:[%s5321_s26 + $0x178] sm:$0xff]  ;;  %v624_v25 = vld [vmem:[%s5321_s26 + $0x160] sm:$0xff]  ;;  %v626_v26 = vld [vmem:[%s5321_s26 + $0x170] sm:$0xff] }
  0x59   : > { %3960 = vmatpush3.bf16.msra.mxu0 %v4647_v14  ;;  %v618_v14 = vld [vmem:[%s5321_s26 + $0x130] sm:$0xff]  ;;  %v629_v27 = vld [vmem:[%s5321_s26 + $0x188] sm:$0xff]  ;;  %v631_v28 = vld [vmem:[%s5321_s26 + $0x198] sm:$0xff] }
  0x5a   : > { %3961 = vmatprep.subr.bf16.mxu0 %v4648_v15  ;;  %4548 = vmatpush3.bf16.msra.mxu1 %v4655_v38  ;;  %v621_v15 = vld [vmem:[%s5321_s26 + $0x148] sm:$0xff]  ;;  %v630_v33 = vld [vmem:[%s5321_s26 + $0x190] sm:$0xff]  ;;  %v635_v36 = vld [vmem:[%s5321_s26 + $0x1b8] sm:$0xff] }
  0x5b   : > { %v4657_v34 = vld [vmem:[%s6477_s4 + $0x28] sm:$0xff]   ;;  %v634_v41 = vld [vmem:[%s5321_s26 + $0x1b0] sm:$0xff]  ;;  %v4659_v42 = vld [vmem:[%s6477_s4 + $0x38] sm:$0xff]  }
  0x5c   : > { %v637_v43 = vld [vmem:[%s5321_s26 + $0x1c8] sm:$0xff]  ;;  %v639_v44 = vld [vmem:[%s5321_s26 + $0x1d8] sm:$0xff]  ;;  %v636_v47 = vld [vmem:[%s5321_s26 + $0x1c0] sm:$0xff] }
  0x5d   : > { %3962 = vmatpush3.bf16.msra.mxu0 %v4649_v16  ;;  %v623_v16 = vld [vmem:[%s5321_s26 + $0x158] sm:$0xff]  ;;  %v638_v48 = vld [vmem:[%s5321_s26 + $0x1d0] sm:$0xff]  ;;  %v641_v49 = vld [vmem:[%s5321_s26 + $0x1e8] sm:$0xff] }
  0x5e   : > { %3963 = vmatprep.subr.bf16.mxu0 %v4650_v17  ;;  %v662_v17 = vpack.c.bf16 %v618_v14, %v616_v13  ;;  %v643_v50 = vld [vmem:[%s5321_s26 + $0x1f8] sm:$0xff]  ;;  %v640_v53 = vld [vmem:[%s5321_s26 + $0x1e0] sm:$0xff]  ;;  %v642_v54 = vld [vmem:[%s5321_s26 + $0x1f0] sm:$0xff] }
  0x5f   : > { %v674_v55 = vpack.c.bf16 %v642_v54, %v640_v53 }
  0x61   : > { %3964 = vmatpush3.bf16.msra.mxu0 %v4651_v18  ;;  %v665_v18 = vpack.c.bf16 %v623_v16, %v621_v15 }
  0x62   : > { %4217 = vmatprep.subr.bf16.mxu0 %v4652_v30 }
  0x64   : > { %844 = vmatmul.mubr.bf16.vlgmr.msra.gmra.mrb[0].mxu0 %v644_v23  ;;  %v664_v23 = vpack.c.bf16 %v622_v20, %v620_v19 }
  0x65   : > { %851 = vmatprep.mubr.bf16.mxu0 %v647_v24  ;;  %4218 = vmatpush3.bf16.msra.mxu0 %v4652_v30  ;;  %v667_v24 = vpack.c.bf16 %v627_v22, %v625_v21  ;;  %v669_v30 = vpack.c.bf16 %v631_v28, %v629_v27 }
  0x66   : > { %4219 = vmatprep.subr.bf16.mxu0 %v4653_v32 }
  0x69   : > { %4220 = vmatpush3.bf16.msra.mxu0 %v4653_v32  ;;  %v628_v32 = vld [vmem:[%s5321_s26 + $0x180] sm:$0xff] }
  0x6a   : > { %4221 = vmatprep.subr.bf16.mxu0 %v4654_v35  ;;  %v668_v37 = vpack.c.bf16 %v630_v33, %v628_v32 }
  0x6c   : > { %852 = vmatmul.mubr.bf16.gmra.mrb[4].mxu0 %v646_v29  ;;  %v666_v29 = vpack.c.bf16 %v626_v26, %v624_v25 }
  0x6d   : > { %859 = vmatprep.mubr.bf16.mxu0 %v649_v31  ;;  %4222 = vmatpush3.bf16.msra.mxu0 %v4654_v35  ;;  %v4656_v31 = vld [vmem:[%s6477_s4 + $0x20] sm:$0xff]   ;;  %v633_v35 = vld [vmem:[%s5321_s26 + $0x1a8] sm:$0xff] }
  0x6e   : > { %4223 = vmatprep.subr.bf16.mxu0 %v4655_v38  ;;  %4541 = vmatprep.subr.bf16.mxu1 %v4656_v31 }
  0x6f   : > { %4549 = vmatpush3.bf16.msra.mxu1 %v4656_v31 }
  0x70   : > { %4542 = vmatprep.subr.bf16.mxu1 %v4657_v34 }
  0x71   : > { %4224 = vmatpush3.bf16.msra.mxu0 %v4655_v38  ;;  %v671_v38 = vpack.c.bf16 %v635_v36, %v633_v35 }
  0x72   : > { %4225 = vmatprep.subr.bf16.mxu0 %v4656_v31 }
  0x73   : > { %4550 = vmatpush3.bf16.msra.mxu1 %v4657_v34 }
  0x74   : > { %860 = vmatmul.mubr.bf16.gmra.mrb[8].mxu0 %v648_v39  ;;  %v4658_v39 = vld [vmem:[%s6477_s4 + $0x30] sm:$0xff]  }
  0x75   : > { %867 = vmatprep.mubr.bf16.mxu0 %v651_v40  ;;  %4226 = vmatpush3.bf16.msra.mxu0 %v4656_v31  ;;  %v632_v40 = vld [vmem:[%s5321_s26 + $0x1a0] sm:$0xff]  ;;  %s6303_s26 = scalar_lea.vmem [#allocation5], %s3776_s29  ;;  %s3948_s29 = sshll.u32 %s5232_s25, 13 }
  0x76   : > { %4227 = vmatprep.subr.bf16.mxu0 %v4657_v34  ;;  %4543 = vmatprep.subr.bf16.mxu1 %v4658_v39  ;;  %s3654_s18 = sshll.u32 %s6303_s26, 4  ;;  %s6424_s0 = scalar_lea.hbm %s6520_s30, %s3948_s29  ;;  %s6426_s18 = int_to_ptr.vmem [resolvable:$true] %s3654_s18 }
  0x77   : > { %4551 = vmatpush3.bf16.msra.mxu1 %v4658_v39  ;;  %s3635_s25 = scalar_lea.sflag [#allocation4], %s5315_s28  ;;  %p5058_p10 = scmp.lt.s32.totalorder %s6426_s18, %s5056_s12 }
  0x78   : > { %4544 = vmatprep.subr.bf16.mxu1 %v4659_v42 }
  0x79   : > { %4228 = vmatpush3.bf16.msra.mxu0 %v4657_v34 }
  0x7a   : > { %4229 = vmatprep.subr.bf16.mxu0 %v4658_v39 }
  0x7b   : > { %4552 = vmatpush3.bf16.msra.mxu1 %v4659_v42 }
  0x7c   : > { %868 = vmatmul.mubr.bf16.gmra.mrb[12].mxu0 %v650_v45  ;;  %v670_v45 = vpack.c.bf16 %v634_v41, %v632_v40 }
  0x7d   : > { %875 = vmatprep.mubr.bf16.mxu0 %v653_v46  ;;  %4230 = vmatpush3.bf16.msra.mxu0 %v4658_v39  ;;  %v673_v46 = vpack.c.bf16 %v639_v44, %v637_v43 }
  0x7e   : > { %4231 = vmatprep.subr.bf16.mxu0 %v4659_v42 }
  0x81   : > { %4232 = vmatpush3.bf16.msra.mxu0 %v4659_v42 }
  0x84   : > { %876 = vmatmul.mubr.bf16.gmra.mrb[16].mxu0 %v652_v51  ;;  %v672_v51 = vpack.c.bf16 %v638_v48, %v636_v47 }
  0x85   : > { %883 = vmatprep.mubr.bf16.mxu0 %v655_v52  ;;  %v675_v52 = vpack.c.bf16 %v643_v50, %v641_v49 }
  0x8c   : > { %884 = vmatmul.mubr.bf16.gmra.mrb[20].mxu0 %v654_v57  ;;  %v5466_v57 = vld [vmem:[%s6476_s3] ss:$0 sm:$0xff] }
  0x8d   : > { %891 = vmatprep.mubr.bf16.mxu0 %v657_v58 }
  0x94   : > { %892 = vmatmul.mubr.bf16.gmra.mrb[24].mxu0 %v656_v63 }
  0x95   : > { %899 = vmatprep.mubr.bf16.mxu0 %v659_v0  ;;  %v5472_v0 = vld [vmem:[%s6479_s6] sm:$0xff]  }
  0x96   : > { %4265 = vmatprep.subr.bf16.mxu1 %v5472_v0 }
  0x9c   : > { %900 = vmatmul.mubr.bf16.gmra.mrb[28].mxu0 %v658_v5 }
  0x9d   : > { %907 = vmatprep.mubr.bf16.mxu0 %v661_v6 }
  0xa4   : > { %908 = vmatmul.mubr.bf16.gmra.mrb[32].mxu0 %v660_v11 }
  0xa5   : > { %915 = vmatprep.mubr.bf16.mxu0 %v663_v12 }
  0xac   : > { %916 = vmatmul.mubr.bf16.gmra.mrb[36].mxu0 %v662_v17 }
  0xad   : > { %923 = vmatprep.mubr.bf16.mxu0 %v665_v18 }
  0xb4   : > { %924 = vmatmul.mubr.bf16.gmra.mrb[40].mxu0 %v664_v23 }
  0xb5   : > { %931 = vmatprep.mubr.bf16.mxu0 %v667_v24 }
  0xbc   : > { %932 = vmatmul.mubr.bf16.gmra.mrb[44].mxu0 %v666_v29 }
  0xbd   : > { %939 = vmatprep.mubr.bf16.mxu0 %v669_v30 }
  0xc4   : > { %940 = vmatmul.mubr.bf16.gmra.mrb[48].mxu0 %v668_v37 }
  0xc5   : > { %947 = vmatprep.mubr.bf16.mxu0 %v671_v38 }
  0xcc   : > { %948 = vmatmul.mubr.bf16.gmra.mrb[52].mxu0 %v670_v45 }
  0xcd   : > { %955 = vmatprep.mubr.bf16.mxu0 %v673_v46 }
  0xd4   : > { %956 = vmatmul.mubr.bf16.gmra.mrb[56].mxu0 %v672_v51 }
  0xd5   : > { %963 = vmatprep.mubr.bf16.mxu0 %v675_v52 }
  0xdc   : > { %964 = vmatmul.mubr.bf16.gmra.mrb[60].mxu0 %v674_v55 }
 0x137   : > { %v3965_v56 = vpop.f32.mrb[0].mxu0 }
 0x138   : > { %v3966_v58 = vpop.f32.mrb[1].mxu0 }
 0x139   : > { %v3967_v59 = vadd.f32 %v3966_v58, %v3965_v56  ;;  %v3968_v60 = vpop.f32.mrb[2].mxu0 }
 0x13a   : > { %v3969_v61 = vpop.f32.mrb[3].mxu0 }
 0x13b   : > { %v846_v62 = vadd.f32 %v3967_v59, %v5466_v57  ;;  %v3970_v63 = vadd.f32 %v3969_v61, %v3968_v60 }
 0x13d   : > { %v849_v1 = vadd.f32 %v3970_v63, %v5466_v57  ;;  %v972_v2 = vmax.f32 %v846_v62, 0.0 }
 0x13f   : > { %v973_v3 = vmax.f32 %v849_v1, 0.0  ;;  %v3971_v4 = vpop.f32.mrb[4].mxu0 }
 0x140   : > { %v3972_v5 = vpop.f32.mrb[5].mxu0 }
 0x141   : > { %v3973_v6 = vadd.f32 %v3972_v5, %v3971_v4  ;;  %v3974_v7 = vpop.f32.mrb[6].mxu0  ;;  %v1004_v8 = vpack.c.bf16 %v973_v3, %v972_v2 }
 0x142   : > { %v3975_v9 = vpop.f32.mrb[7].mxu0 }
 0x143   : > { %v854_v10 = vadd.f32 %v3973_v6, %v5466_v57  ;;  %v3976_v11 = vadd.f32 %v3975_v9, %v3974_v7  ;;  %4233 = vmatprep.mubr.bf16.mxu0 %v1004_v8 }
 0x145   : > { %v857_v12 = vadd.f32 %v3976_v11, %v5466_v57  ;;  %v974_v13 = vmax.f32 %v854_v10, 0.0 }
 0x147   : > { %v975_v14 = vmax.f32 %v857_v12, 0.0  ;;  %v3977_v15 = vpop.f32.mrb[8].mxu0 }
 0x148   : > { %v3978_v16 = vpop.f32.mrb[9].mxu0 }
 0x149   : > { %v1005_v17 = vpack.c.bf16 %v975_v14, %v974_v13  ;;  %v3979_v18 = vadd.f32 %v3978_v16, %v3977_v15  ;;  %v3980_v19 = vpop.f32.mrb[10].mxu0 }
 0x14a   : > { %v3981_v20 = vpop.f32.mrb[11].mxu0 }
 0x14b   : > { %v862_v21 = vadd.f32 %v3979_v18, %v5466_v57  ;;  %v3982_v22 = vadd.f32 %v3981_v20, %v3980_v19  ;;  %4234 = vmatmul.mubr.bf16.vlgmr.msra.gmra.mrb[64].mxu0 %v1005_v17 }
 0x14d   : > { %v865_v23 = vadd.f32 %v3982_v22, %v5466_v57  ;;  %v976_v24 = vmax.f32 %v862_v21, 0.0 }
 0x14f   : > { %v977_v25 = vmax.f32 %v865_v23, 0.0  ;;  %v3983_v26 = vpop.f32.mrb[12].mxu0 }
 0x150   : > { %v3984_v27 = vpop.f32.mrb[13].mxu0 }
 0x151   : > { %v3985_v28 = vadd.f32 %v3984_v27, %v3983_v26  ;;  %v3986_v29 = vpop.f32.mrb[14].mxu0  ;;  %v1006_v30 = vpack.c.bf16 %v977_v25, %v976_v24 }
 0x152   : > { %v3987_v31 = vpop.f32.mrb[15].mxu0 }
 0x153   : > { %v870_v32 = vadd.f32 %v3985_v28, %v5466_v57  ;;  %v3988_v33 = vadd.f32 %v3987_v31, %v3986_v29  ;;  %4237 = vmatprep.mubr.bf16.mxu0 %v1006_v30 }
 0x155   : > { %v873_v34 = vadd.f32 %v3988_v33, %v5466_v57  ;;  %v978_v35 = vmax.f32 %v870_v32, 0.0 }
 0x157   : > { %v979_v36 = vmax.f32 %v873_v34, 0.0  ;;  %v3989_v37 = vpop.f32.mrb[16].mxu0 }
 0x158   : > { %v3990_v38 = vpop.f32.mrb[17].mxu0 }
 0x159   : > { %v3991_v39 = vadd.f32 %v3990_v38, %v3989_v37  ;;  %v3992_v40 = vpop.f32.mrb[18].mxu0  ;;  %v1007_v41 = vpack.c.bf16 %v979_v36, %v978_v35 }
 0x15a   : > { %v3993_v42 = vpop.f32.mrb[19].mxu0 }
 0x15b   : > { %v878_v43 = vadd.f32 %v3991_v39, %v5466_v57  ;;  %v3994_v44 = vadd.f32 %v3993_v42, %v3992_v40  ;;  %4238 = vmatmul.mubr.bf16.gmra.mrb[68].mxu0 %v1007_v41 }
 0x15d   : > { %v881_v45 = vadd.f32 %v3994_v44, %v5466_v57  ;;  %v980_v46 = vmax.f32 %v878_v43, 0.0 }
 0x15f   : > { %v981_v47 = vmax.f32 %v881_v45, 0.0  ;;  %v3995_v48 = vpop.f32.mrb[20].mxu0 }
 0x160   : > { %v3996_v49 = vpop.f32.mrb[21].mxu0 }
 0x161   : > { %v3997_v50 = vadd.f32 %v3996_v49, %v3995_v48  ;;  %v3998_v51 = vpop.f32.mrb[22].mxu0  ;;  %v1008_v52 = vpack.c.bf16 %v981_v47, %v980_v46  ;;  %v4661_v46 = vld [vmem:[%s6479_s6 + $0x8] sm:$0xff]  }
 0x162   : > { %v3999_v53 = vpop.f32.mrb[23].mxu0 }
 0x163   : > { %v886_v54 = vadd.f32 %v3997_v50, %v5466_v57  ;;  %v4000_v55 = vadd.f32 %v3999_v53, %v3998_v51  ;;  %4241 = vmatprep.mubr.bf16.mxu0 %v1008_v52  ;;  %v4662_v51 = vld [vmem:[%s6479_s6 + $0x10] sm:$0xff]  }
 0x165   : > { %v889_v56 = vadd.f32 %v4000_v55, %v5466_v57  ;;  %v982_v58 = vmax.f32 %v886_v54, 0.0 }
 0x167   : > { %v983_v59 = vmax.f32 %v889_v56, 0.0  ;;  %v4001_v60 = vpop.f32.mrb[24].mxu0 }
 0x168   : > { %v4002_v61 = vpop.f32.mrb[25].mxu0 }
 0x169   : > { %v4003_v62 = vadd.f32 %v4002_v61, %v4001_v60  ;;  %v4004_v63 = vpop.f32.mrb[26].mxu0  ;;  %v1009_v1 = vpack.c.bf16 %v983_v59, %v982_v58 }
 0x16a   : > { %v4005_v2 = vpop.f32.mrb[27].mxu0 }
 0x16b   : > { %v894_v3 = vadd.f32 %v4003_v62, %v5466_v57  ;;  %v4006_v4 = vadd.f32 %v4005_v2, %v4004_v63  ;;  %4242 = vmatmul.mubr.bf16.gmra.mrb[72].mxu0 %v1009_v1  ;;  %v4664_v1 = vld [vmem:[%s6479_s6 + $0x20] sm:$0xff]  }
 0x16d   : > { %v897_v5 = vadd.f32 %v4006_v4, %v5466_v57  ;;  %v984_v6 = vmax.f32 %v894_v3, 0.0 }
 0x16f   : > { %v985_v7 = vmax.f32 %v897_v5, 0.0  ;;  %v4007_v8 = vpop.f32.mrb[28].mxu0 }
 0x170   : > { %v4008_v9 = vpop.f32.mrb[29].mxu0 }
 0x171   : > { %v4009_v10 = vadd.f32 %v4008_v9, %v4007_v8  ;;  %v4010_v11 = vpop.f32.mrb[30].mxu0  ;;  %v1010_v12 = vpack.c.bf16 %v985_v7, %v984_v6  ;;  %v4665_v9 = vld [vmem:[%s6479_s6 + $0x28] sm:$0xff]  }
 0x172   : > { %v4011_v13 = vpop.f32.mrb[31].mxu0 }
 0x173   : > { %v902_v14 = vadd.f32 %v4009_v10, %v5466_v57  ;;  %v4012_v15 = vadd.f32 %v4011_v13, %v4010_v11  ;;  %4245 = vmatprep.mubr.bf16.mxu0 %v1010_v12 }
 0x175   : > { %v905_v16 = vadd.f32 %v4012_v15, %v5466_v57  ;;  %v986_v17 = vmax.f32 %v902_v14, 0.0 }
 0x177   : > { %v987_v18 = vmax.f32 %v905_v16, 0.0  ;;  %v4013_v19 = vpop.f32.mrb[32].mxu0 }
 0x178   : > { %v4014_v20 = vpop.f32.mrb[33].mxu0 }
 0x179   : > { %v4015_v21 = vadd.f32 %v4014_v20, %v4013_v19  ;;  %v4016_v22 = vpop.f32.mrb[34].mxu0  ;;  %v1011_v23 = vpack.c.bf16 %v987_v18, %v986_v17  ;;  %v4666_v17 = vld [vmem:[%s6479_s6 + $0x30] sm:$0xff]  }
 0x17a   : > { %v4017_v24 = vpop.f32.mrb[35].mxu0 }
 0x17b   : > { %v4018_v25 = vadd.f32 %v4017_v24, %v4016_v22  ;;  %4246 = vmatmul.mubr.bf16.gmra.mrb[76].mxu0 %v1011_v23  ;;  %v910_v26 = vadd.f32 %v4015_v21, %v5466_v57 }
 0x17d   : > { %v913_v27 = vadd.f32 %v4018_v25, %v5466_v57  ;;  %v988_v29 = vmax.f32 %v910_v26, 0.0  ;;  %v4667_v25 = vld [vmem:[%s6479_s6 + $0x38] sm:$0xff]  }
 0x17f   : > { %v4019_v28 = vpop.f32.mrb[36].mxu0  ;;  %v989_v30 = vmax.f32 %v913_v27, 0.0 }
 0x180   : > { %v4020_v31 = vpop.f32.mrb[37].mxu0 }
 0x181   : > { %v4021_v32 = vadd.f32 %v4020_v31, %v4019_v28  ;;  %v4022_v33 = vpop.f32.mrb[38].mxu0  ;;  %v1012_v34 = vpack.c.bf16 %v989_v30, %v988_v29 }
 0x182   : > { %v4023_v35 = vpop.f32.mrb[39].mxu0 }
 0x183   : > { %v918_v36 = vadd.f32 %v4021_v32, %v5466_v57  ;;  %v4024_v37 = vadd.f32 %v4023_v35, %v4022_v33  ;;  %4249 = vmatprep.mubr.bf16.mxu1 %v1012_v34 }
 0x185   : > { %v921_v38 = vadd.f32 %v4024_v37, %v5466_v57  ;;  %v990_v39 = vmax.f32 %v918_v36, 0.0 }
 0x187   : > { %v991_v40 = vmax.f32 %v921_v38, 0.0  ;;  %v4025_v41 = vpop.f32.mrb[40].mxu0 }
 0x188   : > { %v4026_v42 = vpop.f32.mrb[41].mxu0 }
 0x189   : > { %v4027_v43 = vadd.f32 %v4026_v42, %v4025_v41  ;;  %v4028_v44 = vpop.f32.mrb[42].mxu0  ;;  %v1013_v45 = vpack.c.bf16 %v991_v40, %v990_v39 }
 0x18a   : > { %v4029_v47 = vpop.f32.mrb[43].mxu0 }
 0x18b   : > { %v926_v48 = vadd.f32 %v4027_v43, %v5466_v57  ;;  %v4030_v49 = vadd.f32 %v4029_v47, %v4028_v44  ;;  %4250 = vmatmul.mubr.bf16.vlgmr.msra.gmra.mrb[0].mxu1 %v1013_v45 }
 0x18c   : > { %4266 = vmatpush3.bf16.msra.mxu1 %v5472_v0  ;;  %v4663_v0 = vld [vmem:[%s6479_s6 + $0x18] sm:$0xff]  }
 0x18d   : > { %v929_v50 = vadd.f32 %v4030_v49, %v5466_v57  ;;  %4267 = vmatprep.subr.bf16.mxu1 %v4661_v46  ;;  %v992_v52 = vmax.f32 %v926_v48, 0.0 }
 0x18f   : > { %v993_v53 = vmax.f32 %v929_v50, 0.0  ;;  %v4031_v54 = vpop.f32.mrb[44].mxu0 }
 0x190   : > { %v4032_v55 = vpop.f32.mrb[45].mxu0  ;;  %4268 = vmatpush3.bf16.msra.mxu1 %v4661_v46 }
 0x191   : > { %v4033_v56 = vadd.f32 %v4032_v55, %v4031_v54  ;;  %v4034_v58 = vpop.f32.mrb[46].mxu0  ;;  %v1014_v59 = vpack.c.bf16 %v993_v53, %v992_v52  ;;  %4269 = vmatprep.subr.bf16.mxu1 %v4662_v51  ;;  %v5531_v52 = vld [vmem:[%s6478_s5] ss:$0 sm:$0xff] }
 0x192   : > { %v4035_v60 = vpop.f32.mrb[47].mxu0 }
 0x193   : > { %v934_v61 = vadd.f32 %v4033_v56, %v5466_v57  ;;  %v4036_v62 = vadd.f32 %v4035_v60, %v4034_v58  ;;  %4253 = vmatprep.mubr.bf16.mxu1 %v1014_v59 }
 0x194   : > { %4270 = vmatpush3.bf16.msra.mxu1 %v4662_v51 }
 0x195   : > { %v937_v63 = vadd.f32 %v4036_v62, %v5466_v57  ;;  %4271 = vmatprep.subr.bf16.mxu1 %v4663_v0  ;;  %v994_v2 = vmax.f32 %v934_v61, 0.0 }
 0x197   : > { %v995_v3 = vmax.f32 %v937_v63, 0.0  ;;  %v4037_v4 = vpop.f32.mrb[48].mxu0 }
 0x198   : > { %v4038_v5 = vpop.f32.mrb[49].mxu0  ;;  %4272 = vmatpush3.bf16.msra.mxu1 %v4663_v0 }
 0x199   : > { %v4039_v6 = vadd.f32 %v4038_v5, %v4037_v4  ;;  %v4040_v7 = vpop.f32.mrb[50].mxu0  ;;  %v1015_v8 = vpack.c.bf16 %v995_v3, %v994_v2  ;;  %4273 = vmatprep.subr.bf16.mxu1 %v4664_v1 }
 0x19a   : > { %v4041_v10 = vpop.f32.mrb[51].mxu0 }
 0x19b   : > { %v942_v11 = vadd.f32 %v4039_v6, %v5466_v57  ;;  %v4042_v12 = vadd.f32 %v4041_v10, %v4040_v7  ;;  %4254 = vmatmul.mubr.bf16.gmra.mrb[4].mxu1 %v1015_v8 }
 0x19c   : > { %4274 = vmatpush3.bf16.msra.mxu1 %v4664_v1 }
 0x19d   : > { %v945_v13 = vadd.f32 %v4042_v12, %v5466_v57  ;;  %4275 = vmatprep.subr.bf16.mxu1 %v4665_v9  ;;  %v996_v14 = vmax.f32 %v942_v11, 0.0 }
 0x19f   : > { %v997_v15 = vmax.f32 %v945_v13, 0.0  ;;  %v4043_v16 = vpop.f32.mrb[52].mxu0 }
 0x1a0   : > { %v4044_v18 = vpop.f32.mrb[53].mxu0  ;;  %4276 = vmatpush3.bf16.msra.mxu1 %v4665_v9 }
 0x1a1   : > { %v4045_v19 = vadd.f32 %v4044_v18, %v4043_v16  ;;  %v4046_v20 = vpop.f32.mrb[54].mxu0  ;;  %v1016_v21 = vpack.c.bf16 %v997_v15, %v996_v14  ;;  %4277 = vmatprep.subr.bf16.mxu1 %v4666_v17 }
 0x1a2   : > { %v4047_v22 = vpop.f32.mrb[55].mxu0 }
 0x1a3   : > { %v950_v23 = vadd.f32 %v4045_v19, %v5466_v57  ;;  %v4048_v24 = vadd.f32 %v4047_v22, %v4046_v20  ;;  %4257 = vmatprep.mubr.bf16.mxu1 %v1016_v21 }
 0x1a4   : > { %4278 = vmatpush3.bf16.msra.mxu1 %v4666_v17 }
 0x1a5   : > { %v953_v26 = vadd.f32 %v4048_v24, %v5466_v57  ;;  %4279 = vmatprep.subr.bf16.mxu1 %v4667_v25  ;;  %v998_v27 = vmax.f32 %v950_v23, 0.0 }
 0x1a7   : > { %v999_v28 = vmax.f32 %v953_v26, 0.0  ;;  %v4049_v29 = vpop.f32.mrb[56].mxu0 }
 0x1a8   : > { %v4050_v30 = vpop.f32.mrb[57].mxu0  ;;  %4280 = vmatpush3.bf16.msra.mxu1 %v4667_v25 }
 0x1a9   : > { %v4051_v31 = vadd.f32 %v4050_v30, %v4049_v29  ;;  %v4052_v32 = vpop.f32.mrb[58].mxu0  ;;  %v1017_v33 = vpack.c.bf16 %v999_v28, %v998_v27 }
 0x1aa   : > { %v4053_v34 = vpop.f32.mrb[59].mxu0 }
 0x1ab   : > { %v958_v35 = vadd.f32 %v4051_v31, %v5466_v57  ;;  %v4054_v36 = vadd.f32 %v4053_v34, %v4052_v32  ;;  %4258 = vmatmul.mubr.bf16.gmra.mrb[8].mxu1 %v1017_v33 }
 0x1ad   : > { %v961_v37 = vadd.f32 %v4054_v36, %v5466_v57  ;;  %v1000_v38 = vmax.f32 %v958_v35, 0.0 }
 0x1af   : > { %v1001_v39 = vmax.f32 %v961_v37, 0.0  ;;  %v4055_v40 = vpop.f32.mrb[60].mxu0 }
 0x1b0   : > { %v4056_v41 = vpop.f32.mrb[61].mxu0 }
 0x1b1   : > { %v4057_v42 = vadd.f32 %v4056_v41, %v4055_v40  ;;  %v4058_v43 = vpop.f32.mrb[62].mxu0  ;;  %v1018_v44 = vpack.c.bf16 %v1001_v39, %v1000_v38 }
 0x1b2   : > { %v4059_v45 = vpop.f32.mrb[63].mxu0 }
 0x1b3   : > { %v966_v46 = vadd.f32 %v4057_v42, %v5466_v57  ;;  %v4060_v47 = vadd.f32 %v4059_v45, %v4058_v43  ;;  %4261 = vmatprep.mubr.bf16.mxu1 %v1018_v44 }
 0x1b5   : > { %v969_v48 = vadd.f32 %v4060_v47, %v5466_v57  ;;  %v1002_v49 = vmax.f32 %v966_v46, 0.0 }
 0x1b7   : > { %v1003_v50 = vmax.f32 %v969_v48, 0.0 }
 0x1b9   : > { %v1019_v51 = vpack.c.bf16 %v1003_v50, %v1002_v49 }
 0x1bb   : > { %4262 = vmatmul.mubr.bf16.gmra.mrb[12].mxu1 %v1019_v51 }
 0x21e   : > { %v4235_v53 = vpop.f32.mrb[64].mxu0 }
 0x21f   : > { %v1134_v54 = vadd.f32 %v4235_v53, %v5531_v52  ;;  %v1125_v55 = vpop.f32.mrb[65].mxu0 }
 0x220   : > { %v1126_v56 = vadd.f32 %v5531_v52, %v1125_v55  ;;  %v4236_v58 = vpop.f32.mrb[66].mxu0 }
 0x221   : > { %v1137_v59 = vadd.f32 %v4236_v58, %v5531_v52  ;;  %v1128_v0 = vpop.f32.mrb[67].mxu0  ;;  %v1254_v60 = vmax.f32 %v1134_v54, 0.0 }
 0x222   : > { %v1129_v57 = vadd.f32 %v5531_v52, %v1128_v0  ;;  %v1252_v62 = vmax.f32 %v1126_v56, 0.0 }
 0x223   : > { %v1255_v61 = vmax.f32 %v1137_v59, 0.0 }
 0x224   : > { %v1253_v63 = vmax.f32 %v1129_v57, 0.0 }
 0x225   : > { %v1285_v1 = vpack.c.bf16 %v1255_v61, %v1254_v60 }
 0x226   : > { %v1284_v2 = vpack.c.bf16 %v1253_v63, %v1252_v62 }
 0x228   : > { %4281 = vmatprep.mubr.bf16.mxu1 %v1284_v2 }
 0x229   : > { %4282 = vmatmul.mubr.bf16.vlgmr.msra.gmra.mrb[16].mxu1 %v1285_v1 }
 0x22e   : > { %v4239_v3 = vpop.f32.mrb[68].mxu0 }
 0x22f   : > { %v1150_v4 = vadd.f32 %v4239_v3, %v5531_v52  ;;  %v1141_v5 = vpop.f32.mrb[69].mxu0 }
 0x230   : > { %v1142_v6 = vadd.f32 %v5531_v52, %v1141_v5  ;;  %v4240_v7 = vpop.f32.mrb[70].mxu0 }
 0x231   : > { %v1153_v8 = vadd.f32 %v4240_v7, %v5531_v52  ;;  %v1144_v9 = vpop.f32.mrb[71].mxu0  ;;  %v1258_v11 = vmax.f32 %v1150_v4, 0.0 }
 0x232   : > { %v1145_v10 = vadd.f32 %v5531_v52, %v1144_v9  ;;  %v1256_v13 = vmax.f32 %v1142_v6, 0.0 }
 0x233   : > { %v1259_v12 = vmax.f32 %v1153_v8, 0.0 }
 0x234   : > { %v1257_v14 = vmax.f32 %v1145_v10, 0.0 }
 0x235   : > { %v1287_v15 = vpack.c.bf16 %v1259_v12, %v1258_v11 }
 0x236   : > { %v1286_v16 = vpack.c.bf16 %v1257_v14, %v1256_v13 }
 0x238   : > { %4285 = vmatprep.mubr.bf16.mxu1 %v1286_v16 }
 0x239   : > { %4286 = vmatmul.mubr.bf16.gmra.mrb[20].mxu1 %v1287_v15 }
 0x23e   : > { %v4243_v17 = vpop.f32.mrb[72].mxu0 }
 0x23f   : > { %v1166_v18 = vadd.f32 %v4243_v17, %v5531_v52  ;;  %v1157_v19 = vpop.f32.mrb[73].mxu0 }
 0x240   : > { %v1158_v20 = vadd.f32 %v5531_v52, %v1157_v19  ;;  %v4244_v21 = vpop.f32.mrb[74].mxu0 }
 0x241   : > { %v1169_v22 = vadd.f32 %v4244_v21, %v5531_v52  ;;  %v1160_v23 = vpop.f32.mrb[75].mxu0  ;;  %v1262_v25 = vmax.f32 %v1166_v18, 0.0 }
 0x242   : > { %v1161_v24 = vadd.f32 %v5531_v52, %v1160_v23  ;;  %v1260_v27 = vmax.f32 %v1158_v20, 0.0 }
 0x243   : > { %v1263_v26 = vmax.f32 %v1169_v22, 0.0 }
 0x244   : > { %v1261_v28 = vmax.f32 %v1161_v24, 0.0 }
 0x245   : > { %v1289_v29 = vpack.c.bf16 %v1263_v26, %v1262_v25 }
 0x246   : > { %v1288_v30 = vpack.c.bf16 %v1261_v28, %v1260_v27 }
 0x248   : > { %4289 = vmatprep.mubr.bf16.mxu1 %v1288_v30 }
 0x249   : > { %4290 = vmatmul.mubr.bf16.gmra.mrb[24].mxu1 %v1289_v29 }
 0x24e   : > { %v4247_v31 = vpop.f32.mrb[76].mxu0 }
 0x24f   : > { %v1182_v32 = vadd.f32 %v4247_v31, %v5531_v52  ;;  %v1173_v33 = vpop.f32.mrb[77].mxu0 }
 0x250   : > { %v1174_v34 = vadd.f32 %v5531_v52, %v1173_v33  ;;  %v4248_v35 = vpop.f32.mrb[78].mxu0 }
 0x251   : > { %v1185_v36 = vadd.f32 %v4248_v35, %v5531_v52  ;;  %v1176_v37 = vpop.f32.mrb[79].mxu0  ;;  %v1266_v39 = vmax.f32 %v1182_v32, 0.0 }
 0x252   : > { %v1177_v38 = vadd.f32 %v5531_v52, %v1176_v37  ;;  %v1264_v41 = vmax.f32 %v1174_v34, 0.0 }
 0x253   : > { %v1267_v40 = vmax.f32 %v1185_v36, 0.0 }
 0x254   : > { %v1265_v42 = vmax.f32 %v1177_v38, 0.0  ;;  %v2095_v38 = vld [vmem:[%s6482_s9] sm:$0xff] }
 0x255   : > { %v1291_v43 = vpack.c.bf16 %v1267_v40, %v1266_v39  ;;  %v2096_v39 = vld [vmem:[%s6482_s9 + $0x8] sm:$0xff] }
 0x256   : > { %v1290_v44 = vpack.c.bf16 %v1265_v42, %v1264_v41  ;;  %v4497_v40 = vpack.c.bf16 %v2096_v39, %v2095_v38  ;;  %v2098_v41 = vld [vmem:[%s6482_s9 + $0x18] sm:$0xff] }
 0x258   : > { %4293 = vmatprep.mubr.bf16.mxu1 %v1290_v44  ;;  %4498 = vmatprep.subr.bf16.mxu0 %v4497_v40 }
 0x259   : > { %4294 = vmatmul.mubr.bf16.gmra.mrb[28].mxu1 %v1291_v43  ;;  %4500 = vmatpush3.bf16.msra.mxu0 %v4497_v40  ;;  %v5580_v43 = vld [vmem:[%s6480_s7] ss:$0 sm:$0xff] }
 0x25e   : > { %v4251_v45 = vpop.f32.mrb[0].mxu1 }
 0x25f   : > { %v1198_v46 = vadd.f32 %v4251_v45, %v5531_v52  ;;  %v1189_v47 = vpop.f32.mrb[1].mxu1 }
 0x260   : > { %v1190_v48 = vadd.f32 %v5531_v52, %v1189_v47  ;;  %v4252_v49 = vpop.f32.mrb[2].mxu1 }
 0x261   : > { %v1201_v50 = vadd.f32 %v4252_v49, %v5531_v52  ;;  %v1192_v51 = vpop.f32.mrb[3].mxu1  ;;  %v1270_v54 = vmax.f32 %v1198_v46, 0.0 }
 0x262   : > { %v1193_v53 = vadd.f32 %v5531_v52, %v1192_v51  ;;  %v1268_v56 = vmax.f32 %v1190_v48, 0.0 }
 0x263   : > { %v1271_v55 = vmax.f32 %v1201_v50, 0.0 }
 0x264   : > { %v1269_v58 = vmax.f32 %v1193_v53, 0.0 }
 0x265   : > { %v1293_v59 = vpack.c.bf16 %v1271_v55, %v1270_v54 }
 0x266   : > { %v1292_v0 = vpack.c.bf16 %v1269_v58, %v1268_v56 }
 0x268   : > { %4297 = vmatprep.mubr.bf16.mxu1 %v1292_v0 }
 0x269   : > { %4298 = vmatmul.mubr.bf16.gmra.mrb[32].mxu1 %v1293_v59 }
 0x26e   : > { %v4255_v57 = vpop.f32.mrb[4].mxu1 }
 0x26f   : > { %v1214_v60 = vadd.f32 %v4255_v57, %v5531_v52  ;;  %v1205_v61 = vpop.f32.mrb[5].mxu1 }
 0x270   : > { %v1206_v62 = vadd.f32 %v5531_v52, %v1205_v61  ;;  %v4256_v63 = vpop.f32.mrb[6].mxu1 }
 0x271   : > { %v1217_v1 = vadd.f32 %v4256_v63, %v5531_v52  ;;  %v1208_v2 = vpop.f32.mrb[7].mxu1  ;;  %v1274_v4 = vmax.f32 %v1214_v60, 0.0 }
 0x272   : > { %v1209_v3 = vadd.f32 %v5531_v52, %v1208_v2  ;;  %v1272_v6 = vmax.f32 %v1206_v62, 0.0 }
 0x273   : > { %v1275_v5 = vmax.f32 %v1217_v1, 0.0 }
 0x274   : > { %v1273_v7 = vmax.f32 %v1209_v3, 0.0 }
 0x275   : > { %v1295_v8 = vpack.c.bf16 %v1275_v5, %v1274_v4 }
 0x276   : > { %v1294_v9 = vpack.c.bf16 %v1273_v7, %v1272_v6 }
 0x278   : > { %4301 = vmatprep.mubr.bf16.mxu1 %v1294_v9 }
 0x279   : > { %4302 = vmatmul.mubr.bf16.gmra.mrb[36].mxu1 %v1295_v8 }
 0x27e   : > { %v4259_v10 = vpop.f32.mrb[8].mxu1 }
 0x27f   : > { %v1230_v11 = vadd.f32 %v4259_v10, %v5531_v52  ;;  %v1221_v12 = vpop.f32.mrb[9].mxu1 }
 0x280   : > { %v1222_v13 = vadd.f32 %v5531_v52, %v1221_v12  ;;  %v4260_v14 = vpop.f32.mrb[10].mxu1 }
 0x281   : > { %v1233_v15 = vadd.f32 %v4260_v14, %v5531_v52  ;;  %v1224_v16 = vpop.f32.mrb[11].mxu1  ;;  %v1278_v18 = vmax.f32 %v1230_v11, 0.0 }
 0x282   : > { %v1225_v17 = vadd.f32 %v5531_v52, %v1224_v16  ;;  %v1276_v20 = vmax.f32 %v1222_v13, 0.0 }
 0x283   : > { %v1279_v19 = vmax.f32 %v1233_v15, 0.0 }
 0x284   : > { %v1277_v21 = vmax.f32 %v1225_v17, 0.0 }
 0x285   : > { %v1297_v22 = vpack.c.bf16 %v1279_v19, %v1278_v18 }
 0x286   : > { %v1296_v23 = vpack.c.bf16 %v1277_v21, %v1276_v20 }
 0x288   : > { %4305 = vmatprep.mubr.bf16.mxu1 %v1296_v23 }
 0x289   : > { %4306 = vmatmul.mubr.bf16.gmra.mrb[40].mxu1 %v1297_v22 }
 0x28e   : > { %v4263_v24 = vpop.f32.mrb[12].mxu1 }
 0x28f   : > { %v1246_v25 = vadd.f32 %v4263_v24, %v5531_v52  ;;  %v1237_v26 = vpop.f32.mrb[13].mxu1 }
 0x290   : > { %v1238_v27 = vadd.f32 %v5531_v52, %v1237_v26  ;;  %v4264_v28 = vpop.f32.mrb[14].mxu1 }
 0x291   : > { %v1249_v29 = vadd.f32 %v4264_v28, %v5531_v52  ;;  %v1240_v30 = vpop.f32.mrb[15].mxu1  ;;  %v1282_v32 = vmax.f32 %v1246_v25, 0.0 }
 0x292   : > { %v1241_v31 = vadd.f32 %v5531_v52, %v1240_v30  ;;  %v1280_v34 = vmax.f32 %v1238_v27, 0.0  ;;  %v2097_v52 = vld [vmem:[%s6482_s9 + $0x10] sm:$0xff]  ;;  %v1532_v27 = vlaneseq  ;;  %v2079_v30 = vld [vmem:[%s6481_s8] sm:$0xff] }
 0x293   : > { %v1283_v33 = vmax.f32 %v1249_v29, 0.0  ;;  %v4501_v42 = vpack.c.bf16 %v2098_v41, %v2097_v52 }
 0x294   : > { %v1281_v35 = vmax.f32 %v1241_v31, 0.0  ;;  %v2080_v31 = vld [vmem:[%s6481_s8 + $0x8] sm:$0xff] }
 0x295   : > { %v1299_v36 = vpack.c.bf16 %v1283_v33, %v1282_v32  ;;  %4502 = vmatprep.subr.bf16.mxu0 %v4501_v42  ;;  %v5623_v32 = vpack.c.bf16 %v2080_v31, %v2079_v30  ;;  %v5626_v33 = vand.u32 127, %v1532_v27 }
 0x296   : > { %v1298_v37 = vpack.c.bf16 %v1281_v35, %v1280_v34  ;;  %4504 = vmatpush3.bf16.msra.mxu0 %v4501_v42 }
 0x297   : > { %4506 = vmatprep.subr.bf16.mxu0 %v5623_v32  ;;  %vm1534_vm0 = vcmp.lt.s32.totalorder %v5626_v33, 32 }
 0x298   : > { %4309 = vmatprep.mubr.bf16.mxu1 %v1298_v37  ;;  %vm6037_vm2 = vmneg %vm1534_vm0 }
 0x299   : > { %4310 = vmatmul.mubr.bf16.gmra.mrb[44].mxu1 %v1299_v36 }
 0x2fc   : > { %v4283_v44 = vpop.f32.mrb[16].mxu1 }
 0x2fd   : > { %v5583_v45 = vadd.f32 %v4283_v44, %v5580_v43  ;;  %v1405_v46 = vpop.f32.mrb[17].mxu1 }
 0x2fe   : > { %v5586_v47 = vadd.f32 %v5580_v43, %v1405_v46  ;;  %v4284_v48 = vpop.f32.mrb[18].mxu1 }
 0x2ff   : > { %v1569_v49 = vand.u32 2147483647, %v5583_v45  ;;  %v5590_v50 = vadd.f32 %v4284_v48, %v5580_v43  ;;  %v1408_v51 = vpop.f32.mrb[19].mxu1  ;;  %v1537_v37 = vmax.f32 %v5583_v45, 0.0 }
 0x300   : > { %v1567_v53 = vand.u32 2147483647, %v5586_v47  ;;  %v5594_v54 = vadd.f32 %v5580_v43, %v1408_v51  ;;  %v1535_v41 = vmax.f32 %v5586_v47, 0.0 }
 0x301   : > { %v1601_v55 = vsub.f32 0.0, %v1569_v49  ;;  %v1570_v56 = vand.u32 2147483647, %v5590_v50  ;;  %v1538_v51 = vmax.f32 %v5590_v50, 0.0 }
 0x302   : > { %v1599_v58 = vsub.f32 0.0, %v1567_v53  ;;  %v1568_v59 = vand.u32 2147483647, %v5594_v54 }
 0x303   : > { %v1635_v0 = vmul.f32 1.442695, %v1601_v55  ;;  %v1602_v57 = vsub.f32 0.0, %v1570_v56 }
 0x304   : > { %v1631_v60 = vmul.f32 1.442695, %v1599_v58  ;;  %v1600_v61 = vsub.f32 0.0, %v1568_v59 }
 0x305   : > { %4700 = vpow2.f32 %v1635_v0  ;;  %v1637_v62 = vmul.f32 1.442695, %v1602_v57  ;;  %v1536_v0 = vmax.f32 %v5594_v54, 0.0 }
 0x306   : > { %4702 = vpow2.f32 %v1631_v60  ;;  %v1633_v63 = vmul.f32 1.442695, %v1600_v61 }
 0x307   : > { %4704 = vpow2.f32 %v1637_v62 }
 0x308   : > { %4706 = vpow2.f32 %v1633_v63 }
 0x30c   : > { %v4287_v1 = vpop.f32.mrb[20].mxu1 }
 0x30d   : > { %v5599_v2 = vadd.f32 %v4287_v1, %v5580_v43  ;;  %v1421_v3 = vpop.f32.mrb[21].mxu1 }
 0x30e   : > { %v5602_v4 = vadd.f32 %v5580_v43, %v1421_v3  ;;  %v4288_v5 = vpop.f32.mrb[22].mxu1 }
 0x30f   : > { %v4701_v6 = vpop.eup %4700  ;;  %v1573_v7 = vand.u32 2147483647, %v5599_v2  ;;  %v5606_v8 = vadd.f32 %v4288_v5, %v5580_v43  ;;  %v1424_v9 = vpop.f32.mrb[23].mxu1 }
 0x310   : > { %v4703_v10 = vpop.eup %4702  ;;  %v1697_v11 = vadd.f32 1.0, %v4701_v6  ;;  %v1571_v12 = vand.u32 2147483647, %v5602_v4  ;;  %v5610_v13 = vadd.f32 %v5580_v43, %v1424_v9 }
 0x311   : > { %v4705_v14 = vpop.eup %4704  ;;  %v1695_v15 = vadd.f32 1.0, %v4703_v10  ;;  %v1605_v16 = vsub.f32 0.0, %v1573_v7  ;;  %v1574_v17 = vand.u32 2147483647, %v5606_v8 }
 0x312   : > { %v4707_v18 = vpop.eup %4706  ;;  %4708 = vlog2.f32 %v1697_v11  ;;  %v1698_v19 = vadd.f32 1.0, %v4705_v14  ;;  %v1603_v20 = vsub.f32 0.0, %v1571_v12  ;;  %v1572_v25 = vand.u32 2147483647, %v5610_v13 }
 0x313   : > { %4710 = vlog2.f32 %v1695_v15  ;;  %v1696_v21 = vadd.f32 1.0, %v4707_v18  ;;  %v1643_v22 = vmul.f32 1.442695, %v1605_v16  ;;  %v1606_v23 = vsub.f32 0.0, %v1574_v17 }
 0x314   : > { %4712 = vlog2.f32 %v1698_v19  ;;  %v1639_v24 = vmul.f32 1.442695, %v1603_v20  ;;  %v1604_v28 = vsub.f32 0.0, %v1572_v25 }
 0x315   : > { %4714 = vlog2.f32 %v1696_v21  ;;  %v1645_v26 = vmul.f32 1.442695, %v1606_v23 }
 0x316   : > { %4716 = vpow2.f32 %v1643_v22  ;;  %v1641_v29 = vmul.f32 1.442695, %v1604_v28 }
 0x317   : > { %4718 = vpow2.f32 %v1639_v24 }
 0x318   : > { %4720 = vpow2.f32 %v1645_v26 }
 0x319   : > { %4722 = vpow2.f32 %v1641_v29 }
 0x31c   : > { %v4709_v34 = vpop.eup %4708  ;;  %v4291_v35 = vpop.f32.mrb[24].mxu1 }
 0x31d   : > { %v4711_v36 = vpop.eup %4710  ;;  %v1732_v38 = vmul.f32 0.6931472, %v4709_v34  ;;  %v5632_v39 = vadd.f32 %v4291_v35, %v5580_v43  ;;  %v1437_v40 = vpop.f32.mrb[25].mxu1 }
 0x31e   : > { %v4713_v52 = vpop.eup %4712  ;;  %v1728_v42 = vmul.f32 0.6931472, %v4711_v36  ;;  %v5637_v44 = vadd.f32 %v5580_v43, %v1437_v40  ;;  %v4292_v46 = vpop.f32.mrb[26].mxu1 }
 0x31f   : > { %v4715_v48 = vpop.eup %4714  ;;  %v1793_v49 = vadd.f32 %v1732_v38, %v1537_v37  ;;  %v1734_v53 = vmul.f32 0.6931472, %v4713_v52  ;;  %v1577_v55 = vand.u32 2147483647, %v5632_v39  ;;  %v1440_v56 = vpop.f32.mrb[27].mxu1  ;;  %v5667_v25 = vadd.f32 %v4292_v46, %v5580_v43 }
 0x320   : > { %v4717_v58 = vpop.eup %4716  ;;  %v1791_v59 = vadd.f32 %v1728_v42, %v1535_v41  ;;  %v1730_v57 = vmul.f32 0.6931472, %v4715_v48  ;;  %v1575_v60 = vand.u32 2147483647, %v5637_v44  ;;  %v5670_v26 = vadd.f32 %v5580_v43, %v1440_v56 }
 0x321   : > { %v4719_v61 = vpop.eup %4718  ;;  %v1825_v62 = vsel %vm1534_vm0, %v1793_v49, %v5583_v45  ;;  %v1794_v63 = vadd.f32 %v1734_v53, %v1538_v51  ;;  %v1701_v1 = vadd.f32 1.0, %v4717_v58  ;;  %v1609_v3 = vsub.f32 0.0, %v1577_v55  ;;  %v1887_v53 = vld [vmem:[%s5679_s27] sm:$0xff] }
 0x322   : > { %v4721_v5 = vpop.eup %4720  ;;  %1857 = vst [vmem:[%s5644_s23 + $0x10] sm:$0xff] %v1825_v62  ;;  %v1921_v6 = vmul.f32 0.5, %v1825_v62  ;;  %v1823_v7 = vsel %vm1534_vm0, %v1791_v59, %v5586_v47  ;;  %v1792_v9 = vadd.f32 %v1730_v57, %v1536_v0  ;;  %v1699_v10 = vadd.f32 1.0, %v4719_v61 }
 0x323   : > { %1855 = vst [vmem:[%s5644_s23] sm:$0xff] %v1823_v7  ;;  %v1919_v11 = vmul.f32 0.5, %v1823_v7  ;;  %v1826_v12 = vsel %vm1534_vm0, %v1794_v63, %v5590_v50  ;;  %4724 = vlog2.f32 %v1701_v1  ;;  %v1702_v14 = vadd.f32 1.0, %v4721_v5  ;;  %v4723_v15 = vpop.eup %4722 }
 0x324   : > { %v1955_v16 = vmul.f32 1.442695, %v1921_v6  ;;  %1858 = vst [vmem:[%s5644_s23 + $0x18] sm:$0xff] %v1826_v12  ;;  %v1824_v17 = vsel %vm1534_vm0, %v1792_v9, %v5594_v54  ;;  %4726 = vlog2.f32 %v1699_v10  ;;  %v1922_v20 = vmul.f32 0.5, %v1826_v12 }
 0x325   : > { %v1951_v18 = vmul.f32 1.442695, %v1919_v11  ;;  %1856 = vst [vmem:[%s5644_s23 + $0x8] sm:$0xff] %v1824_v17  ;;  %v1920_v19 = vmul.f32 0.5, %v1824_v17  ;;  %4728 = vlog2.f32 %v1702_v14  ;;  %v1700_v21 = vadd.f32 1.0, %v4723_v15 }
 0x326   : > { %v1651_v22 = vmul.f32 1.442695, %v1609_v3  ;;  %v1607_v23 = vsub.f32 0.0, %v1575_v60  ;;  %v1578_v29 = vand.u32 2147483647, %v5667_v25  ;;  %v1541_v38 = vmax.f32 %v5599_v2, 0.0 }
 0x327   : > { %4730 = vpow2.f32 %v1951_v18  ;;  %v1953_v24 = vmul.f32 1.442695, %v1920_v19  ;;  %v1957_v30 = vmul.f32 1.442695, %v1922_v20  ;;  %v1576_v31 = vand.u32 2147483647, %v5670_v26 }
 0x328   : > { %4732 = vpow2.f32 %v1955_v16  ;;  %v1647_v28 = vmul.f32 1.442695, %v1607_v23  ;;  %v1610_v34 = vsub.f32 0.0, %v1578_v29  ;;  %v1539_v56 = vmax.f32 %v5602_v4, 0.0 }
 0x329   : > { %4734 = vpow2.f32 %v1953_v24  ;;  %v1608_v35 = vsub.f32 0.0, %v1576_v31  ;;  %v1542_v60 = vmax.f32 %v5606_v8, 0.0  ;;  %v1540_v15 = vmax.f32 %v5610_v13, 0.0 }
 0x32a   : > { %4736 = vlog2.f32 %v1700_v21  ;;  %v1653_v40 = vmul.f32 1.442695, %v1610_v34 }
 0x32b   : > { %4738 = vpow2.f32 %v1651_v22  ;;  %v1649_v48 = vmul.f32 1.442695, %v1608_v35  ;;  %v2081_v22 = vld [vmem:[%s6481_s8 + $0x10] sm:$0xff] }
 0x32c   : > { %4740 = vpow2.f32 %v1647_v28  ;;  %v4295_v36 = vpop.f32.mrb[28].mxu1 }
 0x32d   : > { %v4725_v37 = vpop.eup %4724  ;;  %v5683_v52 = vadd.f32 %v4295_v36, %v5580_v43  ;;  %v1453_v41 = vpop.f32.mrb[29].mxu1  ;;  %4742 = vpow2.f32 %v1957_v30  ;;  %v2082_v30 = vld [vmem:[%s6481_s8 + $0x18] sm:$0xff] }
 0x32e   : > { %v4727_v42 = vpop.eup %4726  ;;  %v1740_v46 = vmul.f32 0.6931472, %v4725_v37  ;;  %v5686_v49 = vadd.f32 %v5580_v43, %v1453_v41  ;;  %v4296_v51 = vpop.f32.mrb[30].mxu1  ;;  %4744 = vpow2.f32 %v1653_v40  ;;  %v1888_v37 = vld [vmem:[%s5679_s27 + $0x8] sm:$0xff] }
 0x32f   : > { %v4729_v55 = vpop.eup %4728  ;;  %v1736_v58 = vmul.f32 0.6931472, %v4727_v42  ;;  %v1581_v59 = vand.u32 2147483647, %v5683_v52  ;;  %v1456_v0 = vpop.f32.mrb[31].mxu1  ;;  %4746 = vpow2.f32 %v1649_v48  ;;  %v5693_v3 = vadd.f32 %v4296_v51, %v5580_v43 }
 0x330   : > { %v1797_v57 = vadd.f32 %v1740_v46, %v1541_v38  ;;  %v1742_v61 = vmul.f32 0.6931472, %v4729_v55  ;;  %v1579_v9 = vand.u32 2147483647, %v5686_v49  ;;  %v5710_v21 = vadd.f32 %v5580_v43, %v1456_v0  ;;  %v1889_v38 = vld [vmem:[%s5679_s27 + $0x10] sm:$0xff]  ;;  %v2083_v0 = vld [vmem:[%s6481_s8 + $0x20] sm:$0xff] }
 0x331   : > { %v4731_v62 = vpop.eup %4730  ;;  %v1795_v63 = vadd.f32 %v1736_v58, %v1539_v56  ;;  %v1613_v1 = vsub.f32 0.0, %v1581_v59  ;;  %v1582_v20 = vand.u32 2147483647, %v5693_v3 }
 0x332   : > { %v4733_v5 = vpop.eup %4732  ;;  %v1829_v6 = vsel %vm1534_vm0, %v1797_v57, %v5599_v2  ;;  %v1798_v7 = vadd.f32 %v1742_v61, %v1542_v60  ;;  %v2015_v10 = vmul.f32 %v4731_v62, %v1887_v53  ;;  %v1611_v36 = vsub.f32 0.0, %v1579_v9  ;;  %v2084_v57 = vld [vmem:[%s6481_s8 + $0x28] sm:$0xff] }
 0x333   : > { %v4735_v11 = vpop.eup %4734  ;;  %1861 = vst [vmem:[%s5644_s23 + $0x30] sm:$0xff] %v1829_v6  ;;  %v1925_v12 = vmul.f32 0.5, %v1829_v6  ;;  %v1827_v14 = vsel %vm1534_vm0, %v1795_v63, %v5602_v4  ;;  %v1659_v16 = vmul.f32 1.442695, %v1613_v1  ;;  %v1614_v48 = vsub.f32 0.0, %v1582_v20  ;;  %v1890_v1 = vld [vmem:[%s5679_s27 + $0x18] sm:$0xff] }
 0x334   : > { %v4737_v17 = vpop.eup %4736  ;;  %1859 = vst [vmem:[%s5644_s23 + $0x20] sm:$0xff] %v1827_v14  ;;  %v1923_v18 = vmul.f32 0.5, %v1827_v14  ;;  %v1830_v19 = vsel %vm1534_vm0, %v1798_v7, %v5606_v8  ;;  %4321 = vmatprep.mubr.msk.f32.mxu0 %vm2099_vm1, %v2015_v10  ;;  %v1580_v51 = vand.u32 2147483647, %v5710_v21  ;;  %v4509_v53 = vpack.c.bf16 %v2082_v30, %v2081_v22 }
 0x335   : > { %v4739_v23 = vpop.eup %4738  ;;  %v1963_v24 = vmul.f32 1.442695, %v1925_v12  ;;  %1862 = vst [vmem:[%s5644_s23 + $0x38] sm:$0xff] %v1830_v19  ;;  %v1926_v28 = vmul.f32 0.5, %v1830_v19  ;;  %v1738_v29 = vmul.f32 0.6931472, %v4737_v17  ;;  %4748 = vpow2.f32 %v1659_v16 }
 0x336   : > { %v4741_v31 = vpop.eup %4740  ;;  %v1959_v34 = vmul.f32 1.442695, %v1923_v18  ;;  %v1705_v35 = vadd.f32 1.0, %v4739_v23  ;;  %v2016_v58 = vmul.f32 %v4735_v11, %v1888_v37  ;;  %v2017_v59 = vmul.f32 %v4733_v5, %v1889_v38  ;;  %v2085_v19 = vld [vmem:[%s6481_s8 + $0x30] sm:$0xff]  ;;  %v2087_v38 = vld [vmem:[%s6481_s8 + $0x40] sm:$0xff] }
 0x337   : > { %4750 = vpow2.f32 %v1963_v24  ;;  %v1965_v40 = vmul.f32 1.442695, %v1926_v28  ;;  %v1796_v41 = vadd.f32 %v1738_v29, %v1540_v15  ;;  %v1703_v42 = vadd.f32 1.0, %v4741_v31  ;;  %v4743_v46 = vpop.eup %4742  ;;  %v1891_v31 = vld [vmem:[%s5679_s27 + $0x20] sm:$0xff] }
 0x338   : > { %4752 = vpow2.f32 %v1959_v34  ;;  %v4745_v55 = vpop.eup %4744  ;;  %v1612_v63 = vsub.f32 0.0, %v1580_v51  ;;  %v1655_v7 = vmul.f32 1.442695, %v1611_v36  ;;  %4322 = vmatmul.mubr.msk.f32.vlgmr.msra.gmra.mrb[80].mxu0 %vm2099_vm1, %v2016_v58  ;;  %v1661_v9 = vmul.f32 1.442695, %v1614_v48  ;;  %v2089_v51 = vld [vmem:[%s6481_s8 + $0x50] sm:$0xff] }
 0x339   : > { %4754 = vpow2.f32 %v1965_v40  ;;  %v1828_v56 = vsel %vm1534_vm0, %v1796_v41, %v5610_v13  ;;  %v4747_v60 = vpop.eup %4746  ;;  %v1706_v62 = vadd.f32 1.0, %v4745_v55  ;;  %4324 = vmatprep.mubr.msk.f32.mxu0 %vm2099_vm1, %v2017_v59  ;;  %4508 = vmatpush3.bf16.msra.mxu0 %v5623_v32  ;;  %v4513_v11 = vpack.c.bf16 %v2084_v57, %v2083_v0  ;;  %v2086_v32 = vld [vmem:[%s6481_s8 + $0x38] sm:$0xff]  ;;  %v2088_v40 = vld [vmem:[%s6481_s8 + $0x48] sm:$0xff]  ;;  %v2091_v57 = vld [vmem:[%s6481_s8 + $0x60] sm:$0xff] }
 0x33a   : > { %1860 = vst [vmem:[%s5644_s23 + $0x28] sm:$0xff] %v1828_v56  ;;  %v1924_v61 = vmul.f32 0.5, %v1828_v56  ;;  %4756 = vlog2.f32 %v1705_v35  ;;  %v1704_v6 = vadd.f32 1.0, %v4747_v60  ;;  %v1657_v12 = vmul.f32 1.442695, %v1612_v63  ;;  %4510 = vmatprep.subr.bf16.mxu0 %v4509_v53  ;;  %v2092_v60 = vld [vmem:[%s6481_s8 + $0x68] sm:$0xff] }
 0x33b   : > { %4758 = vlog2.f32 %v1703_v42  ;;  %v2018_v14 = vmul.f32 %v4743_v46, %v1890_v1  ;;  %v1545_v28 = vmax.f32 %v5632_v39, 0.0  ;;  %v4517_v37 = vpack.c.bf16 %v2086_v32, %v2085_v19  ;;  %v1892_v19 = vld [vmem:[%s5679_s27 + $0x28] sm:$0xff]  ;;  %v1894_v32 = vld [vmem:[%s5679_s27 + $0x38] sm:$0xff] }
 0x33c   : > { %v1961_v5 = vmul.f32 1.442695, %v1924_v61  ;;  %4760 = vlog2.f32 %v1706_v62  ;;  %v4299_v10 = vpop.f32.mrb[32].mxu1  ;;  %v1543_v42 = vmax.f32 %v5637_v44, 0.0  ;;  %v1546_v56 = vmax.f32 %v5667_v25, 0.0 }
 0x33d   : > { %4762 = vlog2.f32 %v1704_v6  ;;  %v5738_v15 = vadd.f32 %v4299_v10, %v5580_v43  ;;  %v1469_v16 = vpop.f32.mrb[33].mxu1  ;;  %4325 = vmatmul.mubr.msk.f32.gmra.mrb[82].mxu0 %vm2099_vm1, %v2018_v14  ;;  %v1544_v62 = vmax.f32 %v5670_v26, 0.0  ;;  %v4521_v6 = vpack.c.bf16 %v2088_v40, %v2087_v38  ;;  %v1893_v10 = vld [vmem:[%s5679_s27 + $0x30] sm:$0xff] }
 0x33e   : > { %4764 = vpow2.f32 %v1961_v5  ;;  %v5741_v17 = vadd.f32 %v5580_v43, %v1469_v16  ;;  %v4300_v18 = vpop.f32.mrb[34].mxu1  ;;  %4512 = vmatpush3.bf16.msra.mxu0 %v4509_v53  ;;  %v2090_v53 = vld [vmem:[%s6481_s8 + $0x58] sm:$0xff] }
 0x33f   : > { %v4749_v20 = vpop.eup %4748  ;;  %4766 = vpow2.f32 %v1655_v7  ;;  %v1585_v22 = vand.u32 2147483647, %v5738_v15  ;;  %v5752_v23 = vadd.f32 %v4300_v18, %v5580_v43  ;;  %v1472_v24 = vpop.f32.mrb[35].mxu1  ;;  %4514 = vmatprep.subr.bf16.mxu0 %v4513_v11 }
 0x340   : > { %v1709_v29 = vadd.f32 1.0, %v4749_v20  ;;  %4768 = vpow2.f32 %v1661_v9  ;;  %v1583_v30 = vand.u32 2147483647, %v5741_v17  ;;  %v5766_v48 = vadd.f32 %v5580_v43, %v1472_v24 }
 0x341   : > { %v4751_v34 = vpop.eup %4750  ;;  %4770 = vpow2.f32 %v1657_v12  ;;  %v1617_v35 = vsub.f32 0.0, %v1585_v22  ;;  %v1586_v36 = vand.u32 2147483647, %v5752_v23  ;;  %v5785_v12 = vpack.c.bf16 %v2090_v53, %v2089_v51 }
 0x342   : > { %v4753_v41 = vpop.eup %4752  ;;  %4772 = vlog2.f32 %v1709_v29  ;;  %v1615_v46 = vsub.f32 0.0, %v1583_v30  ;;  %v1584_v1 = vand.u32 2147483647, %v5766_v48  ;;  %4516 = vmatpush3.bf16.msra.mxu0 %v4513_v11  ;;  %v5789_v20 = vpack.c.bf16 %v2092_v60, %v2091_v57 }
 0x343   : > { %v4755_v55 = vpop.eup %4754  ;;  %v1667_v58 = vmul.f32 1.442695, %v1617_v35  ;;  %v1618_v59 = vsub.f32 0.0, %v1586_v36  ;;  %v2019_v0 = vmul.f32 %v4753_v41, %v1891_v31  ;;  %4518 = vmatprep.subr.bf16.mxu0 %v4517_v37  ;;  %v1549_v29 = vmax.f32 %v5683_v52, 0.0 }
 0x344   : > { %v4757_v61 = vpop.eup %4756  ;;  %v1663_v63 = vmul.f32 1.442695, %v1615_v46  ;;  %v1616_v18 = vsub.f32 0.0, %v1584_v1  ;;  %v2021_v38 = vmul.f32 %v4751_v34, %v1893_v10 }
 0x345   : > { %v4759_v7 = vpop.eup %4758  ;;  %v1748_v5 = vmul.f32 0.6931472, %v4757_v61  ;;  %4774 = vpow2.f32 %v1667_v58  ;;  %v1669_v9 = vmul.f32 1.442695, %v1618_v59  ;;  %4327 = vmatprep.mubr.msk.f32.mxu0 %vm2099_vm1, %v2019_v0 }
 0x346   : > { %v4761_v14 = vpop.eup %4760  ;;  %v1744_v16 = vmul.f32 0.6931472, %v4759_v7  ;;  %4776 = vpow2.f32 %v1663_v63  ;;  %v1665_v36 = vmul.f32 1.442695, %v1616_v18  ;;  %4520 = vmatpush3.bf16.msra.mxu0 %v4517_v37 }
 0x347   : > { %v4763_v11 = vpop.eup %4762  ;;  %v1801_v22 = vadd.f32 %v1748_v5, %v1545_v28  ;;  %v1750_v24 = vmul.f32 0.6931472, %v4761_v14  ;;  %4778 = vpow2.f32 %v1669_v9  ;;  %v2022_v28 = vmul.f32 %v4755_v55, %v1894_v32  ;;  %4522 = vmatprep.subr.bf16.mxu0 %v4521_v6 }
 0x348   : > { %v4765_v30 = vpop.eup %4764  ;;  %v1799_v31 = vadd.f32 %v1744_v16, %v1543_v42  ;;  %v1746_v35 = vmul.f32 0.6931472, %v4763_v11  ;;  %4780 = vpow2.f32 %v1665_v36 }
 0x349   : > { %v4767_v40 = vpop.eup %4766  ;;  %v1833_v41 = vsel %vm1534_vm0, %v1801_v22, %v5632_v39  ;;  %v1802_v46 = vadd.f32 %v1750_v24, %v1546_v56  ;;  %v2020_v51 = vmul.f32 %v4765_v30, %v1892_v19  ;;  %v2093_v19 = vld [vmem:[%s6481_s8 + $0x70] sm:$0xff] }
 0x34a   : > { %v4769_v53 = vpop.eup %4768  ;;  %1865 = vst [vmem:[%s5644_s23 + $0x50] sm:$0xff] %v1833_v41  ;;  %v1929_v58 = vmul.f32 0.5, %v1833_v41  ;;  %v1831_v42 = vsel %vm1534_vm0, %v1799_v31, %v5637_v44  ;;  %v1800_v59 = vadd.f32 %v1746_v35, %v1544_v62  ;;  %v1707_v34 = vadd.f32 1.0, %v4767_v40  ;;  %4524 = vmatpush3.bf16.msra.mxu0 %v4521_v6  ;;  %v2094_v6 = vld [vmem:[%s6481_s8 + $0x78] sm:$0xff] }
 0x34b   : > { %v4771_v37 = vpop.eup %4770  ;;  %1863 = vst [vmem:[%s5644_s23 + $0x40] sm:$0xff] %v1831_v42  ;;  %v1927_v0 = vmul.f32 0.5, %v1831_v42  ;;  %v1834_v56 = vsel %vm1534_vm0, %v1802_v46, %v5667_v25  ;;  %v1710_v55 = vadd.f32 1.0, %v4769_v53  ;;  %4328 = vmatmul.mubr.msk.f32.gmra.mrb[84].mxu0 %vm2099_vm1, %v2020_v51  ;;  %4526 = vmatprep.subr.bf16.mxu0 %v5785_v12  ;;  %v4533_v41 = vpack.c.bf16 %v2094_v6, %v2093_v19  ;;  %v1896_v6 = vld [vmem:[%s5679_s27 + $0x48] sm:$0xff] }
 0x34c   : > { %v4773_v57 = vpop.eup %4772  ;;  %v1971_v60 = vmul.f32 1.442695, %v1929_v58  ;;  %1866 = vst [vmem:[%s5644_s23 + $0x58] sm:$0xff] %v1834_v56  ;;  %v1930_v61 = vmul.f32 0.5, %v1834_v56  ;;  %v1832_v62 = vsel %vm1534_vm0, %v1800_v59, %v5670_v26  ;;  %4782 = vlog2.f32 %v1707_v34  ;;  %4330 = vmatprep.mubr.msk.f32.mxu0 %vm2099_vm1, %v2021_v38  ;;  %v4303_v63 = vpop.f32.mrb[36].mxu1 }
 0x34d   : > { %v1967_v1 = vmul.f32 1.442695, %v1927_v0  ;;  %1864 = vst [vmem:[%s5644_s23 + $0x48] sm:$0xff] %v1832_v62  ;;  %v1928_v7 = vmul.f32 0.5, %v1832_v62  ;;  %v1756_v5 = vmul.f32 0.6931472, %v4773_v57  ;;  %4784 = vlog2.f32 %v1710_v55 }
 0x34e   : > { %v1485_v9 = vpop.f32.mrb[37].mxu1  ;;  %4786 = vpow2.f32 %v1971_v60  ;;  %v1973_v10 = vmul.f32 1.442695, %v1930_v61  ;;  %v1708_v14 = vadd.f32 1.0, %v4771_v37  ;;  %v5812_v16 = vadd.f32 %v4303_v63, %v5580_v43  ;;  %4528 = vmatpush3.bf16.msra.mxu0 %v5785_v12  ;;  %v1895_v63 = vld [vmem:[%s5679_s27 + $0x40] sm:$0xff] }
 0x34f   : > { %v4304_v18 = vpop.f32.mrb[38].mxu1  ;;  %v4775_v32 = vpop.eup %4774  ;;  %4788 = vpow2.f32 %v1967_v1  ;;  %v1969_v11 = vmul.f32 1.442695, %v1928_v7  ;;  %v1805_v22 = vadd.f32 %v1756_v5, %v1549_v29  ;;  %4331 = vmatmul.mubr.msk.f32.gmra.mrb[86].mxu0 %vm2099_vm1, %v2022_v28  ;;  %v5822_v24 = vadd.f32 %v5580_v43, %v1485_v9  ;;  %4530 = vmatprep.subr.bf16.mxu0 %v5789_v20 }
 0x350   : > { %v1488_v30 = vpop.f32.mrb[39].mxu1  ;;  %v4777_v31 = vpop.eup %4776  ;;  %4790 = vpow2.f32 %v1973_v10  ;;  %v1713_v35 = vadd.f32 1.0, %v4775_v32  ;;  %v1589_v36 = vand.u32 2147483647, %v5812_v16  ;;  %v5833_v53 = vadd.f32 %v4304_v18, %v5580_v43 }
 0x351   : > { %v4779_v38 = vpop.eup %4778  ;;  %4792 = vpow2.f32 %v1969_v11  ;;  %v1837_v40 = vsel %vm1534_vm0, %v1805_v22, %v5683_v52  ;;  %v1711_v29 = vadd.f32 1.0, %v4777_v31  ;;  %v1587_v28 = vand.u32 2147483647, %v5822_v24 }
 0x352   : > { %1869 = vst [vmem:[%s5644_s23 + $0x70] sm:$0xff] %v1837_v40  ;;  %4794 = vlog2.f32 %v1708_v14  ;;  %v1714_v46 = vadd.f32 1.0, %v4779_v38  ;;  %v1621_v51 = vsub.f32 0.0, %v1589_v36  ;;  %v5836_v12 = vadd.f32 %v5580_v43, %v1488_v30  ;;  %4532 = vmatpush3.bf16.msra.mxu0 %v5789_v20  ;;  %v4781_v42 = vpop.eup %4780 }
 0x353   : > { %4796 = vlog2.f32 %v1713_v35  ;;  %v1619_v59 = vsub.f32 0.0, %v1587_v28  ;;  %v1590_v34 = vand.u32 2147483647, %v5833_v53  ;;  %4534 = vmatprep.subr.bf16.mxu0 %v4533_v41  ;;  %v1933_v0 = vmul.f32 0.5, %v1837_v40  ;;  %v1897_v35 = vld [vmem:[%s5679_s27 + $0x50] sm:$0xff] }
 0x354   : > { %4798 = vlog2.f32 %v1711_v29  ;;  %v1675_v58 = vmul.f32 1.442695, %v1621_v51  ;;  %v1547_v56 = vmax.f32 %v5686_v49, 0.0  ;;  %v1712_v55 = vadd.f32 1.0, %v4781_v42 }
 0x355   : > { %4800 = vlog2.f32 %v1714_v46  ;;  %v1588_v57 = vand.u32 2147483647, %v5836_v12  ;;  %v1671_v62 = vmul.f32 1.442695, %v1619_v59  ;;  %v1622_v20 = vsub.f32 0.0, %v1590_v34 }
 0x356   : > { %v4783_v37 = vpop.eup %4782  ;;  %4802 = vpow2.f32 %v1675_v58  ;;  %v1550_v7 = vmax.f32 %v5693_v3, 0.0  ;;  %4536 = vmatpush3.bf16.msra.mxu0 %v4533_v41  ;;  %v1548_v18 = vmax.f32 %v5710_v21, 0.0  ;;  %v1553_v22 = vmax.f32 %v5738_v15, 0.0 }
 0x357   : > { %v4785_v60 = vpop.eup %4784  ;;  %v1752_v61 = vmul.f32 0.6931472, %v4783_v37  ;;  %4804 = vlog2.f32 %v1712_v55  ;;  %v1620_v9 = vsub.f32 0.0, %v1588_v57  ;;  %v1677_v19 = vmul.f32 1.442695, %v1622_v20 }
 0x358   : > { %v4787_v1 = vpop.eup %4786  ;;  %v1758_v5 = vmul.f32 0.6931472, %v4785_v60  ;;  %4806 = vpow2.f32 %v1671_v62  ;;  %v1979_v38 = vmul.f32 1.442695, %v1933_v0  ;;  %v1551_v29 = vmax.f32 %v5741_v17, 0.0  ;;  %v1898_v0 = vld [vmem:[%s5679_s27 + $0x58] sm:$0xff] }
 0x359   : > { %v4789_v10 = vpop.eup %4788  ;;  %v1803_v14 = vadd.f32 %v1752_v61, %v1547_v56  ;;  %v1673_v30 = vmul.f32 1.442695, %v1620_v9  ;;  %4808 = vpow2.f32 %v1677_v19  ;;  %v1554_v34 = vmax.f32 %v5752_v23, 0.0 }
 0x35a   : > { %v4791_v32 = vpop.eup %4790  ;;  %v1806_v11 = vadd.f32 %v1758_v5, %v1550_v7  ;;  %v2023_v31 = vmul.f32 %v4789_v10, %v1895_v63  ;;  %v2025_v37 = vmul.f32 %v4787_v1, %v1897_v35  ;;  %v1552_v62 = vmax.f32 %v5766_v48, 0.0 }
 0x35b   : > { %v4793_v36 = vpop.eup %4792  ;;  %v1835_v40 = vsel %vm1534_vm0, %v1803_v14, %v5686_v49  ;;  %4810 = vpow2.f32 %v1673_v30  ;;  %v2026_v19 = vmul.f32 %v4791_v32, %v1898_v0 }
 0x35c   : > { %v4795_v41 = vpop.eup %4794  ;;  %1867 = vst [vmem:[%s5644_s23 + $0x60] sm:$0xff] %v1835_v40  ;;  %v1931_v46 = vmul.f32 0.5, %v1835_v40  ;;  %v1838_v51 = vsel %vm1534_vm0, %v1806_v11, %v5693_v3  ;;  %4333 = vmatprep.mubr.msk.f32.mxu0 %vm2099_vm1, %v2023_v31  ;;  %v2024_v28 = vmul.f32 %v4793_v36, %v1896_v6  ;;  %v4307_v58 = vpop.f32.mrb[40].mxu1  ;;  %4812 = vpow2.f32 %v1979_v38 }
 0x35d   : > { %v4797_v42 = vpop.eup %4796  ;;  %1870 = vst [vmem:[%s5644_s23 + $0x78] sm:$0xff] %v1838_v51  ;;  %v1754_v59 = vmul.f32 0.6931472, %v4795_v41  ;;  %v5861_v56 = vadd.f32 %v4307_v58, %v5580_v43  ;;  %v1501_v55 = vpop.f32.mrb[41].mxu1  ;;  %v1934_v7 = vmul.f32 0.5, %v1838_v51 }
 0x35e   : > { %v4799_v57 = vpop.eup %4798  ;;  %v1975_v60 = vmul.f32 1.442695, %v1931_v46  ;;  %v1764_v61 = vmul.f32 0.6931472, %v4797_v42  ;;  %4334 = vmatmul.mubr.msk.f32.gmra.mrb[88].mxu0 %vm2099_vm1, %v2024_v28  ;;  %v4308_v20 = vpop.f32.mrb[42].mxu1 }
 0x35f   : > { %v4801_v63 = vpop.eup %4800  ;;  %v1804_v5 = vadd.f32 %v1754_v59, %v1548_v18  ;;  %v1760_v9 = vmul.f32 0.6931472, %v4799_v57  ;;  %4336 = vmatprep.mubr.msk.f32.mxu0 %vm2099_vm1, %v2025_v37  ;;  %v1504_v1 = vpop.f32.mrb[43].mxu1  ;;  %v1593_v31 = vand.u32 2147483647, %v5861_v56  ;;  %v5871_v18 = vadd.f32 %v5580_v43, %v1501_v55 }
 0x360   : > { %4814 = vpow2.f32 %v1975_v60  ;;  %v1809_v10 = vadd.f32 %v1764_v61, %v1553_v22  ;;  %v1766_v14 = vmul.f32 0.6931472, %v4801_v63  ;;  %v4803_v6 = vpop.eup %4802 }
 0x361   : > { %v1836_v11 = vsel %vm1534_vm0, %v1804_v5, %v5710_v21  ;;  %v1807_v30 = vadd.f32 %v1760_v9, %v1551_v29  ;;  %v4805_v35 = vpop.eup %4804  ;;  %v1717_v38 = vadd.f32 1.0, %v4803_v6  ;;  %v1981_v29 = vmul.f32 1.442695, %v1934_v7  ;;  %v1899_v6 = vld [vmem:[%s5679_s27 + $0x60] sm:$0xff] }
 0x362   : > { %1868 = vst [vmem:[%s5644_s23 + $0x68] sm:$0xff] %v1836_v11  ;;  %v1932_v36 = vmul.f32 0.5, %v1836_v11  ;;  %v1841_v22 = vsel %vm1534_vm0, %v1809_v10, %v5738_v15  ;;  %v1810_v32 = vadd.f32 %v1766_v14, %v1554_v34  ;;  %4337 = vmatmul.mubr.msk.f32.gmra.mrb[90].mxu0 %vm2099_vm1, %v2026_v19  ;;  %v4807_v40 = vpop.eup %4806  ;;  %v1762_v51 = vmul.f32 0.6931472, %v4805_v35 }
 0x363   : > { %1873 = vst [vmem:[%s5644_s23 + $0x90] sm:$0xff] %v1841_v22  ;;  %v1937_v41 = vmul.f32 0.5, %v1841_v22  ;;  %v1839_v46 = vsel %vm1534_vm0, %v1807_v30, %v5741_v17  ;;  %4816 = vlog2.f32 %v1717_v38  ;;  %v4809_v59 = vpop.eup %4808  ;;  %v1715_v57 = vadd.f32 1.0, %v4807_v40 }
 0x364   : > { %v1977_v28 = vmul.f32 1.442695, %v1932_v36  ;;  %1871 = vst [vmem:[%s5644_s23 + $0x80] sm:$0xff] %v1839_v46  ;;  %v1935_v58 = vmul.f32 0.5, %v1839_v46  ;;  %v1842_v42 = vsel %vm1534_vm0, %v1810_v32, %v5752_v23  ;;  %v1808_v37 = vadd.f32 %v1762_v51, %v1552_v62 }
 0x365   : > { %v1987_v34 = vmul.f32 1.442695, %v1937_v41  ;;  %1874 = vst [vmem:[%s5644_s23 + $0x98] sm:$0xff] %v1842_v42  ;;  %v4811_v0 = vpop.eup %4810  ;;  %v1625_v60 = vsub.f32 0.0, %v1593_v31  ;;  %v1938_v61 = vmul.f32 0.5, %v1842_v42  ;;  %v1718_v7 = vadd.f32 1.0, %v4809_v59 }
 0x366   : > { %4818 = vpow2.f32 %v1977_v28  ;;  %v1983_v55 = vmul.f32 1.442695, %v1935_v58  ;;  %v1840_v63 = vsel %vm1534_vm0, %v1808_v37, %v5766_v48  ;;  %v1591_v9 = vand.u32 2147483647, %v5871_v18  ;;  %v4813_v10 = vpop.eup %4812  ;;  %v5020_v41 = vld [vmem:[%s6480_s7] ss:$0 sm:$0xff] }
 0x367   : > { %4820 = vpow2.f32 %v1981_v29  ;;  %1872 = vst [vmem:[%s5644_s23 + $0x88] sm:$0xff] %v1840_v63  ;;  %v1936_v5 = vmul.f32 0.5, %v1840_v63  ;;  %v5893_v62 = vadd.f32 %v4308_v20, %v5580_v43  ;;  %v1716_v14 = vadd.f32 1.0, %v4811_v0  ;;  %v1901_v29 = vld [vmem:[%s5679_s27 + $0x70] sm:$0xff]  ;;  %v1900_v59 = vld [vmem:[%s5679_s27 + $0x68] sm:$0xff] }
 0x368   : > { %4822 = vpow2.f32 %v1983_v55  ;;  %v5896_v19 = vadd.f32 %v5580_v43, %v1504_v1  ;;  %v1683_v31 = vmul.f32 1.442695, %v1625_v60  ;;  %v1623_v35 = vsub.f32 0.0, %v1591_v9 }
 0x369   : > { %4824 = vpow2.f32 %v1987_v34  ;;  %v1985_v30 = vmul.f32 1.442695, %v1936_v5  ;;  %v1594_v36 = vand.u32 2147483647, %v5893_v62  ;;  %v1989_v20 = vmul.f32 1.442695, %v1938_v61 }
 0x36a   : > { %v4815_v11 = vpop.eup %4814  ;;  %4826 = vlog2.f32 %v1715_v57  ;;  %v1592_v22 = vand.u32 2147483647, %v5896_v19  ;;  %v1679_v32 = vmul.f32 1.442695, %v1623_v35  ;;  %v1557_v58 = vmax.f32 %v5812_v16, 0.0 }
 0x36b   : > { %4828 = vlog2.f32 %v1718_v7  ;;  %v2027_v38 = vmul.f32 %v4815_v11, %v1899_v6  ;;  %v1626_v43 = vsub.f32 0.0, %v1594_v36  ;;  %v1555_v42 = vmax.f32 %v5822_v24, 0.0  ;;  %v1902_v36 = vld [vmem:[%s5679_s27 + $0x78] sm:$0xff] }
 0x36c   : > { %4830 = vpow2.f32 %v1985_v30  ;;  %v4311_v40 = vpop.f32.mrb[44].mxu1  ;;  %v1624_v1 = vsub.f32 0.0, %v1592_v22  ;;  %v2029_v61 = vmul.f32 %v4813_v10, %v1901_v29  ;;  %v1903_v30 = vld [vmem:[%s5679_s27 + $0x80] sm:$0xff]  ;;  %v4669_v10 = vld [vmem:[%s6484_s11 + $0x8] sm:$0xff]  }
 0x36d   : > { %4832 = vlog2.f32 %v1716_v14  ;;  %v5905_v46 = vadd.f32 %v5020_v41, %v4311_v40  ;;  %v1517_v51 = vpop.f32.mrb[45].mxu1  ;;  %v4817_v28 = vpop.eup %4816  ;;  %4339 = vmatprep.mubr.msk.f32.mxu0 %vm2099_vm1, %v2027_v38  ;;  %v1685_v55 = vmul.f32 1.442695, %v1626_v43  ;;  %v1558_v43 = vmax.f32 %v5833_v53, 0.0 }
 0x36e   : > { %4834 = vpow2.f32 %v1683_v31  ;;  %v5911_v34 = vadd.f32 %v5020_v41, %v1517_v51  ;;  %v4312_v37 = vpop.f32.mrb[46].mxu1  ;;  %v1772_v0 = vmul.f32 0.6931472, %v4817_v28  ;;  %v1681_v57 = vmul.f32 1.442695, %v1624_v1  ;;  %v4668_v31 = vld [vmem:[%s6484_s11] sm:$0xff]  }
 0x36f   : > { %4836 = vpow2.f32 %v1679_v32  ;;  %v1597_v63 = vand.u32 2147483647, %v5905_v46  ;;  %v5915_v6 = vadd.f32 %v5020_v41, %v4312_v37  ;;  %v1520_v11 = vpop.f32.mrb[47].mxu1  ;;  %v1556_v1 = vmax.f32 %v5836_v12, 0.0  ;;  %v1905_v51 = vld [vmem:[%s5679_s27 + $0x90] sm:$0xff]  ;;  %4449 = vmatprep.subr.bf16.mxu1 %v4668_v31 }
 0x370   : > { %v4819_v60 = vpop.eup %4818  ;;  %4838 = vpow2.f32 %v1989_v20  ;;  %v1595_v7 = vand.u32 2147483647, %v5911_v34  ;;  %v1813_v9 = vadd.f32 %v1772_v0, %v1557_v58  ;;  %v5925_v32 = vadd.f32 %v5020_v41, %v1520_v11  ;;  %v1904_v0 = vld [vmem:[%s5679_s27 + $0x88] sm:$0xff]  ;;  %4450 = vmatpush3.bf16.msra.mxu1 %v4668_v31 }
 0x371   : > { %v4821_v5 = vpop.eup %4820  ;;  %4840 = vpow2.f32 %v1685_v55  ;;  %v2028_v14 = vmul.f32 %v4819_v60, %v1900_v59  ;;  %v1629_v22 = vsub.f32 0.0, %v1597_v63  ;;  %v1598_v29 = vand.u32 2147483647, %v5915_v6  ;;  %4451 = vmatprep.subr.bf16.mxu1 %v4669_v10 }
 0x372   : > { %v4823_v35 = vpop.eup %4822  ;;  %4842 = vpow2.f32 %v1681_v57  ;;  %v1627_v20 = vsub.f32 0.0, %v1595_v7  ;;  %v1845_v40 = vsel %vm1534_vm0, %v1813_v9, %v5812_v16  ;;  %v2030_v60 = vmul.f32 %v4821_v5, %v1902_v36  ;;  %v4670_v9 = vld [vmem:[%s6484_s11 + $0x10] sm:$0xff]  }
 0x373   : > { %v4825_v38 = vpop.eup %4824  ;;  %4340 = vmatmul.mubr.msk.f32.gmra.mrb[92].mxu0 %vm2099_vm1, %v2028_v14  ;;  %1877 = vst [vmem:[%s5644_s23 + $0xb0] sm:$0xff] %v1845_v40  ;;  %v1941_v41 = vmul.f32 0.5, %v1845_v40  ;;  %v1691_v58 = vmul.f32 1.442695, %v1629_v22  ;;  %v2031_v37 = vmul.f32 %v4823_v35, %v1903_v30  ;;  %v1630_v63 = vsub.f32 0.0, %v1598_v29 }
 0x374   : > { %v4827_v28 = vpop.eup %4826  ;;  %4342 = vmatprep.mubr.msk.f32.mxu0 %vm2099_vm1, %v2029_v61  ;;  %v1687_v59 = vmul.f32 1.442695, %v1627_v20  ;;  %v1596_v7 = vand.u32 2147483647, %v5925_v32  ;;  %v2033_v61 = vmul.f32 %v4825_v38, %v1905_v51  ;;  %4452 = vmatpush3.bf16.msra.mxu1 %v4669_v10 }
 0x375   : > { %v4829_v55 = vpop.eup %4828  ;;  %v1768_v57 = vmul.f32 0.6931472, %v4827_v28  ;;  %v1995_v11 = vmul.f32 1.442695, %v1941_v41  ;;  %4844 = vpow2.f32 %v1691_v58  ;;  %v1693_v31 = vmul.f32 1.442695, %v1630_v63  ;;  %4453 = vmatprep.subr.bf16.mxu1 %v4670_v9 }
 0x376   : > { %v4831_v14 = vpop.eup %4830  ;;  %v1774_v40 = vmul.f32 0.6931472, %v4829_v55  ;;  %4846 = vpow2.f32 %v1687_v59  ;;  %v1628_v5 = vsub.f32 0.0, %v1596_v7 }
 0x377   : > { %v4833_v22 = vpop.eup %4832  ;;  %v1811_v30 = vadd.f32 %v1768_v57, %v1555_v42  ;;  %4343 = vmatmul.mubr.msk.f32.gmra.mrb[94].mxu0 %vm2099_vm1, %v2030_v60  ;;  %4848 = vpow2.f32 %v1995_v11  ;;  %v2032_v29 = vmul.f32 %v4831_v14, %v1904_v0  ;;  %v1906_v0 = vld [vmem:[%s5679_s27 + $0x98] sm:$0xff] }
 0x378   : > { %v4835_v35 = vpop.eup %4834  ;;  %v1814_v36 = vadd.f32 %v1774_v40, %v1558_v43  ;;  %v1770_v20 = vmul.f32 0.6931472, %v4833_v22  ;;  %4345 = vmatprep.mubr.msk.f32.mxu0 %vm2099_vm1, %v2031_v37  ;;  %4850 = vpow2.f32 %v1693_v31  ;;  %v1689_v51 = vmul.f32 1.442695, %v1628_v5  ;;  %v4671_v43 = vld [vmem:[%s6484_s11 + $0x18] sm:$0xff]   ;;  %4454 = vmatpush3.bf16.msra.mxu1 %v4670_v9  ;;  %v4672_v22 = vld [vmem:[%s6484_s11 + $0x20] sm:$0xff]  }
 0x379   : > { %v4837_v28 = vpop.eup %4836  ;;  %v1843_v42 = vsel %vm1534_vm0, %v1811_v30, %v5822_v24  ;;  %v1721_v38 = vadd.f32 1.0, %v4835_v35  ;;  %4455 = vmatprep.subr.bf16.mxu1 %v4671_v43  ;;  %v4673_v35 = vld [vmem:[%s6484_s11 + $0x28] sm:$0xff]  }
 0x37a   : > { %v4839_v41 = vpop.eup %4838  ;;  %1875 = vst [vmem:[%s5644_s23 + $0xa0] sm:$0xff] %v1843_v42  ;;  %v1939_v58 = vmul.f32 0.5, %v1843_v42  ;;  %v1846_v10 = vsel %vm1534_vm0, %v1814_v36, %v5833_v53  ;;  %v1812_v59 = vadd.f32 %v1770_v20, %v1556_v1  ;;  %v1719_v37 = vadd.f32 1.0, %v4837_v28 }
 0x37b   : > { %v4841_v55 = vpop.eup %4840  ;;  %1878 = vst [vmem:[%s5644_s23 + $0xb8] sm:$0xff] %v1846_v10  ;;  %v1942_v57 = vmul.f32 0.5, %v1846_v10  ;;  %4852 = vlog2.f32 %v1721_v38  ;;  %4346 = vmatmul.mubr.msk.f32.gmra.mrb[96].mxu0 %vm2099_vm1, %v2032_v29  ;;  %v2034_v40 = vmul.f32 %v4839_v41, %v1906_v0  ;;  %v4674_v38 = vld [vmem:[%s6484_s11 + $0x30] sm:$0xff]  }
 0x37c   : > { %v4843_v60 = vpop.eup %4842  ;;  %v1991_v63 = vmul.f32 1.442695, %v1939_v58  ;;  %v1844_v7 = vsel %vm1534_vm0, %v1812_v59, %v5836_v12  ;;  %4854 = vlog2.f32 %v1719_v37  ;;  %v1722_v14 = vadd.f32 1.0, %v4841_v55  ;;  %4348 = vmatprep.mubr.msk.f32.mxu0 %vm2099_vm1, %v2033_v61  ;;  %4456 = vmatpush3.bf16.msra.mxu1 %v4671_v43  ;;  %v1907_v58 = vld [vmem:[%s5679_s27 + $0xa0] sm:$0xff] }
 0x37d   : > { %v1997_v1 = vmul.f32 1.442695, %v1942_v57  ;;  %1876 = vst [vmem:[%s5644_s23 + $0xa8] sm:$0xff] %v1844_v7  ;;  %v1940_v11 = vmul.f32 0.5, %v1844_v7  ;;  %4856 = vpow2.f32 %v1689_v51  ;;  %v1720_v30 = vadd.f32 1.0, %v4843_v60  ;;  %4457 = vmatprep.subr.bf16.mxu1 %v4672_v22 }
 0x37e   : > { %4858 = vpow2.f32 %v1991_v63  ;;  %v1561_v43 = vmax.f32 %v5861_v56, 0.0  ;;  %v1559_v59 = vmax.f32 %v5871_v18, 0.0 }
 0x37f   : > { %4860 = vpow2.f32 %v1997_v1  ;;  %v1993_v31 = vmul.f32 1.442695, %v1940_v11  ;;  %4349 = vmatmul.mubr.msk.f32.gmra.mrb[98].mxu0 %vm2099_vm1, %v2034_v40  ;;  %v4845_v5 = vpop.eup %4844  ;;  %v1909_v40 = vld [vmem:[%s5679_s27 + $0xb0] sm:$0xff] }
 0x380   : > { %4862 = vlog2.f32 %v1722_v14  ;;  %v4847_v9 = vpop.eup %4846  ;;  %v1725_v61 = vadd.f32 1.0, %v4845_v5  ;;  %4458 = vmatpush3.bf16.msra.mxu1 %v4672_v22  ;;  %v1908_v14 = vld [vmem:[%s5679_s27 + $0xa8] sm:$0xff] }
 0x381   : > { %4864 = vpow2.f32 %v1993_v31  ;;  %v4849_v36 = vpop.eup %4848  ;;  %v1723_v20 = vadd.f32 1.0, %v4847_v9  ;;  %4459 = vmatprep.subr.bf16.mxu1 %v4673_v35  ;;  %v1562_v31 = vmax.f32 %v5893_v62, 0.0 }
 0x382   : > { %4866 = vlog2.f32 %v1720_v30  ;;  %v4851_v29 = vpop.eup %4850 }
 0x383   : > { %4868 = vlog2.f32 %v1725_v61  ;;  %v1726_v28 = vadd.f32 1.0, %v4851_v29 }
 0x384   : > { %4870 = vlog2.f32 %v1723_v20  ;;  %4460 = vmatpush3.bf16.msra.mxu1 %v4673_v35  ;;  %v1560_v35 = vmax.f32 %v5896_v19, 0.0 }
 0x385   : > { %v4853_v42 = vpop.eup %4852  ;;  %4872 = vlog2.f32 %v1726_v28  ;;  %4461 = vmatprep.subr.bf16.mxu1 %v4674_v38 }
 0x386   : > { %v4855_v51 = vpop.eup %4854  ;;  %v1780_v41 = vmul.f32 0.6931472, %v4853_v42 }
 0x387   : > { %v4857_v10 = vpop.eup %4856  ;;  %v1776_v37 = vmul.f32 0.6931472, %v4855_v51 }
 0x388   : > { %v4859_v0 = vpop.eup %4858  ;;  %v1817_v55 = vadd.f32 %v1780_v41, %v1561_v43  ;;  %v1724_v57 = vadd.f32 1.0, %v4857_v10  ;;  %4462 = vmatpush3.bf16.msra.mxu1 %v4674_v38  ;;  %v2037_v43 = vmul.f32 %v4849_v36, %v1909_v40  ;;  %v1910_v41 = vld [vmem:[%s5679_s27 + $0xb8] sm:$0xff] }
 0x389   : > { %v4861_v60 = vpop.eup %4860  ;;  %v1815_v63 = vadd.f32 %v1776_v37, %v1559_v59  ;;  %v2035_v7 = vmul.f32 %v4859_v0, %v1907_v58  ;;  %v1565_v59 = vmax.f32 %v5905_v46, 0.0  ;;  %v1563_v0 = vmax.f32 %v5911_v34, 0.0 }
 0x38a   : > { %v4863_v1 = vpop.eup %4862  ;;  %v1849_v11 = vsel %vm1534_vm0, %v1817_v55, %v5861_v56  ;;  %4874 = vlog2.f32 %v1724_v57 }
 0x38b   : > { %v4865_v22 = vpop.eup %4864  ;;  %1881 = vst [vmem:[%s5644_s23 + $0xd0] sm:$0xff] %v1849_v11  ;;  %v1847_v30 = vsel %vm1534_vm0, %v1815_v63, %v5871_v18  ;;  %v1782_v5 = vmul.f32 0.6931472, %v4863_v1  ;;  %4351 = vmatprep.mubr.msk.f32.mxu0 %vm2099_vm1, %v2035_v7  ;;  %v1945_v28 = vmul.f32 0.5, %v1849_v11  ;;  %v1566_v63 = vmax.f32 %v5915_v6, 0.0 }
 0x38c   : > { %v4867_v9 = vpop.eup %4866  ;;  %1879 = vst [vmem:[%s5644_s23 + $0xc0] sm:$0xff] %v1847_v30  ;;  %v1943_v61 = vmul.f32 0.5, %v1847_v30  ;;  %v2036_v20 = vmul.f32 %v4865_v22, %v1908_v14  ;;  %v2038_v1 = vmul.f32 %v4861_v60, %v1910_v41 }
 0x38d   : > { %v4869_v29 = vpop.eup %4868  ;;  %v1818_v42 = vadd.f32 %v1782_v5, %v1562_v31  ;;  %v1778_v51 = vmul.f32 0.6931472, %v4867_v9  ;;  %v2003_v11 = vmul.f32 1.442695, %v1945_v28  ;;  %v1564_v28 = vmax.f32 %v5925_v32, 0.0 }
 0x38e   : > { %v4871_v58 = vpop.eup %4870  ;;  %v1999_v10 = vmul.f32 1.442695, %v1943_v61  ;;  %v1788_v37 = vmul.f32 0.6931472, %v4869_v29  ;;  %4352 = vmatmul.mubr.msk.f32.gmra.mrb[100].mxu0 %vm2099_vm1, %v2036_v20 }
 0x38f   : > { %v1850_v38 = vsel %vm1534_vm0, %v1818_v42, %v5893_v62  ;;  %v1816_v55 = vadd.f32 %v1778_v51, %v1560_v35  ;;  %v1784_v57 = vmul.f32 0.6931472, %v4871_v58  ;;  %4354 = vmatprep.mubr.msk.f32.mxu0 %vm2099_vm1, %v2037_v43  ;;  %v4873_v36 = vpop.eup %4872 }
 0x390   : > { %4876 = vpow2.f32 %v1999_v10  ;;  %1882 = vst [vmem:[%s5644_s23 + $0xd8] sm:$0xff] %v1850_v38  ;;  %v1946_v7 = vmul.f32 0.5, %v1850_v38  ;;  %v1821_v14 = vadd.f32 %v1788_v37, %v1565_v59  ;;  %v1790_v30 = vmul.f32 0.6931472, %v4873_v36  ;;  %v1911_v59 = vld [vmem:[%s5679_s27 + $0xc0] sm:$0xff] }
 0x391   : > { %v1848_v40 = vsel %vm1534_vm0, %v1816_v55, %v5896_v19  ;;  %v1819_v22 = vadd.f32 %v1784_v57, %v1563_v0  ;;  %4878 = vpow2.f32 %v2003_v11 }
 0x392   : > { %1880 = vst [vmem:[%s5644_s23 + $0xc8] sm:$0xff] %v1848_v40  ;;  %v1944_v31 = vmul.f32 0.5, %v1848_v40  ;;  %v1853_v5 = vsel %vm1534_vm0, %v1821_v14, %v5905_v46  ;;  %4355 = vmatmul.mubr.msk.f32.gmra.mrb[102].mxu0 %vm2099_vm1, %v2038_v1  ;;  %v2005_v9 = vmul.f32 1.442695, %v1946_v7  ;;  %v1822_v61 = vadd.f32 %v1790_v30, %v1566_v63  ;;  %v1912_v7 = vld [vmem:[%s5679_s27 + $0xc8] sm:$0xff]  ;;  %v1913_v1 = vld [vmem:[%s5679_s27 + $0xd0] sm:$0xff] }
 0x393   : > { %1885 = vst [vmem:[%s5644_s23 + $0xf0] sm:$0xff] %v1853_v5  ;;  %v1851_v60 = vsel %vm1534_vm0, %v1819_v22, %v5911_v34  ;;  %v1949_v42 = vmul.f32 0.5, %v1853_v5  ;;  %v1915_v30 = vld [vmem:[%s5679_s27 + $0xe0] sm:$0xff] }
 0x394   : > { %v4875_v35 = vpop.eup %4874  ;;  %v2001_v20 = vmul.f32 1.442695, %v1944_v31  ;;  %1883 = vst [vmem:[%s5644_s23 + $0xe0] sm:$0xff] %v1851_v60  ;;  %v1947_v29 = vmul.f32 0.5, %v1851_v60  ;;  %v1854_v51 = vsel %vm1534_vm0, %v1822_v61, %v5915_v6 }
 0x395   : > { %v1786_v43 = vmul.f32 0.6931472, %v4875_v35  ;;  %1886 = vst [vmem:[%s5644_s23 + $0xf8] sm:$0xff] %v1854_v51  ;;  %v1950_v10 = vmul.f32 0.5, %v1854_v51  ;;  %v2011_v37 = vmul.f32 1.442695, %v1949_v42 }
 0x396   : > { %4880 = vpow2.f32 %v2001_v20  ;;  %v2007_v41 = vmul.f32 1.442695, %v1947_v29  ;;  %v1916_v35 = vld [vmem:[%s5679_s27 + $0xe8] sm:$0xff]  ;;  %v1917_v29 = vld [vmem:[%s5679_s27 + $0xf0] sm:$0xff] }
 0x397   : > { %4882 = vpow2.f32 %v2005_v9  ;;  %v1820_v58 = vadd.f32 %v1786_v43, %v1564_v28  ;;  %v2013_v63 = vmul.f32 1.442695, %v1950_v10  ;;  %v1914_v9 = vld [vmem:[%s5679_s27 + $0xd8] sm:$0xff] }
 0x398   : > { %4884 = vpow2.f32 %v2007_v41  ;;  %v1918_v41 = vld [vmem:[%s5679_s27 + $0xf8] sm:$0xff] }
 0x399   : > { %v1852_v0 = vsel %vm1534_vm0, %v1820_v58, %v5925_v32  ;;  %4886 = vpow2.f32 %v2011_v37 }
 0x39a   : > { %v4877_v38 = vpop.eup %4876  ;;  %1884 = vst [vmem:[%s5644_s23 + $0xe8] sm:$0xff] %v1852_v0  ;;  %v1948_v55 = vmul.f32 0.5, %v1852_v0  ;;  %s6519_s23 = sld [smem:[#allocation12_spill]] }
 0x39b   : > { %v2039_v57 = vmul.f32 %v4877_v38, %v1911_v59  ;;  %v4879_v14 = vpop.eup %4878 }
 0x39c   : > { %v2009_v36 = vmul.f32 1.442695, %v1948_v55  ;;  %v2041_v5 = vmul.f32 %v4879_v14, %v1913_v1  ;;  %v4682_v55 = vld [vmem:[%s6486_s13 + $0x20] ss:$8 sps:$4 sm:$0xff]  }
 0x39d   : > { %4357 = vmatprep.mubr.msk.f32.mxu0 %vm2099_vm1, %v2039_v57 }
 0x39e   : > { %4888 = vpow2.f32 %v2009_v36  ;;  %v4687_v36 = vld [vmem:[%s6486_s13 + $0x34] ss:$8 sps:$4 sm:$0xff]  }
 0x39f   : > { %4890 = vpow2.f32 %v2013_v63 }
 0x3a0   : > { %v4881_v11 = vpop.eup %4880  ;;  %p6521_p12 = scmp.ne.s32.totalorder %s6519_s23, 0 }
 0x3a1   : > { %v4883_v40 = vpop.eup %4882  ;;  %v2040_v22 = vmul.f32 %v4881_v11, %v1912_v7 }
 0x3a2   : > { %v4885_v31 = vpop.eup %4884  ;;  %v2042_v61 = vmul.f32 %v4883_v40, %v1914_v9 }
 0x3a3   : > { %4358 = vmatmul.mubr.msk.f32.gmra.mrb[104].mxu0 %vm2099_vm1, %v2040_v22  ;;  %v2043_v60 = vmul.f32 %v4885_v31, %v1915_v30  ;;  %v4887_v20 = vpop.eup %4886  ;;  %v4685_v22 = vld [vmem:[%s6486_s13 + $0x30] ss:$8 sps:$4 sm:$0xff]  }
 0x3a4   : > { %4360 = vmatprep.mubr.msk.f32.mxu0 %vm2099_vm1, %v2041_v5  ;;  %v2045_v43 = vmul.f32 %v4887_v20, %v1917_v29  ;;  %v4690_v5 = vld [vmem:[%s6486_s13 + $0x44] ss:$8 sps:$4 sm:$0xff]   ;;  %v4688_v29 = vld [vmem:[%s6486_s13 + $0x40] ss:$8 sps:$4 sm:$0xff]  }
 0x3a7   : > { %4361 = vmatmul.mubr.msk.f32.gmra.mrb[106].mxu0 %vm2099_vm1, %v2042_v61 }
 0x3a8   : > { %v4889_v28 = vpop.eup %4888  ;;  %4363 = vmatprep.mubr.msk.f32.mxu0 %vm2099_vm1, %v2043_v60 }
 0x3a9   : > { %v2044_v42 = vmul.f32 %v4889_v28, %v1916_v35  ;;  %v4891_v51 = vpop.eup %4890 }
 0x3aa   : > { %v2046_v58 = vmul.f32 %v4891_v51, %v1918_v41  ;;  %v4693_v51 = vld [vmem:[%s6486_s13 + $0x54] ss:$8 sps:$4 sm:$0xff]  }
 0x3ab   : > { %4364 = vmatmul.mubr.msk.f32.gmra.mrb[108].mxu0 %vm2099_vm1, %v2044_v42 }
 0x3ac   : > { %4366 = vmatprep.mubr.msk.f32.mxu0 %vm2099_vm1, %v2045_v43 }
 0x3af   : > { %4367 = vmatmul.mubr.msk.f32.gmra.mrb[110].mxu0 %vm2099_vm1, %v2046_v58 }
 0x3b0   : > { %4401 = vmatprep.mubr.msk.f32.mxu0 %vm6037_vm2, %v5586_v47  ;;  %v4678_v47 = vld [vmem:[%s6486_s13 + $0x4] ss:$8 sps:$4 sm:$0xff]  }
 0x3b3   : > { %4402 = vmatmul.mubr.msk.f32.vlgmr.msra.gmra.mrb[80].mxu0 %vm6037_vm2, %v5594_v54 }
 0x3b4   : > { %4404 = vmatprep.mubr.msk.f32.mxu0 %vm6037_vm2, %v5583_v45  ;;  %v4675_v45 = vld [vmem:[%s6484_s11 + $0x38] sm:$0xff]  }
 0x3b5   : > { %4463 = vmatprep.subr.bf16.mxu1 %v4675_v45 }
 0x3b6   : > { %4464 = vmatpush3.bf16.msra.mxu1 %v4675_v45 }
 0x3b7   : > { %4405 = vmatmul.mubr.msk.f32.gmra.mrb[82].mxu0 %vm6037_vm2, %v5590_v50  ;;  %3121 = vmatprep.subr.bf16.mxu1 %v4678_v47  ;;  %v6147_v50 = vld [vmem:[%s6483_s10] ss:$0 sm:$0xff]  ;;  %v4691_v47 = vld [vmem:[%s6486_s13 + $0x50] ss:$8 sps:$4 sm:$0xff]  }
 0x3b8   : > { %4407 = vmatprep.mubr.msk.f32.mxu0 %vm6037_vm2, %v5602_v4 }
 0x3bb   : > { %4408 = vmatmul.mubr.msk.f32.gmra.mrb[84].mxu0 %vm6037_vm2, %v5610_v13 }
 0x3bc   : > { %4410 = vmatprep.mubr.msk.f32.mxu0 %vm6037_vm2, %v5599_v2 }
 0x3bf   : > { %4411 = vmatmul.mubr.msk.f32.gmra.mrb[86].mxu0 %vm6037_vm2, %v5606_v8 }
 0x3c0   : > { %4413 = vmatprep.mubr.msk.f32.mxu0 %vm6037_vm2, %v5637_v44 }
 0x3c3   : > { %4414 = vmatmul.mubr.msk.f32.gmra.mrb[88].mxu0 %vm6037_vm2, %v5670_v26 }
 0x3c4   : > { %4416 = vmatprep.mubr.msk.f32.mxu0 %vm6037_vm2, %v5632_v39 }
 0x3c7   : > { %4417 = vmatmul.mubr.msk.f32.gmra.mrb[90].mxu0 %vm6037_vm2, %v5667_v25 }
 0x3c8   : > { %4419 = vmatprep.mubr.msk.f32.mxu0 %vm6037_vm2, %v5686_v49 }
 0x3cb   : > { %4420 = vmatmul.mubr.msk.f32.gmra.mrb[92].mxu0 %vm6037_vm2, %v5710_v21 }
 0x3cc   : > { %4422 = vmatprep.mubr.msk.f32.mxu0 %vm6037_vm2, %v5683_v52 }
 0x3cf   : > { %4423 = vmatmul.mubr.msk.f32.gmra.mrb[94].mxu0 %vm6037_vm2, %v5693_v3 }
 0x3d0   : > { %4425 = vmatprep.mubr.msk.f32.mxu0 %vm6037_vm2, %v5741_v17 }
 0x3d3   : > { %4426 = vmatmul.mubr.msk.f32.gmra.mrb[96].mxu0 %vm6037_vm2, %v5766_v48 }
 0x3d4   : > { %4428 = vmatprep.mubr.msk.f32.mxu0 %vm6037_vm2, %v5738_v15 }
 0x3d7   : > { %4429 = vmatmul.mubr.msk.f32.gmra.mrb[98].mxu0 %vm6037_vm2, %v5752_v23  ;;  %v4676_v23 = vld [vmem:[%s6486_s13] ss:$8 sps:$4 sm:$0xff]  }
 0x3d8   : > { %4431 = vmatprep.mubr.msk.f32.mxu0 %vm6037_vm2, %v5822_v24  ;;  %v4681_v24 = vld [vmem:[%s6486_s13 + $0x14] ss:$8 sps:$4 sm:$0xff]  }
 0x3db   : > { %4432 = vmatmul.mubr.msk.f32.gmra.mrb[100].mxu0 %vm6037_vm2, %v5836_v12 }
 0x3dc   : > { %4434 = vmatprep.mubr.msk.f32.mxu0 %vm6037_vm2, %v5812_v16 }
 0x3df   : > { %4435 = vmatmul.mubr.msk.f32.gmra.mrb[102].mxu0 %vm6037_vm2, %v5833_v53 }
 0x3e0   : > { %4437 = vmatprep.mubr.msk.f32.mxu0 %vm6037_vm2, %v5871_v18 }
 0x3e3   : > { %4438 = vmatmul.mubr.msk.f32.gmra.mrb[104].mxu0 %vm6037_vm2, %v5896_v19  ;;  %v4679_v19 = vld [vmem:[%s6486_s13 + $0x10] ss:$8 sps:$4 sm:$0xff]  }
 0x3e4   : > { %4440 = vmatprep.mubr.msk.f32.mxu0 %vm6037_vm2, %v5861_v56 }
 0x3e7   : > { %4441 = vmatmul.mubr.msk.f32.gmra.mrb[106].mxu0 %vm6037_vm2, %v5893_v62 }
 0x3e8   : > { %4443 = vmatprep.mubr.msk.f32.mxu0 %vm6037_vm2, %v5911_v34 }
 0x3eb   : > { %4444 = vmatmul.mubr.msk.f32.gmra.mrb[108].mxu0 %vm6037_vm2, %v5925_v32 }
 0x3ec   : > { %4446 = vmatprep.mubr.msk.f32.mxu0 %vm6037_vm2, %v5905_v46 }
 0x3ef   : > { %4447 = vmatmul.mubr.msk.f32.gmra.mrb[110].mxu0 %vm6037_vm2, %v5915_v6  ;;  %v4684_v6 = vld [vmem:[%s6486_s13 + $0x24] ss:$8 sps:$4 sm:$0xff]  }
 0x486   : > { %v4403_v54 = vpop.f32.mrb[80].mxu0 }
 0x487   : > { %v2654_v2 = vadd.f32 %v4403_v54, %v6147_v50  ;;  %v2487_v4 = vpop.f32.mrb[81].mxu0 }
 0x488   : > { %v2653_v8 = vadd.f32 %v6147_v50, %v2487_v4  ;;  %v4696_v4 = vld [vmem:[%s6486_s13 + $0x64] ss:$8 sps:$4 sm:$0xff]  }
 0x489   : > { %v2686_v13 = vmax.f32 %v2654_v2, 0.0 }
 0x48a   : > { %v2685_v33 = vmax.f32 %v2653_v8, 0.0  ;;  %v4406_v39 = vpop.f32.mrb[82].mxu0 }
 0x48b   : > { %v2656_v44 = vadd.f32 %v4406_v39, %v6147_v50  ;;  %v2497_v25 = vpop.f32.mrb[83].mxu0 }
 0x48c   : > { %v2717_v26 = vpack.c.bf16 %v2686_v13, %v2685_v33  ;;  %v2655_v52 = vadd.f32 %v6147_v50, %v2497_v25  ;;  %v4694_v25 = vld [vmem:[%s6486_s13 + $0x60] ss:$8 sps:$4 sm:$0xff]  }
 0x48d   : > { %v2688_v49 = vmax.f32 %v2656_v44, 0.0 }
 0x48e   : > { %v2687_v3 = vmax.f32 %v2655_v52, 0.0  ;;  %v4409_v21 = vpop.f32.mrb[84].mxu0  ;;  %4465 = vmatprep.mubr.bf16.mxu1 %v2717_v26 }
 0x48f   : > { %v2658_v15 = vadd.f32 %v4409_v21, %v6147_v50  ;;  %v2507_v17 = vpop.f32.mrb[85].mxu0 }
 0x490   : > { %v2718_v48 = vpack.c.bf16 %v2688_v49, %v2687_v3  ;;  %v2657_v16 = vadd.f32 %v6147_v50, %v2507_v17 }
 0x491   : > { %v2690_v53 = vmax.f32 %v2658_v15, 0.0 }
 0x492   : > { %v2689_v12 = vmax.f32 %v2657_v16, 0.0  ;;  %v4412_v56 = vpop.f32.mrb[86].mxu0  ;;  %4466 = vmatmul.mubr.bf16.vlgmr.msra.gmra.mrb[48].mxu1 %v2718_v48 }
 0x493   : > { %v2660_v18 = vadd.f32 %v4412_v56, %v6147_v50  ;;  %v2517_v62 = vpop.f32.mrb[87].mxu0  ;;  %3122 = vmatpush1.bf16.msra.mxu1 %v4676_v23 }
 0x494   : > { %v2719_v46 = vpack.c.bf16 %v2690_v53, %v2689_v12  ;;  %v2659_v34 = vadd.f32 %v6147_v50, %v2517_v62  ;;  %3123 = vmatprep.subr.bf16.mxu1 %v4681_v24 }
 0x495   : > { %v2692_v32 = vmax.f32 %v2660_v18, 0.0 }
 0x496   : > { %v2691_v59 = vmax.f32 %v2659_v34, 0.0  ;;  %v4415_v37 = vpop.f32.mrb[88].mxu0  ;;  %4469 = vmatprep.mubr.bf16.mxu1 %v2719_v46 }
 0x497   : > { %v2662_v0 = vadd.f32 %v4415_v37, %v6147_v50  ;;  %v2527_v38 = vpop.f32.mrb[89].mxu0  ;;  %3124 = vmatpush1.bf16.msra.mxu1 %v4679_v19 }
 0x498   : > { %v2720_v57 = vpack.c.bf16 %v2692_v32, %v2691_v59  ;;  %v2661_v63 = vadd.f32 %v6147_v50, %v2527_v38  ;;  %3125 = vmatprep.subr.bf16.mxu1 %v4684_v6 }
 0x499   : > { %v2694_v7 = vmax.f32 %v2662_v0, 0.0 }
 0x49a   : > { %v2693_v14 = vmax.f32 %v2661_v63, 0.0  ;;  %v4418_v1 = vpop.f32.mrb[90].mxu0  ;;  %4470 = vmatmul.mubr.bf16.gmra.mrb[52].mxu1 %v2720_v57 }
 0x49b   : > { %v2664_v11 = vadd.f32 %v4418_v1, %v6147_v50  ;;  %v2537_v40 = vpop.f32.mrb[91].mxu0  ;;  %3126 = vmatpush1.bf16.msra.mxu1 %v4682_v55 }
 0x49c   : > { %v2721_v30 = vpack.c.bf16 %v2694_v7, %v2693_v14  ;;  %v2663_v31 = vadd.f32 %v6147_v50, %v2537_v40  ;;  %3127 = vmatprep.subr.bf16.mxu1 %v4687_v36 }
 0x49d   : > { %v2696_v9 = vmax.f32 %v2664_v11, 0.0 }
 0x49e   : > { %v2695_v60 = vmax.f32 %v2663_v31, 0.0  ;;  %v4421_v61 = vpop.f32.mrb[92].mxu0  ;;  %4473 = vmatprep.mubr.bf16.mxu1 %v2721_v30 }
 0x49f   : > { %v2666_v35 = vadd.f32 %v4421_v61, %v6147_v50  ;;  %v2547_v20 = vpop.f32.mrb[93].mxu0  ;;  %3128 = vmatpush1.bf16.msra.mxu1 %v4685_v22 }
 0x4a0   : > { %v2722_v28 = vpack.c.bf16 %v2696_v9, %v2695_v60  ;;  %v2665_v42 = vadd.f32 %v6147_v50, %v2547_v20  ;;  %3129 = vmatprep.subr.bf16.mxu1 %v4690_v5 }
 0x4a1   : > { %v2698_v43 = vmax.f32 %v2666_v35, 0.0 }
 0x4a2   : > { %v2697_v41 = vmax.f32 %v2665_v42, 0.0  ;;  %v4424_v58 = vpop.f32.mrb[94].mxu0  ;;  %4474 = vmatmul.mubr.bf16.gmra.mrb[56].mxu1 %v2722_v28 }
 0x4a3   : > { %v2668_v10 = vadd.f32 %v4424_v58, %v6147_v50  ;;  %v2557_v45 = vpop.f32.mrb[95].mxu0  ;;  %3130 = vmatpush1.bf16.msra.mxu1 %v4688_v29 }
 0x4a4   : > { %v2723_v54 = vpack.c.bf16 %v2698_v43, %v2697_v41  ;;  %v2667_v2 = vadd.f32 %v6147_v50, %v2557_v45  ;;  %3131 = vmatprep.subr.bf16.mxu1 %v4693_v51 }
 0x4a5   : > { %v2700_v8 = vmax.f32 %v2668_v10, 0.0 }
 0x4a6   : > { %v2699_v13 = vmax.f32 %v2667_v2, 0.0  ;;  %v4427_v33 = vpop.f32.mrb[96].mxu0  ;;  %4477 = vmatprep.mubr.bf16.mxu1 %v2723_v54  ;;  %v4697_v2 = vld [vmem:[%s6486_s13 + $0x70] ss:$8 sps:$4 sm:$0xff]  }
 0x4a7   : > { %v2670_v39 = vadd.f32 %v4427_v33, %v6147_v50  ;;  %v2567_v44 = vpop.f32.mrb[97].mxu0  ;;  %3132 = vmatpush1.bf16.msra.mxu1 %v4691_v47 }
 0x4a8   : > { %v2724_v26 = vpack.c.bf16 %v2700_v8, %v2699_v13  ;;  %v2669_v52 = vadd.f32 %v6147_v50, %v2567_v44  ;;  %3133 = vmatprep.subr.bf16.mxu1 %v4696_v4  ;;  %v4699_v4 = vld [vmem:[%s6486_s13 + $0x74] ss:$8 sps:$4 sm:$0xff]   ;;  %v5122_v8 = vmov 0  }
 0x4a9   : > { %v2702_v49 = vmax.f32 %v2670_v39, 0.0 }
 0x4aa   : > { %v2701_v3 = vmax.f32 %v2669_v52, 0.0  ;;  %v4430_v21 = vpop.f32.mrb[98].mxu0  ;;  %4478 = vmatmul.mubr.bf16.gmra.mrb[60].mxu1 %v2724_v26 }
 0x4ab   : > { %v2672_v15 = vadd.f32 %v4430_v21, %v6147_v50  ;;  %v2577_v17 = vpop.f32.mrb[99].mxu0  ;;  %3134 = vmatpush1.bf16.msra.mxu1 %v4694_v25 }
 0x4ac   : > { %v2725_v23 = vpack.c.bf16 %v2702_v49, %v2701_v3  ;;  %v2671_v48 = vadd.f32 %v6147_v50, %v2577_v17  ;;  %3135 = vmatprep.subr.bf16.mxu1 %v4699_v4 }
 0x4ad   : > { %v2704_v16 = vmax.f32 %v2672_v15, 0.0 }
 0x4ae   : > { %v2703_v24 = vmax.f32 %v2671_v48, 0.0  ;;  %v4433_v53 = vpop.f32.mrb[100].mxu0  ;;  %4481 = vmatprep.mubr.bf16.mxu1 %v2725_v23 }
 0x4af   : > { %v2674_v12 = vadd.f32 %v4433_v53, %v6147_v50  ;;  %v2587_v56 = vpop.f32.mrb[101].mxu0  ;;  %3136 = vmatpush1.bf16.msra.mxu1 %v4697_v2 }
 0x4b0   : > { %v2726_v18 = vpack.c.bf16 %v2704_v16, %v2703_v24  ;;  %v2673_v62 = vadd.f32 %v6147_v50, %v2587_v56 }
 0x4b1   : > { %v2706_v19 = vmax.f32 %v2674_v12, 0.0 }
 0x4b2   : > { %v2705_v46 = vmax.f32 %v2673_v62, 0.0  ;;  %v4436_v34 = vpop.f32.mrb[102].mxu0  ;;  %4482 = vmatmul.mubr.bf16.gmra.mrb[64].mxu1 %v2726_v18 }
 0x4b3   : > { %v2676_v6 = vadd.f32 %v4436_v34, %v6147_v50  ;;  %v2597_v32 = vpop.f32.mrb[103].mxu0 }
 0x4b4   : > { %v2727_v59 = vpack.c.bf16 %v2706_v19, %v2705_v46  ;;  %v2675_v37 = vadd.f32 %v6147_v50, %v2597_v32 }
 0x4b5   : > { %v2708_v0 = vmax.f32 %v2676_v6, 0.0 }
 0x4b6   : > { %v2707_v38 = vmax.f32 %v2675_v37, 0.0  ;;  %v4439_v55 = vpop.f32.mrb[104].mxu0  ;;  %4485 = vmatprep.mubr.bf16.mxu1 %v2727_v59 }
 0x4b7   : > { %v2678_v57 = vadd.f32 %v4439_v55, %v6147_v50  ;;  %v2607_v63 = vpop.f32.mrb[105].mxu0 }
 0x4b8   : > { %v2728_v36 = vpack.c.bf16 %v2708_v0, %v2707_v38  ;;  %v2677_v7 = vadd.f32 %v6147_v50, %v2607_v63 }
 0x4b9   : > { %v2710_v14 = vmax.f32 %v2678_v57, 0.0 }
 0x4ba   : > { %v2709_v1 = vmax.f32 %v2677_v7, 0.0  ;;  %v4442_v11 = vpop.f32.mrb[106].mxu0  ;;  %4486 = vmatmul.mubr.bf16.gmra.mrb[68].mxu1 %v2728_v36 }
 0x4bb   : > { %v2680_v40 = vadd.f32 %v4442_v11, %v6147_v50  ;;  %v2617_v22 = vpop.f32.mrb[107].mxu0 }
 0x4bc   : > { %v2729_v30 = vpack.c.bf16 %v2710_v14, %v2709_v1  ;;  %v2679_v31 = vadd.f32 %v6147_v50, %v2617_v22 }
 0x4bd   : > { %v2712_v5 = vmax.f32 %v2680_v40, 0.0 }
 0x4be   : > { %v2711_v9 = vmax.f32 %v2679_v31, 0.0  ;;  %v4445_v60 = vpop.f32.mrb[108].mxu0  ;;  %4489 = vmatprep.mubr.bf16.mxu1 %v2729_v30 }
 0x4bf   : > { %v2682_v61 = vadd.f32 %v4445_v60, %v6147_v50  ;;  %v2627_v35 = vpop.f32.mrb[109].mxu0 }
 0x4c0   : > { %v2730_v20 = vpack.c.bf16 %v2712_v5, %v2711_v9  ;;  %v2681_v29 = vadd.f32 %v6147_v50, %v2627_v35 }
 0x4c1   : > { %v2714_v28 = vmax.f32 %v2682_v61, 0.0 }
 0x4c2   : > { %v2713_v42 = vmax.f32 %v2681_v29, 0.0  ;;  %v4448_v51 = vpop.f32.mrb[110].mxu0  ;;  %4490 = vmatmul.mubr.bf16.gmra.mrb[72].mxu1 %v2730_v20 }
 0x4c3   : > { %v2684_v43 = vadd.f32 %v4448_v51, %v6147_v50  ;;  %v2637_v41 = vpop.f32.mrb[111].mxu0 }
 0x4c4   : > { %v2731_v58 = vpack.c.bf16 %v2714_v28, %v2713_v42  ;;  %v2683_v10 = vadd.f32 %v6147_v50, %v2637_v41  ;;  %v6230_v50 = vld [vmem:[%s6517_s17] ss:$0 sm:$0xff]  ;;  %s5051_s17 = scalar_lea.vmem %s6426_s18, 8192 }
 0x4c5   : > { %v2716_v45 = vmax.f32 %v2684_v43, 0.0  ;;  %p5052_p11 = scmp.ne.s32.totalorder %s6426_s18, %s5051_s17 }
 0x4c6   : > { %v2715_v47 = vmax.f32 %v2683_v10, 0.0  ;;  %4493 = vmatprep.mubr.bf16.mxu1 %v2731_v58 }
 0x4c7   : > { %p5053_p13 = pnand %p5052_p11, %p6521_p12 }
 0x4c8   : > { %v2732_v54 = vpack.c.bf16 %v2716_v45, %v2715_v47 }
 0x4c9   : > { %p5054_p8 = pneg %p5053_p13 }
 0x4ca   : > { %4494 = vmatmul.mubr.bf16.gmra.mrb[76].mxu1 %v2732_v54 }
 0x4cb   : > { %3153 = vmatprep.mubr.bf16.mxu1 %v5122_v8 }
 0x565   : > { %v4467_v13 = vpop.f32.mrb[48].mxu1 }
 0x566   : > { %v2847_v33 = vadd.f32 %v4467_v13, %v6230_v50  ;;  %v2838_v39 = vpop.f32.mrb[49].mxu1 }
 0x567   : > { %v2839_v44 = vadd.f32 %v6230_v50, %v2838_v39  ;;  %v4468_v25 = vpop.f32.mrb[50].mxu1 }
 0x568   : > { %v2850_v26 = vadd.f32 %v4468_v25, %v6230_v50  ;;  %v2841_v52 = vpop.f32.mrb[51].mxu1  ;;  %v2967_v3 = vmax.f32 %v2847_v33, 0.0 }
 0x569   : > { %v2842_v49 = vadd.f32 %v6230_v50, %v2841_v52  ;;  %v2965_v15 = vmax.f32 %v2839_v44, 0.0 }
 0x56a   : > { %v2968_v21 = vmax.f32 %v2850_v26, 0.0 }
 0x56b   : > { %v2966_v17 = vmax.f32 %v2842_v49, 0.0 }
 0x56c   : > { %v2998_v23 = vpack.c.bf16 %v2968_v21, %v2967_v3 }
 0x56d   : > { %v2997_v48 = vpack.c.bf16 %v2966_v17, %v2965_v15  ;;  %v4471_v16 = vpop.f32.mrb[52].mxu1 }
 0x56e   : > { %v2863_v24 = vadd.f32 %v4471_v16, %v6230_v50  ;;  %v2854_v53 = vpop.f32.mrb[53].mxu1 }
 0x56f   : > { %v2855_v12 = vadd.f32 %v6230_v50, %v2854_v53  ;;  %v4472_v56 = vpop.f32.mrb[54].mxu1  ;;  %3154 = vmatmul.mubr.bf16.vlgmr.msra.gmra.mrb[80].mxu1 %v2997_v48 }
 0x570   : > { %v2866_v18 = vadd.f32 %v4472_v56, %v6230_v50  ;;  %v2857_v62 = vpop.f32.mrb[55].mxu1  ;;  %3163 = vmatprep.mubr.bf16.mxu1 %v5122_v8  ;;  %v2971_v46 = vmax.f32 %v2863_v24, 0.0 }
 0x571   : > { %v2858_v19 = vadd.f32 %v6230_v50, %v2857_v62  ;;  %v2969_v6 = vmax.f32 %v2855_v12, 0.0 }
 0x572   : > { %v2972_v34 = vmax.f32 %v2866_v18, 0.0 }
 0x573   : > { %v2970_v32 = vmax.f32 %v2858_v19, 0.0 }
 0x574   : > { %v3000_v59 = vpack.c.bf16 %v2972_v34, %v2971_v46 }
 0x575   : > { %v2999_v37 = vpack.c.bf16 %v2970_v32, %v2969_v6  ;;  %v4475_v0 = vpop.f32.mrb[56].mxu1 }
 0x576   : > { %v2879_v38 = vadd.f32 %v4475_v0, %v6230_v50  ;;  %v2870_v55 = vpop.f32.mrb[57].mxu1 }
 0x577   : > { %v2871_v57 = vadd.f32 %v6230_v50, %v2870_v55  ;;  %v4476_v63 = vpop.f32.mrb[58].mxu1  ;;  %3164 = vmatmul.mubr.bf16.gmra.mrb[84].mxu1 %v2998_v23 }
 0x578   : > { %v2882_v36 = vadd.f32 %v4476_v63, %v6230_v50  ;;  %v2873_v7 = vpop.f32.mrb[59].mxu1  ;;  %3173 = vmatprep.mubr.bf16.mxu1 %v5122_v8  ;;  %v2975_v1 = vmax.f32 %v2879_v38, 0.0 }
 0x579   : > { %v2874_v14 = vadd.f32 %v6230_v50, %v2873_v7  ;;  %v2973_v40 = vmax.f32 %v2871_v57, 0.0 }
 0x57a   : > { %v2976_v11 = vmax.f32 %v2882_v36, 0.0 }
 0x57b   : > { %v2974_v22 = vmax.f32 %v2874_v14, 0.0 }
 0x57c   : > { %v3002_v30 = vpack.c.bf16 %v2976_v11, %v2975_v1 }
 0x57d   : > { %v3001_v31 = vpack.c.bf16 %v2974_v22, %v2973_v40  ;;  %v4479_v5 = vpop.f32.mrb[60].mxu1 }
 0x57e   : > { %v2895_v9 = vadd.f32 %v4479_v5, %v6230_v50  ;;  %v2886_v60 = vpop.f32.mrb[61].mxu1 }
 0x57f   : > { %v2887_v61 = vadd.f32 %v6230_v50, %v2886_v60  ;;  %v4480_v35 = vpop.f32.mrb[62].mxu1  ;;  %3174 = vmatmul.mubr.bf16.gmra.mrb[88].mxu1 %v2999_v37 }
 0x580   : > { %v2898_v20 = vadd.f32 %v4480_v35, %v6230_v50  ;;  %v2889_v29 = vpop.f32.mrb[63].mxu1  ;;  %3183 = vmatprep.mubr.bf16.mxu1 %v5122_v8  ;;  %v2979_v42 = vmax.f32 %v2895_v9, 0.0 }
 0x581   : > { %v2890_v28 = vadd.f32 %v6230_v50, %v2889_v29  ;;  %v2977_v43 = vmax.f32 %v2887_v61, 0.0 }
 0x582   : > { %v2980_v51 = vmax.f32 %v2898_v20, 0.0 }
 0x583   : > { %v2978_v41 = vmax.f32 %v2890_v28, 0.0 }
 0x584   : > { %v6251_v58 = vpack.c.bf16 %v2980_v51, %v2979_v42 }
 0x585   : > { %v3003_v10 = vpack.c.bf16 %v2978_v41, %v2977_v43  ;;  %v4483_v45 = vpop.f32.mrb[64].mxu1  ;;  %v3029_v43 = vld [vmem:[%s6518_s14] sm:$0x3]  ;;  %s5057_s14 = scalar_lea.vmem %s5056_s12, 16384 }
 0x586   : > { %v2911_v47 = vadd.f32 %v4483_v45, %v6230_v50  ;;  %v2902_v54 = vpop.f32.mrb[65].mxu1  ;;  %p5059_p0 = scmp.lt.s32.totalorder %s5057_s14, %s5051_s17 }
 0x587   : > { %v2903_v2 = vadd.f32 %v6230_v50, %v2902_v54  ;;  %v4484_v4 = vpop.f32.mrb[66].mxu1  ;;  %3184 = vmatmul.mubr.bf16.gmra.mrb[92].mxu1 %v3000_v59 }
 0x588   : > { %v2914_v13 = vadd.f32 %v4484_v4, %v6230_v50  ;;  %v2905_v33 = vpop.f32.mrb[67].mxu1  ;;  %3193 = vmatprep.mubr.bf16.mxu1 %v5122_v8  ;;  %v2983_v44 = vmax.f32 %v2911_v47, 0.0  ;;  %p5060_p2 = por %p5059_p0, %p5058_p10 }
 0x589   : > { %v2906_v39 = vadd.f32 %v6230_v50, %v2905_v33  ;;  %v2981_v26 = vmax.f32 %v2903_v2, 0.0 }
 0x58a   : > { %v2984_v25 = vmax.f32 %v2914_v13, 0.0  ;;  %p5061_p4 = pnand %p5060_p2, %p5054_p8 }
 0x58b   : > { %v2982_v52 = vmax.f32 %v2906_v39, 0.0 }
 0x58c   : > { %v3006_v49 = vpack.c.bf16 %v2984_v25, %v2983_v44 }
 0x58d   : > { %v3005_v3 = vpack.c.bf16 %v2982_v52, %v2981_v26  ;;  %v4487_v21 = vpop.f32.mrb[68].mxu1 }
 0x58e   : > { %v2927_v15 = vadd.f32 %v4487_v21, %v6230_v50  ;;  %v2918_v17 = vpop.f32.mrb[69].mxu1 }
 0x58f   : > { %v2919_v23 = vadd.f32 %v6230_v50, %v2918_v17  ;;  %v4488_v48 = vpop.f32.mrb[70].mxu1  ;;  %3194 = vmatmul.mubr.bf16.gmra.mrb[96].mxu1 %v3001_v31 }
 0x590   : > { %v2930_v16 = vadd.f32 %v4488_v48, %v6230_v50  ;;  %v2921_v24 = vpop.f32.mrb[71].mxu1  ;;  %3203 = vmatprep.mubr.bf16.mxu1 %v5122_v8  ;;  %v2987_v12 = vmax.f32 %v2927_v15, 0.0 }
 0x591   : > { %v2922_v53 = vadd.f32 %v6230_v50, %v2921_v24  ;;  %v2985_v18 = vmax.f32 %v2919_v23, 0.0 }
 0x592   : > { %v2988_v56 = vmax.f32 %v2930_v16, 0.0 }
 0x593   : > { %v2986_v62 = vmax.f32 %v2922_v53, 0.0 }
 0x594   : > { %v3008_v19 = vpack.c.bf16 %v2988_v56, %v2987_v12 }
 0x595   : > { %v3007_v46 = vpack.c.bf16 %v2986_v62, %v2985_v18  ;;  %v4491_v34 = vpop.f32.mrb[72].mxu1 }
 0x596   : > { %v2943_v6 = vadd.f32 %v4491_v34, %v6230_v50  ;;  %v2934_v32 = vpop.f32.mrb[73].mxu1 }
 0x597   : > { %v2935_v59 = vadd.f32 %v6230_v50, %v2934_v32  ;;  %v4492_v37 = vpop.f32.mrb[74].mxu1  ;;  %3204 = vmatmul.mubr.bf16.gmra.mrb[100].mxu1 %v3002_v30 }
 0x598   : > { %v2946_v0 = vadd.f32 %v4492_v37, %v6230_v50  ;;  %v2937_v38 = vpop.f32.mrb[75].mxu1  ;;  %3213 = vmatprep.mubr.bf16.mxu1 %v5122_v8  ;;  %v2991_v57 = vmax.f32 %v2943_v6, 0.0 }
 0x599   : > { %v2938_v55 = vadd.f32 %v6230_v50, %v2937_v38  ;;  %v2989_v36 = vmax.f32 %v2935_v59, 0.0 }
 0x59a   : > { %v2992_v63 = vmax.f32 %v2946_v0, 0.0 }
 0x59b   : > { %v2990_v7 = vmax.f32 %v2938_v55, 0.0 }
 0x59c   : > { %v3010_v14 = vpack.c.bf16 %v2992_v63, %v2991_v57 }
 0x59d   : > { %v3009_v1 = vpack.c.bf16 %v2990_v7, %v2989_v36  ;;  %v4495_v11 = vpop.f32.mrb[76].mxu1 }
 0x59e   : > { %v2959_v40 = vadd.f32 %v4495_v11, %v6230_v50  ;;  %v2950_v22 = vpop.f32.mrb[77].mxu1 }
 0x59f   : > { %v2951_v31 = vadd.f32 %v6230_v50, %v2950_v22  ;;  %v4496_v30 = vpop.f32.mrb[78].mxu1  ;;  %3214 = vmatmul.mubr.bf16.gmra.mrb[104].mxu1 %v3003_v10 }
 0x5a0   : > { %v2962_v5 = vadd.f32 %v4496_v30, %v6230_v50  ;;  %v2953_v9 = vpop.f32.mrb[79].mxu1  ;;  %3223 = vmatprep.mubr.bf16.mxu1 %v5122_v8  ;;  %v2995_v61 = vmax.f32 %v2959_v40, 0.0 }
 0x5a1   : > { %v2954_v60 = vadd.f32 %v6230_v50, %v2953_v9  ;;  %v2993_v20 = vmax.f32 %v2951_v31, 0.0  ;;  %v3032_v50 = vshrl.u32 %v1532_v27, 7 }
 0x5a2   : > { %v2996_v35 = vmax.f32 %v2962_v5, 0.0 }
 0x5a3   : > { %v2994_v29 = vmax.f32 %v2954_v60, 0.0  ;;  %v3033_v51 = vsub.s32 0, %v3032_v50  ;;  %v3037_v41 = vsub.s32 1, %v3032_v50 }
 0x5a4   : > { %v3012_v28 = vpack.c.bf16 %v2996_v35, %v2995_v61 }
 0x5a5   : > { %v3011_v42 = vpack.c.bf16 %v2994_v29, %v2993_v20  ;;  %v6288_v10 = vrot.slane %v3029_v43, %v3037_v41 }
 0x5a7   : > { %3224 = vmatmul.mubr.bf16.gmra.mrb[108].mxu1 %v6251_v58  ;;  %v6286_v58 = vrot.slane %v3029_v43, %v3033_v51 }
 0x5a8   : > { %3233 = vmatprep.mubr.bf16.mxu1 %v5122_v8 }
 0x5af   : > { %3234 = vmatmul.mubr.bf16.gmra.mrb[112].mxu1 %v3005_v3 }
 0x5b0   : > { %3243 = vmatprep.mubr.bf16.mxu1 %v5122_v8 }
 0x5b7   : > { %3244 = vmatmul.mubr.bf16.gmra.mrb[116].mxu1 %v3006_v49 }
 0x5b8   : > { %3253 = vmatprep.mubr.bf16.mxu1 %v5122_v8 }
 0x5bf   : > { %3254 = vmatmul.mubr.bf16.gmra.mrb[120].mxu1 %v3007_v46 }
 0x5c0   : > { %3263 = vmatprep.mubr.bf16.mxu1 %v5122_v8 }
 0x5c7   : > { %3264 = vmatmul.mubr.bf16.gmra.mrb[124].mxu1 %v3008_v19 }
 0x5c8   : > { %3273 = vmatprep.mubr.bf16.mxu1 %v5122_v8 }
 0x5cf   : > { %3274 = vmatmul.mubr.bf16.gmra.mrb[128].mxu1 %v3009_v1 }
 0x5d0   : > { %3283 = vmatprep.mubr.bf16.mxu1 %v5122_v8 }
 0x5d7   : > { %3284 = vmatmul.mubr.bf16.gmra.mrb[132].mxu1 %v3010_v14 }
 0x5d8   : > { %3293 = vmatprep.mubr.bf16.mxu1 %v5122_v8 }
 0x5df   : > { %3294 = vmatmul.mubr.bf16.gmra.mrb[136].mxu1 %v3011_v42 }
 0x5e0   : > { %3303 = vmatprep.mubr.bf16.mxu1 %v5122_v8 }
 0x5e7   : > { %3304 = vmatmul.mubr.bf16.gmra.mrb[140].mxu1 %v3012_v28 }
 0x642   : > { %v3155_v45 = vpop.f32.mrb[80].mxu1 }
 0x643   : > { %v3156_v47 = vadd.f32 %v3155_v45, %v6286_v58  ;;  %v3157_v54 = vpop.f32.mrb[81].mxu1 }
 0x644   : > { %v3158_v2 = vadd.f32 %v3157_v54, %v6288_v10  ;;  %v3159_v8 = vpop.f32.mrb[82].mxu1 }
 0x645   : > { %v3314_v4 = vmul.f32 0.5, %v3156_v47  ;;  %v3160_v27 = vadd.f32 %v3159_v8, %v6286_v58  ;;  %v3161_v13 = vpop.f32.mrb[83].mxu1 }
 0x646   : > { %v3315_v33 = vmul.f32 0.5, %v3158_v2  ;;  %v3162_v39 = vadd.f32 %v3161_v13, %v6288_v10 }
 0x647   : > { %4892 = vtanh.f32 %v3314_v4  ;;  %v3316_v44 = vmul.f32 0.5, %v3160_v27 }
 0x648   : > { %4894 = vtanh.f32 %v3315_v33  ;;  %v3317_v25 = vmul.f32 0.5, %v3162_v39 }
 0x649   : > { %4896 = vtanh.f32 %v3316_v44 }
 0x64a   : > { %4898 = vtanh.f32 %v3317_v25  ;;  %v3165_v26 = vpop.f32.mrb[84].mxu1 }
 0x64b   : > { %v3166_v52 = vadd.f32 %v3165_v26, %v6286_v58  ;;  %v3167_v49 = vpop.f32.mrb[85].mxu1 }
 0x64c   : > { %v3168_v3 = vadd.f32 %v3167_v49, %v6288_v10  ;;  %v3169_v21 = vpop.f32.mrb[86].mxu1 }
 0x64d   : > { %v3318_v15 = vmul.f32 0.5, %v3166_v52  ;;  %v3170_v17 = vadd.f32 %v3169_v21, %v6286_v58  ;;  %v3171_v23 = vpop.f32.mrb[87].mxu1 }
 0x64e   : > { %v3319_v48 = vmul.f32 0.5, %v3168_v3  ;;  %v3172_v16 = vadd.f32 %v3171_v23, %v6288_v10 }
 0x64f   : > { %4900 = vtanh.f32 %v3318_v15  ;;  %v3320_v24 = vmul.f32 0.5, %v3170_v17 }
 0x650   : > { %4902 = vtanh.f32 %v3319_v48  ;;  %v3321_v53 = vmul.f32 0.5, %v3172_v16 }
 0x651   : > { %v4893_v12 = vpop.eup %4892  ;;  %4904 = vtanh.f32 %v3320_v24 }
 0x652   : > { %v4895_v56 = vpop.eup %4894  ;;  %v3442_v18 = vadd.f32 1.0, %v4893_v12  ;;  %4906 = vtanh.f32 %v3321_v53  ;;  %v3175_v62 = vpop.f32.mrb[88].mxu1 }
 0x653   : > { %v4897_v19 = vpop.eup %4896  ;;  %v3443_v46 = vadd.f32 1.0, %v4895_v56  ;;  %v3176_v34 = vadd.f32 %v3175_v62, %v6286_v58  ;;  %v3177_v6 = vpop.f32.mrb[89].mxu1 }
 0x654   : > { %v4899_v32 = vpop.eup %4898  ;;  %v3506_v59 = vmul.f32 0.5, %v3442_v18  ;;  %v3444_v37 = vadd.f32 1.0, %v4897_v19  ;;  %v3178_v0 = vadd.f32 %v3177_v6, %v6288_v10  ;;  %v3179_v38 = vpop.f32.mrb[90].mxu1 }
 0x655   : > { %v3507_v55 = vmul.f32 0.5, %v3443_v46  ;;  %v3445_v57 = vadd.f32 1.0, %v4899_v32  ;;  %v3322_v63 = vmul.f32 0.5, %v3176_v34  ;;  %v3180_v36 = vadd.f32 %v3179_v38, %v6286_v58  ;;  %v3181_v7 = vpop.f32.mrb[91].mxu1 }
 0x656   : > { %3570 = vst [vmem:[%s6303_s26] sm:$0xff] %v3506_v59  ;;  %v3508_v14 = vmul.f32 0.5, %v3444_v37  ;;  %v3323_v1 = vmul.f32 0.5, %v3178_v0  ;;  %v3182_v11 = vadd.f32 %v3181_v7, %v6288_v10 }
 0x657   : > { %3571 = vst [vmem:[%s6303_s26 + $0x8] sm:$0xff] %v3507_v55  ;;  %v3509_v40 = vmul.f32 0.5, %v3445_v57  ;;  %4908 = vtanh.f32 %v3322_v63  ;;  %v3324_v22 = vmul.f32 0.5, %v3180_v36 }
 0x658   : > { %3572 = vst [vmem:[%s6303_s26 + $0x10] sm:$0xff] %v3508_v14  ;;  %4910 = vtanh.f32 %v3323_v1  ;;  %v3325_v31 = vmul.f32 0.5, %v3182_v11 }
 0x659   : > { %v4901_v30 = vpop.eup %4900  ;;  %3573 = vst [vmem:[%s6303_s26 + $0x18] sm:$0xff] %v3509_v40  ;;  %4912 = vtanh.f32 %v3324_v22 }
 0x65a   : > { %v4903_v5 = vpop.eup %4902  ;;  %v3446_v9 = vadd.f32 1.0, %v4901_v30  ;;  %4914 = vtanh.f32 %v3325_v31  ;;  %v3185_v60 = vpop.f32.mrb[92].mxu1 }
 0x65b   : > { %v4905_v61 = vpop.eup %4904  ;;  %v3447_v35 = vadd.f32 1.0, %v4903_v5  ;;  %v3186_v20 = vadd.f32 %v3185_v60, %v6286_v58  ;;  %v3187_v29 = vpop.f32.mrb[93].mxu1 }
 0x65c   : > { %v4907_v28 = vpop.eup %4906  ;;  %v3510_v42 = vmul.f32 0.5, %v3446_v9  ;;  %v3448_v50 = vadd.f32 1.0, %v4905_v61  ;;  %v3188_v51 = vadd.f32 %v3187_v29, %v6288_v10  ;;  %v3189_v43 = vpop.f32.mrb[94].mxu1 }
 0x65d   : > { %v3511_v41 = vmul.f32 0.5, %v3447_v35  ;;  %v3449_v45 = vadd.f32 1.0, %v4907_v28  ;;  %v3326_v47 = vmul.f32 0.5, %v3186_v20  ;;  %v3190_v54 = vadd.f32 %v3189_v43, %v6286_v58  ;;  %v3191_v2 = vpop.f32.mrb[95].mxu1 }
 0x65e   : > { %3574 = vst [vmem:[%s6303_s26 + $0x20] sm:$0xff] %v3510_v42  ;;  %v3512_v8 = vmul.f32 0.5, %v3448_v50  ;;  %v3327_v4 = vmul.f32 0.5, %v3188_v51  ;;  %v3192_v27 = vadd.f32 %v3191_v2, %v6288_v10 }
 0x65f   : > { %3575 = vst [vmem:[%s6303_s26 + $0x28] sm:$0xff] %v3511_v41  ;;  %v3513_v13 = vmul.f32 0.5, %v3449_v45  ;;  %4916 = vtanh.f32 %v3326_v47  ;;  %v3328_v33 = vmul.f32 0.5, %v3190_v54 }
 0x660   : > { %3576 = vst [vmem:[%s6303_s26 + $0x30] sm:$0xff] %v3512_v8  ;;  %4918 = vtanh.f32 %v3327_v4  ;;  %v3329_v39 = vmul.f32 0.5, %v3192_v27 }
 0x661   : > { %v4909_v44 = vpop.eup %4908  ;;  %3577 = vst [vmem:[%s6303_s26 + $0x38] sm:$0xff] %v3513_v13  ;;  %4920 = vtanh.f32 %v3328_v33 }
 0x662   : > { %v4911_v25 = vpop.eup %4910  ;;  %v3450_v26 = vadd.f32 1.0, %v4909_v44  ;;  %4922 = vtanh.f32 %v3329_v39  ;;  %v3195_v52 = vpop.f32.mrb[96].mxu1 }
 0x663   : > { %v4913_v49 = vpop.eup %4912  ;;  %v3451_v3 = vadd.f32 1.0, %v4911_v25  ;;  %v3196_v21 = vadd.f32 %v3195_v52, %v6286_v58  ;;  %v3197_v15 = vpop.f32.mrb[97].mxu1 }
 0x664   : > { %v4915_v17 = vpop.eup %4914  ;;  %v3514_v23 = vmul.f32 0.5, %v3450_v26  ;;  %v3452_v48 = vadd.f32 1.0, %v4913_v49  ;;  %v3198_v16 = vadd.f32 %v3197_v15, %v6288_v10  ;;  %v3199_v24 = vpop.f32.mrb[98].mxu1 }
 0x665   : > { %v3515_v53 = vmul.f32 0.5, %v3451_v3  ;;  %v3453_v12 = vadd.f32 1.0, %v4915_v17  ;;  %v3330_v56 = vmul.f32 0.5, %v3196_v21  ;;  %v3200_v18 = vadd.f32 %v3199_v24, %v6286_v58  ;;  %v3201_v62 = vpop.f32.mrb[99].mxu1 }
 0x666   : > { %3578 = vst [vmem:[%s6303_s26 + $0x40] sm:$0xff] %v3514_v23  ;;  %v3516_v19 = vmul.f32 0.5, %v3452_v48  ;;  %v3331_v46 = vmul.f32 0.5, %v3198_v16  ;;  %v3202_v34 = vadd.f32 %v3201_v62, %v6288_v10 }
 0x667   : > { %3579 = vst [vmem:[%s6303_s26 + $0x48] sm:$0xff] %v3515_v53  ;;  %v3517_v6 = vmul.f32 0.5, %v3453_v12  ;;  %4924 = vtanh.f32 %v3330_v56  ;;  %v3332_v32 = vmul.f32 0.5, %v3200_v18 }
 0x668   : > { %3580 = vst [vmem:[%s6303_s26 + $0x50] sm:$0xff] %v3516_v19  ;;  %4926 = vtanh.f32 %v3331_v46  ;;  %v3333_v59 = vmul.f32 0.5, %v3202_v34 }
 0x669   : > { %v4917_v37 = vpop.eup %4916  ;;  %3581 = vst [vmem:[%s6303_s26 + $0x58] sm:$0xff] %v3517_v6  ;;  %4928 = vtanh.f32 %v3332_v32 }
 0x66a   : > { %v4919_v0 = vpop.eup %4918  ;;  %v3454_v38 = vadd.f32 1.0, %v4917_v37  ;;  %4930 = vtanh.f32 %v3333_v59  ;;  %v3205_v55 = vpop.f32.mrb[100].mxu1 }
 0x66b   : > { %v4921_v57 = vpop.eup %4920  ;;  %v3455_v63 = vadd.f32 1.0, %v4919_v0  ;;  %v3206_v36 = vadd.f32 %v3205_v55, %v6286_v58  ;;  %v3207_v7 = vpop.f32.mrb[101].mxu1 }
 0x66c   : > { %v4923_v14 = vpop.eup %4922  ;;  %v3518_v1 = vmul.f32 0.5, %v3454_v38  ;;  %v3456_v11 = vadd.f32 1.0, %v4921_v57  ;;  %v3208_v40 = vadd.f32 %v3207_v7, %v6288_v10  ;;  %v3209_v22 = vpop.f32.mrb[102].mxu1 }
 0x66d   : > { %v3519_v31 = vmul.f32 0.5, %v3455_v63  ;;  %v3457_v30 = vadd.f32 1.0, %v4923_v14  ;;  %v3334_v5 = vmul.f32 0.5, %v3206_v36  ;;  %v3210_v9 = vadd.f32 %v3209_v22, %v6286_v58  ;;  %v3211_v60 = vpop.f32.mrb[103].mxu1 }
 0x66e   : > { %3582 = vst [vmem:[%s6303_s26 + $0x60] sm:$0xff] %v3518_v1  ;;  %v3520_v61 = vmul.f32 0.5, %v3456_v11  ;;  %v3335_v35 = vmul.f32 0.5, %v3208_v40  ;;  %v3212_v20 = vadd.f32 %v3211_v60, %v6288_v10 }
 0x66f   : > { %3583 = vst [vmem:[%s6303_s26 + $0x68] sm:$0xff] %v3519_v31  ;;  %v3521_v29 = vmul.f32 0.5, %v3457_v30  ;;  %4932 = vtanh.f32 %v3334_v5  ;;  %v3336_v28 = vmul.f32 0.5, %v3210_v9 }
 0x670   : > { %3584 = vst [vmem:[%s6303_s26 + $0x70] sm:$0xff] %v3520_v61  ;;  %4934 = vtanh.f32 %v3335_v35  ;;  %v3337_v42 = vmul.f32 0.5, %v3212_v20 }
 0x671   : > { %v4925_v50 = vpop.eup %4924  ;;  %3585 = vst [vmem:[%s6303_s26 + $0x78] sm:$0xff] %v3521_v29  ;;  %4936 = vtanh.f32 %v3336_v28 }
 0x672   : > { %v4927_v51 = vpop.eup %4926  ;;  %v3458_v43 = vadd.f32 1.0, %v4925_v50  ;;  %4938 = vtanh.f32 %v3337_v42  ;;  %v3215_v41 = vpop.f32.mrb[104].mxu1 }
 0x673   : > { %v4929_v45 = vpop.eup %4928  ;;  %v3459_v47 = vadd.f32 1.0, %v4927_v51  ;;  %v3216_v54 = vadd.f32 %v3215_v41, %v6286_v58  ;;  %v3217_v2 = vpop.f32.mrb[105].mxu1 }
 0x674   : > { %v4931_v8 = vpop.eup %4930  ;;  %v3522_v4 = vmul.f32 0.5, %v3458_v43  ;;  %v3460_v27 = vadd.f32 1.0, %v4929_v45  ;;  %v3218_v13 = vadd.f32 %v3217_v2, %v6288_v10  ;;  %v3219_v33 = vpop.f32.mrb[106].mxu1 }
 0x675   : > { %v3523_v39 = vmul.f32 0.5, %v3459_v47  ;;  %v3461_v44 = vadd.f32 1.0, %v4931_v8  ;;  %v3338_v25 = vmul.f32 0.5, %v3216_v54  ;;  %v3220_v26 = vadd.f32 %v3219_v33, %v6286_v58  ;;  %v3221_v52 = vpop.f32.mrb[107].mxu1 }
 0x676   : > { %3586 = vst [vmem:[%s6303_s26 + $0x80] sm:$0xff] %v3522_v4  ;;  %v3524_v49 = vmul.f32 0.5, %v3460_v27  ;;  %v3339_v3 = vmul.f32 0.5, %v3218_v13  ;;  %v3222_v21 = vadd.f32 %v3221_v52, %v6288_v10 }
 0x677   : > { %3587 = vst [vmem:[%s6303_s26 + $0x88] sm:$0xff] %v3523_v39  ;;  %v3525_v15 = vmul.f32 0.5, %v3461_v44  ;;  %4940 = vtanh.f32 %v3338_v25  ;;  %v3340_v17 = vmul.f32 0.5, %v3220_v26 }
 0x678   : > { %3588 = vst [vmem:[%s6303_s26 + $0x90] sm:$0xff] %v3524_v49  ;;  %4942 = vtanh.f32 %v3339_v3  ;;  %v3341_v23 = vmul.f32 0.5, %v3222_v21 }
 0x679   : > { %v4933_v48 = vpop.eup %4932  ;;  %3589 = vst [vmem:[%s6303_s26 + $0x98] sm:$0xff] %v3525_v15  ;;  %4944 = vtanh.f32 %v3340_v17 }
 0x67a   : > { %v4935_v16 = vpop.eup %4934  ;;  %v3462_v24 = vadd.f32 1.0, %v4933_v48  ;;  %4946 = vtanh.f32 %v3341_v23  ;;  %v3225_v53 = vpop.f32.mrb[108].mxu1 }
 0x67b   : > { %v4937_v12 = vpop.eup %4936  ;;  %v3463_v56 = vadd.f32 1.0, %v4935_v16  ;;  %v3226_v18 = vadd.f32 %v3225_v53, %v6286_v58  ;;  %v3227_v62 = vpop.f32.mrb[109].mxu1 }
 0x67c   : > { %v4939_v19 = vpop.eup %4938  ;;  %v3526_v46 = vmul.f32 0.5, %v3462_v24  ;;  %v3464_v34 = vadd.f32 1.0, %v4937_v12  ;;  %v3228_v6 = vadd.f32 %v3227_v62, %v6288_v10  ;;  %v3229_v32 = vpop.f32.mrb[110].mxu1 }
 0x67d   : > { %v3527_v59 = vmul.f32 0.5, %v3463_v56  ;;  %v3465_v37 = vadd.f32 1.0, %v4939_v19  ;;  %v3342_v0 = vmul.f32 0.5, %v3226_v18  ;;  %v3230_v38 = vadd.f32 %v3229_v32, %v6286_v58  ;;  %v3231_v55 = vpop.f32.mrb[111].mxu1 }
 0x67e   : > { %3590 = vst [vmem:[%s6303_s26 + $0xa0] sm:$0xff] %v3526_v46  ;;  %v3528_v57 = vmul.f32 0.5, %v3464_v34  ;;  %v3343_v63 = vmul.f32 0.5, %v3228_v6  ;;  %v3232_v36 = vadd.f32 %v3231_v55, %v6288_v10 }
 0x67f   : > { %3591 = vst [vmem:[%s6303_s26 + $0xa8] sm:$0xff] %v3527_v59  ;;  %v3529_v7 = vmul.f32 0.5, %v3465_v37  ;;  %4948 = vtanh.f32 %v3342_v0  ;;  %v3344_v14 = vmul.f32 0.5, %v3230_v38 }
 0x680   : > { %3592 = vst [vmem:[%s6303_s26 + $0xb0] sm:$0xff] %v3528_v57  ;;  %4950 = vtanh.f32 %v3343_v63  ;;  %v3345_v1 = vmul.f32 0.5, %v3232_v36 }
 0x681   : > { %v4941_v11 = vpop.eup %4940  ;;  %3593 = vst [vmem:[%s6303_s26 + $0xb8] sm:$0xff] %v3529_v7  ;;  %4952 = vtanh.f32 %v3344_v14 }
 0x682   : > { %v4943_v40 = vpop.eup %4942  ;;  %v3466_v22 = vadd.f32 1.0, %v4941_v11  ;;  %4954 = vtanh.f32 %v3345_v1  ;;  %v3235_v31 = vpop.f32.mrb[112].mxu1 }
 0x683   : > { %v4945_v30 = vpop.eup %4944  ;;  %v3467_v5 = vadd.f32 1.0, %v4943_v40  ;;  %v3236_v9 = vadd.f32 %v3235_v31, %v6286_v58  ;;  %v3237_v60 = vpop.f32.mrb[113].mxu1 }
 0x684   : > { %v4947_v61 = vpop.eup %4946  ;;  %v3530_v35 = vmul.f32 0.5, %v3466_v22  ;;  %v3468_v20 = vadd.f32 1.0, %v4945_v30  ;;  %v3238_v29 = vadd.f32 %v3237_v60, %v6288_v10  ;;  %v3239_v28 = vpop.f32.mrb[114].mxu1 }
 0x685   : > { %v3531_v42 = vmul.f32 0.5, %v3467_v5  ;;  %v3469_v50 = vadd.f32 1.0, %v4947_v61  ;;  %v3346_v51 = vmul.f32 0.5, %v3236_v9  ;;  %v3240_v43 = vadd.f32 %v3239_v28, %v6286_v58  ;;  %v3241_v41 = vpop.f32.mrb[115].mxu1 }
 0x686   : > { %3594 = vst [vmem:[%s6303_s26 + $0xc0] sm:$0xff] %v3530_v35  ;;  %v3532_v45 = vmul.f32 0.5, %v3468_v20  ;;  %v3347_v47 = vmul.f32 0.5, %v3238_v29  ;;  %v3242_v54 = vadd.f32 %v3241_v41, %v6288_v10 }
 0x687   : > { %3595 = vst [vmem:[%s6303_s26 + $0xc8] sm:$0xff] %v3531_v42  ;;  %v3533_v2 = vmul.f32 0.5, %v3469_v50  ;;  %4956 = vtanh.f32 %v3346_v51  ;;  %v3348_v8 = vmul.f32 0.5, %v3240_v43 }
 0x688   : > { %3596 = vst [vmem:[%s6303_s26 + $0xd0] sm:$0xff] %v3532_v45  ;;  %4958 = vtanh.f32 %v3347_v47  ;;  %v3349_v4 = vmul.f32 0.5, %v3242_v54 }
 0x689   : > { %v4949_v27 = vpop.eup %4948  ;;  %3597 = vst [vmem:[%s6303_s26 + $0xd8] sm:$0xff] %v3533_v2  ;;  %4960 = vtanh.f32 %v3348_v8 }
 0x68a   : > { %v4951_v13 = vpop.eup %4950  ;;  %v3470_v33 = vadd.f32 1.0, %v4949_v27  ;;  %4962 = vtanh.f32 %v3349_v4  ;;  %v3245_v39 = vpop.f32.mrb[116].mxu1 }
 0x68b   : > { %v4953_v44 = vpop.eup %4952  ;;  %v3471_v25 = vadd.f32 1.0, %v4951_v13  ;;  %v3246_v26 = vadd.f32 %v3245_v39, %v6286_v58  ;;  %v3247_v52 = vpop.f32.mrb[117].mxu1 }
 0x68c   : > { %v4955_v49 = vpop.eup %4954  ;;  %v3534_v3 = vmul.f32 0.5, %v3470_v33  ;;  %v3472_v21 = vadd.f32 1.0, %v4953_v44  ;;  %v3248_v15 = vadd.f32 %v3247_v52, %v6288_v10  ;;  %v3249_v17 = vpop.f32.mrb[118].mxu1 }
 0x68d   : > { %v3535_v23 = vmul.f32 0.5, %v3471_v25  ;;  %v3473_v48 = vadd.f32 1.0, %v4955_v49  ;;  %v3350_v16 = vmul.f32 0.5, %v3246_v26  ;;  %v3250_v24 = vadd.f32 %v3249_v17, %v6286_v58  ;;  %v3251_v53 = vpop.f32.mrb[119].mxu1 }
 0x68e   : > { %3598 = vst [vmem:[%s6303_s26 + $0xe0] sm:$0xff] %v3534_v3  ;;  %v3536_v12 = vmul.f32 0.5, %v3472_v21  ;;  %v3351_v56 = vmul.f32 0.5, %v3248_v15  ;;  %v3252_v18 = vadd.f32 %v3251_v53, %v6288_v10 }
 0x68f   : > { %3599 = vst [vmem:[%s6303_s26 + $0xe8] sm:$0xff] %v3535_v23  ;;  %v3537_v62 = vmul.f32 0.5, %v3473_v48  ;;  %4964 = vtanh.f32 %v3350_v16  ;;  %v3352_v19 = vmul.f32 0.5, %v3250_v24 }
 0x690   : > { %3600 = vst [vmem:[%s6303_s26 + $0xf0] sm:$0xff] %v3536_v12  ;;  %4966 = vtanh.f32 %v3351_v56  ;;  %v3353_v46 = vmul.f32 0.5, %v3252_v18 }
 0x691   : > { %v4957_v34 = vpop.eup %4956  ;;  %3601 = vst [vmem:[%s6303_s26 + $0xf8] sm:$0xff] %v3537_v62  ;;  %4968 = vtanh.f32 %v3352_v19 }
 0x692   : > { %v4959_v6 = vpop.eup %4958  ;;  %v3474_v32 = vadd.f32 1.0, %v4957_v34  ;;  %4970 = vtanh.f32 %v3353_v46  ;;  %v3255_v59 = vpop.f32.mrb[120].mxu1 }
 0x693   : > { %v4961_v37 = vpop.eup %4960  ;;  %v3475_v0 = vadd.f32 1.0, %v4959_v6  ;;  %v3256_v38 = vadd.f32 %v3255_v59, %v6286_v58  ;;  %v3257_v55 = vpop.f32.mrb[121].mxu1 }
 0x694   : > { %v4963_v57 = vpop.eup %4962  ;;  %v3538_v63 = vmul.f32 0.5, %v3474_v32  ;;  %v3476_v36 = vadd.f32 1.0, %v4961_v37  ;;  %v3258_v7 = vadd.f32 %v3257_v55, %v6288_v10  ;;  %v3259_v14 = vpop.f32.mrb[122].mxu1 }
 0x695   : > { %v3539_v1 = vmul.f32 0.5, %v3475_v0  ;;  %v3477_v11 = vadd.f32 1.0, %v4963_v57  ;;  %v3354_v40 = vmul.f32 0.5, %v3256_v38  ;;  %v3260_v22 = vadd.f32 %v3259_v14, %v6286_v58  ;;  %v3261_v31 = vpop.f32.mrb[123].mxu1 }
 0x696   : > { %3602 = vst [vmem:[%s6303_s26 + $0x100] sm:$0xff] %v3538_v63  ;;  %v3540_v30 = vmul.f32 0.5, %v3476_v36  ;;  %v3355_v5 = vmul.f32 0.5, %v3258_v7  ;;  %v3262_v9 = vadd.f32 %v3261_v31, %v6288_v10 }
 0x697   : > { %3603 = vst [vmem:[%s6303_s26 + $0x108] sm:$0xff] %v3539_v1  ;;  %v3541_v60 = vmul.f32 0.5, %v3477_v11  ;;  %4972 = vtanh.f32 %v3354_v40  ;;  %v3356_v61 = vmul.f32 0.5, %v3260_v22 }
 0x698   : > { %3604 = vst [vmem:[%s6303_s26 + $0x110] sm:$0xff] %v3540_v30  ;;  %4974 = vtanh.f32 %v3355_v5  ;;  %v3357_v35 = vmul.f32 0.5, %v3262_v9 }
 0x699   : > { %v4965_v20 = vpop.eup %4964  ;;  %3605 = vst [vmem:[%s6303_s26 + $0x118] sm:$0xff] %v3541_v60  ;;  %4976 = vtanh.f32 %v3356_v61 }
 0x69a   : > { %v4967_v29 = vpop.eup %4966  ;;  %v3478_v28 = vadd.f32 1.0, %v4965_v20  ;;  %4978 = vtanh.f32 %v3357_v35  ;;  %v3265_v42 = vpop.f32.mrb[124].mxu1 }
 0x69b   : > { %v4969_v50 = vpop.eup %4968  ;;  %v3479_v51 = vadd.f32 1.0, %v4967_v29  ;;  %v3266_v43 = vadd.f32 %v3265_v42, %v6286_v58  ;;  %v3267_v41 = vpop.f32.mrb[125].mxu1 }
 0x69c   : > { %v4971_v45 = vpop.eup %4970  ;;  %v3542_v47 = vmul.f32 0.5, %v3478_v28  ;;  %v3480_v54 = vadd.f32 1.0, %v4969_v50  ;;  %v3268_v2 = vadd.f32 %v3267_v41, %v6288_v10  ;;  %v3269_v8 = vpop.f32.mrb[126].mxu1 }
 0x69d   : > { %v3543_v4 = vmul.f32 0.5, %v3479_v51  ;;  %v3481_v27 = vadd.f32 1.0, %v4971_v45  ;;  %v3358_v13 = vmul.f32 0.5, %v3266_v43  ;;  %v3270_v33 = vadd.f32 %v3269_v8, %v6286_v58  ;;  %v3271_v39 = vpop.f32.mrb[127].mxu1 }
 0x69e   : > { %3606 = vst [vmem:[%s6303_s26 + $0x120] sm:$0xff] %v3542_v47  ;;  %v3544_v44 = vmul.f32 0.5, %v3480_v54  ;;  %v3359_v25 = vmul.f32 0.5, %v3268_v2  ;;  %v3272_v26 = vadd.f32 %v3271_v39, %v6288_v10 }
 0x69f   : > { %3607 = vst [vmem:[%s6303_s26 + $0x128] sm:$0xff] %v3543_v4  ;;  %v3545_v52 = vmul.f32 0.5, %v3481_v27  ;;  %4980 = vtanh.f32 %v3358_v13  ;;  %v3360_v49 = vmul.f32 0.5, %v3270_v33 }
 0x6a0   : > { %3608 = vst [vmem:[%s6303_s26 + $0x130] sm:$0xff] %v3544_v44  ;;  %4982 = vtanh.f32 %v3359_v25  ;;  %v3361_v3 = vmul.f32 0.5, %v3272_v26 }
 0x6a1   : > { %v4973_v21 = vpop.eup %4972  ;;  %3609 = vst [vmem:[%s6303_s26 + $0x138] sm:$0xff] %v3545_v52  ;;  %4984 = vtanh.f32 %v3360_v49 }
 0x6a2   : > { %v4975_v15 = vpop.eup %4974  ;;  %v3482_v17 = vadd.f32 1.0, %v4973_v21  ;;  %4986 = vtanh.f32 %v3361_v3  ;;  %v3275_v23 = vpop.f32.mrb[128].mxu1 }
 0x6a3   : > { %v4977_v48 = vpop.eup %4976  ;;  %v3483_v16 = vadd.f32 1.0, %v4975_v15  ;;  %v3276_v24 = vadd.f32 %v3275_v23, %v6286_v58  ;;  %v3277_v53 = vpop.f32.mrb[129].mxu1 }
 0x6a4   : > { %v4979_v12 = vpop.eup %4978  ;;  %v3546_v56 = vmul.f32 0.5, %v3482_v17  ;;  %v3484_v18 = vadd.f32 1.0, %v4977_v48  ;;  %v3278_v62 = vadd.f32 %v3277_v53, %v6288_v10  ;;  %v3279_v19 = vpop.f32.mrb[130].mxu1 }
 0x6a5   : > { %v3547_v46 = vmul.f32 0.5, %v3483_v16  ;;  %v3485_v34 = vadd.f32 1.0, %v4979_v12  ;;  %v3362_v6 = vmul.f32 0.5, %v3276_v24  ;;  %v3280_v32 = vadd.f32 %v3279_v19, %v6286_v58  ;;  %v3281_v59 = vpop.f32.mrb[131].mxu1 }
 0x6a6   : > { %3610 = vst [vmem:[%s6303_s26 + $0x140] sm:$0xff] %v3546_v56  ;;  %v3548_v37 = vmul.f32 0.5, %v3484_v18  ;;  %v3363_v0 = vmul.f32 0.5, %v3278_v62  ;;  %v3282_v38 = vadd.f32 %v3281_v59, %v6288_v10 }
 0x6a7   : > { %3611 = vst [vmem:[%s6303_s26 + $0x148] sm:$0xff] %v3547_v46  ;;  %v3549_v55 = vmul.f32 0.5, %v3485_v34  ;;  %4988 = vtanh.f32 %v3362_v6  ;;  %v3364_v57 = vmul.f32 0.5, %v3280_v32 }
 0x6a8   : > { %3612 = vst [vmem:[%s6303_s26 + $0x150] sm:$0xff] %v3548_v37  ;;  %4990 = vtanh.f32 %v3363_v0  ;;  %v3365_v63 = vmul.f32 0.5, %v3282_v38 }
 0x6a9   : > { %v4981_v36 = vpop.eup %4980  ;;  %3613 = vst [vmem:[%s6303_s26 + $0x158] sm:$0xff] %v3549_v55  ;;  %4992 = vtanh.f32 %v3364_v57 }
 0x6aa   : > { %v4983_v7 = vpop.eup %4982  ;;  %v3486_v14 = vadd.f32 1.0, %v4981_v36  ;;  %4994 = vtanh.f32 %v3365_v63  ;;  %v3285_v1 = vpop.f32.mrb[132].mxu1 }
 0x6ab   : > { %v4985_v11 = vpop.eup %4984  ;;  %v3487_v40 = vadd.f32 1.0, %v4983_v7  ;;  %v3286_v22 = vadd.f32 %v3285_v1, %v6286_v58  ;;  %v3287_v31 = vpop.f32.mrb[133].mxu1 }
 0x6ac   : > { %v4987_v30 = vpop.eup %4986  ;;  %v3550_v5 = vmul.f32 0.5, %v3486_v14  ;;  %v3488_v9 = vadd.f32 1.0, %v4985_v11  ;;  %v3288_v60 = vadd.f32 %v3287_v31, %v6288_v10  ;;  %v3289_v61 = vpop.f32.mrb[134].mxu1 }
 0x6ad   : > { %v3551_v35 = vmul.f32 0.5, %v3487_v40  ;;  %v3489_v20 = vadd.f32 1.0, %v4987_v30  ;;  %v3366_v29 = vmul.f32 0.5, %v3286_v22  ;;  %v3290_v28 = vadd.f32 %v3289_v61, %v6286_v58  ;;  %v3291_v42 = vpop.f32.mrb[135].mxu1 }
 0x6ae   : > { %3614 = vst [vmem:[%s6303_s26 + $0x160] sm:$0xff] %v3550_v5  ;;  %v3552_v50 = vmul.f32 0.5, %v3488_v9  ;;  %v3367_v51 = vmul.f32 0.5, %v3288_v60  ;;  %v3292_v43 = vadd.f32 %v3291_v42, %v6288_v10 }
 0x6af   : > { %3615 = vst [vmem:[%s6303_s26 + $0x168] sm:$0xff] %v3551_v35  ;;  %v3553_v41 = vmul.f32 0.5, %v3489_v20  ;;  %4996 = vtanh.f32 %v3366_v29  ;;  %v3368_v45 = vmul.f32 0.5, %v3290_v28 }
 0x6b0   : > { %3616 = vst [vmem:[%s6303_s26 + $0x170] sm:$0xff] %v3552_v50  ;;  %4998 = vtanh.f32 %v3367_v51  ;;  %v3369_v47 = vmul.f32 0.5, %v3292_v43 }
 0x6b1   : > { %v4989_v54 = vpop.eup %4988  ;;  %3617 = vst [vmem:[%s6303_s26 + $0x178] sm:$0xff] %v3553_v41  ;;  %5000 = vtanh.f32 %v3368_v45 }
 0x6b2   : > { %v4991_v2 = vpop.eup %4990  ;;  %v3490_v8 = vadd.f32 1.0, %v4989_v54  ;;  %5002 = vtanh.f32 %v3369_v47  ;;  %v3295_v4 = vpop.f32.mrb[136].mxu1 }
 0x6b3   : > { %v4993_v27 = vpop.eup %4992  ;;  %v3491_v13 = vadd.f32 1.0, %v4991_v2  ;;  %v3296_v33 = vadd.f32 %v3295_v4, %v6286_v58  ;;  %v3297_v39 = vpop.f32.mrb[137].mxu1 }
 0x6b4   : > { %v4995_v44 = vpop.eup %4994  ;;  %v3554_v25 = vmul.f32 0.5, %v3490_v8  ;;  %v3492_v26 = vadd.f32 1.0, %v4993_v27  ;;  %v3298_v52 = vadd.f32 %v3297_v39, %v6288_v10  ;;  %v3299_v49 = vpop.f32.mrb[138].mxu1 }
 0x6b5   : > { %v3555_v3 = vmul.f32 0.5, %v3491_v13  ;;  %v3493_v21 = vadd.f32 1.0, %v4995_v44  ;;  %v3370_v15 = vmul.f32 0.5, %v3296_v33  ;;  %v3300_v17 = vadd.f32 %v3299_v49, %v6286_v58  ;;  %v3301_v23 = vpop.f32.mrb[139].mxu1 }
 0x6b6   : > { %3618 = vst [vmem:[%s6303_s26 + $0x180] sm:$0xff] %v3554_v25  ;;  %v3556_v48 = vmul.f32 0.5, %v3492_v26  ;;  %v3371_v16 = vmul.f32 0.5, %v3298_v52  ;;  %v3302_v24 = vadd.f32 %v3301_v23, %v6288_v10 }
 0x6b7   : > { %3619 = vst [vmem:[%s6303_s26 + $0x188] sm:$0xff] %v3555_v3  ;;  %v3557_v53 = vmul.f32 0.5, %v3493_v21  ;;  %5004 = vtanh.f32 %v3370_v15  ;;  %v3372_v12 = vmul.f32 0.5, %v3300_v17 }
 0x6b8   : > { %3620 = vst [vmem:[%s6303_s26 + $0x190] sm:$0xff] %v3556_v48  ;;  %5006 = vtanh.f32 %v3371_v16  ;;  %v3373_v56 = vmul.f32 0.5, %v3302_v24 }
 0x6b9   : > { %v4997_v18 = vpop.eup %4996  ;;  %3621 = vst [vmem:[%s6303_s26 + $0x198] sm:$0xff] %v3557_v53  ;;  %5008 = vtanh.f32 %v3372_v12 }
 0x6ba   : > { %v4999_v62 = vpop.eup %4998  ;;  %v3494_v19 = vadd.f32 1.0, %v4997_v18  ;;  %5010 = vtanh.f32 %v3373_v56  ;;  %v3305_v46 = vpop.f32.mrb[140].mxu1 }
 0x6bb   : > { %v5001_v34 = vpop.eup %5000  ;;  %v3495_v6 = vadd.f32 1.0, %v4999_v62  ;;  %v3306_v32 = vadd.f32 %v3305_v46, %v6286_v58  ;;  %v3307_v59 = vpop.f32.mrb[141].mxu1 }
 0x6bc   : > { %v5003_v37 = vpop.eup %5002  ;;  %v3558_v0 = vmul.f32 0.5, %v3494_v19  ;;  %v3496_v38 = vadd.f32 1.0, %v5001_v34  ;;  %v3308_v55 = vadd.f32 %v3307_v59, %v6288_v10  ;;  %v3309_v57 = vpop.f32.mrb[142].mxu1 }
 0x6bd   : > { %v3559_v63 = vmul.f32 0.5, %v3495_v6  ;;  %v3497_v36 = vadd.f32 1.0, %v5003_v37  ;;  %v3374_v7 = vmul.f32 0.5, %v3306_v32  ;;  %v3310_v14 = vadd.f32 %v3309_v57, %v6286_v58  ;;  %v3311_v1 = vpop.f32.mrb[143].mxu1 }
 0x6be   : > { %3622 = vst [vmem:[%s6303_s26 + $0x1a0] sm:$0xff] %v3558_v0  ;;  %v3560_v11 = vmul.f32 0.5, %v3496_v38  ;;  %v3375_v40 = vmul.f32 0.5, %v3308_v55  ;;  %v3312_v22 = vadd.f32 %v3311_v1, %v6288_v10 }
 0x6bf   : > { %3623 = vst [vmem:[%s6303_s26 + $0x1a8] sm:$0xff] %v3559_v63  ;;  %v3561_v31 = vmul.f32 0.5, %v3497_v36  ;;  %5012 = vtanh.f32 %v3374_v7  ;;  %v3376_v30 = vmul.f32 0.5, %v3310_v14 }
 0x6c0   : > { %3624 = vst [vmem:[%s6303_s26 + $0x1b0] sm:$0xff] %v3560_v11  ;;  %5014 = vtanh.f32 %v3375_v40  ;;  %v3377_v5 = vmul.f32 0.5, %v3312_v22 }
 0x6c1   : > { %v5005_v9 = vpop.eup %5004  ;;  %3625 = vst [vmem:[%s6303_s26 + $0x1b8] sm:$0xff] %v3561_v31  ;;  %5016 = vtanh.f32 %v3376_v30 }
 0x6c2   : > { %v5007_v58 = vpop.eup %5006  ;;  %v3498_v60 = vadd.f32 1.0, %v5005_v9  ;;  %5018 = vtanh.f32 %v3377_v5 }
 0x6c3   : > { %v5009_v61 = vpop.eup %5008  ;;  %v3499_v35 = vadd.f32 1.0, %v5007_v58 }
 0x6c4   : > { %v5011_v10 = vpop.eup %5010  ;;  %v3562_v20 = vmul.f32 0.5, %v3498_v60  ;;  %v3500_v29 = vadd.f32 1.0, %v5009_v61 }
 0x6c5   : > { %v3563_v28 = vmul.f32 0.5, %v3499_v35  ;;  %v3501_v42 = vadd.f32 1.0, %v5011_v10 }
 0x6c6   : > { %3626 = vst [vmem:[%s6303_s26 + $0x1c0] sm:$0xff] %v3562_v20  ;;  %v3564_v50 = vmul.f32 0.5, %v3500_v29 }
 0x6c7   : > { %3627 = vst [vmem:[%s6303_s26 + $0x1c8] sm:$0xff] %v3563_v28  ;;  %v3565_v51 = vmul.f32 0.5, %v3501_v42 }
 0x6c8   : > { %3628 = vst [vmem:[%s6303_s26 + $0x1d0] sm:$0xff] %v3564_v50 }
 0x6c9   : > { %v5013_v43 = vpop.eup %5012  ;;  %3629 = vst [vmem:[%s6303_s26 + $0x1d8] sm:$0xff] %v3565_v51 }
 0x6ca   : > { %v5015_v41 = vpop.eup %5014  ;;  %v3502_v45 = vadd.f32 1.0, %v5013_v43 }
 0x6cb   : > { %v5017_v47 = vpop.eup %5016  ;;  %v3503_v54 = vadd.f32 1.0, %v5015_v41 }
 0x6cc   : > { %v5019_v2 = vpop.eup %5018  ;;  %v3566_v8 = vmul.f32 0.5, %v3502_v45  ;;  %v3504_v4 = vadd.f32 1.0, %v5017_v47 }
 0x6cd   : > { %v3567_v27 = vmul.f32 0.5, %v3503_v54  ;;  %v3505_v13 = vadd.f32 1.0, %v5019_v2 }
 0x6ce   : > { %3630 = vst [vmem:[%s6303_s26 + $0x1e0] sm:$0xff] %v3566_v8  ;;  %v3568_v33 = vmul.f32 0.5, %v3504_v4 }
 0x6cf   : > { %3631 = vst [vmem:[%s6303_s26 + $0x1e8] sm:$0xff] %v3567_v27  ;;  %v3569_v39 = vmul.f32 0.5, %v3505_v13 }
 0x6d0   : > { %3632 = vst [vmem:[%s6303_s26 + $0x1f0] sm:$0xff] %v3568_v33 }
 0x6d1   : > { %3633 = vst [vmem:[%s6303_s26 + $0x1f8] sm:$0xff] %v3569_v39 }
 0x6d2   : > { %5064 = shalt.err (!%p5061_p4)
}
 0x6d3   : > { %s5065_s26 = scalar_lea.hbm %s6424_s0, 8192  ;;  %s5069_s21 = scalar_lea.hbm %s6520_s30, 16384 }
 0x6d4   : > { %p5066_p5 = scmp.ne.s32.totalorder %s6424_s0, %s5065_s26  ;;  %p5070_p1 = scmp.lt.u32.totalorder %s6424_s0, %s6520_s30 }
 0x6d5   : > { %p5071_p3 = scmp.lt.u32.totalorder %s5069_s21, %s5065_s26  ;;  %p5073_p11 = scmp.lt.u32.totalorder %s5065_s26, %s6424_s0 }
 0x6d6   : > { %p5067_p7 = pnand %p5066_p5, %p6521_p12 }
 0x6d7   : > { %p5072_p6 = por %p5071_p3, %p5070_p1 }
 0x6d8   : > { %p5068_p9 = pneg %p5067_p7 }
 0x6d9   : > { %p5074_p13 = por %p5073_p11, %p5072_p6 }
 0x6db   : > { %p5075_p8 = pnand %p5074_p13, %p5068_p9 }
 0x6dd   : > { %5078 = shalt.err (!%p5075_p8)
}
 0x6de   : > { %s5124_s17 = smov 256   ;;  %s5125_s14 = smov 16  }
 0x6df   : > { %4587 = dma.vmem_to_hbm [thread:$0]  (%p6521_p12), %s6426_s18, 8192, %s6424_s0, %s3635_s25, %s5124_s17, %s5124_s17, %s5125_s14  }
 0x6e0 PF: > { %s6522_s29 = sld [smem:[#allocation8_spill]]  ;;  %p6523_p10 = scmp.ne.s32.totalorder %s6511_s19, 0 }
 0x6e1   : > { %p6524_p0 = scmp.ge.s32.totalorder %s5117_s24, 2 }
 0x6e3   : > { %p4594_p2 = pnand %p6524_p0, %p6523_p10 }
 0x6e6   : > { %s3673_s27 = sand.u32 1, %s6522_s29  }
 0x6e7   : > { %s3674_s26 = scalar_lea.sflag [#allocation4], %s3673_s27 }
 0x6e8   : > { %5100 = dma.done.wait (!%p4594_p2), %s3674_s26, 8192  }
 0x6e9   : > { %5102 = vsyncadd (!%p4594_p2), %s3674_s26, 4294959104  ;;  %s6525_s24 = sld [smem:[#allocation10_spill]]  ;;  %s6526_s20 = sld [smem:[#allocation9_spill]] }
 0x6ea   : > { %s6527_s23 = sld [smem:[#allocation11_spill]]  ;;  %s6528_s21 = smov %s5109_s22 }
 0x6ef   : > { %p30_p4 = scmp.ge.s32.totalorder %s6525_s24, 4   ;;  %s6529_s22 = smov %s6526_s20 }
 0x6f1   :  { %32 = sbr.rel (!%p30_p4) target bundleno = 10 (0xa), region = 140 }
 0x6f8   :  { %3687 = vsyncpa [#allocation3], 1 }
 0x6f9   :  { %3689 = vsyncpa [#allocation3 + $0x1], 1 }
 0x6fa   :  { %3690 = vsyncpa [#allocation4], 1 }
 0x6fb   :  { %3692 = vsyncpa [#allocation4 + $0x1], 1 }

</bundles_post_ra>
